<compile_context>
chip_gen: v7x
topology: tpu7x:2x2x1
jax: 0.10.0
libtpu: 0.0.40
codegen_flags: <defaults>
</compile_context>

<pallas_src>
import functools
import math

import jax
import jax.numpy as jnp
from jax.experimental import pallas as pl
from jax.experimental.pallas import tpu as pltpu


# ----------------------------------------------------------------------------- helpers

def _layernorm(x, gamma, beta, eps=1e-5):
    mu = jnp.mean(x, axis=-1, keepdims=True)
    xc = x - mu
    var = jnp.mean(xc * xc, axis=-1, keepdims=True)
    return xc * jax.lax.rsqrt(var + eps) * gamma + beta


def _vmem_limit_bytes():
    """Generation-aware scoped VMEM limit (~75% of physical: 96 MiB on v5e/v6e, 48 MiB on v7x)."""
    try:
        cap = int(pltpu.get_tpu_info().vmem_capacity_bytes)
    except Exception:  # conservative fallback if the query is unavailable
        cap = 64 * 1024 * 1024
    return max(32 * 1024 * 1024, (cap // 4) * 3)


# ----------------------------------------------------------------------------- kernel

def _stack_kernel(x_ref, pos_ref, wqk_ref, wv_ref, wo_ref, w1_ref, w2_ref,
                  bqk_ref, bf1_ref, vecs_ref, out_ref, *, n_head):
    """One grid step = one batch element pushed through the whole encoder stack.

    x_ref   : (1, L, D)  f32      activations for this batch
    pos_ref : (1, 1, D)  f32      position row E[b] (pos[l,b] = E[b] per the torch quirk)
    wqk_ref : (NL, D, 2D) bf16    fused q|k projection, q-half pre-scaled by 1/sqrt(hd)
    wv_ref  : (NL, D, D)  bf16
    wo_ref  : (NL, D, D)  bf16
    w1_ref  : (NL, D, FF) bf16
    w2_ref  : (NL, FF, D) bf16
    bqk_ref : (NL, 1, 2D) f32     fused q|k bias, q-half pre-scaled
    bf1_ref : (NL, 1, FF) f32
    vecs_ref: (NL, 8, D)  f32     rows = [bv, bo, bf2, g1, b1, g2, b2, pad]
    out_ref : (1, L, D)  f32
    """
    num_layers = wqk_ref.shape[0]
    d_model = x_ref.shape[2]
    head_dim = d_model // n_head

    pos = pos_ref[0]          # (1, D) f32, broadcasts over the sequence
    h = x_ref[0]              # (L, D) f32

    for layer in range(num_layers):
        wqk = wqk_ref[layer]                      # (D, 2D) bf16
        wv = wv_ref[layer]                        # (D, D)  bf16
        wo = wo_ref[layer]                        # (D, D)  bf16
        w1 = w1_ref[layer]                        # (D, FF) bf16
        w2 = w2_ref[layer]                        # (FF, D) bf16
        bqk = bqk_ref[layer]                      # (1, 2D) f32
        bf1 = bf1_ref[layer]                      # (1, FF) f32
        vecs = vecs_ref[layer]                    # (8, D)  f32
        bv, bo, bf2 = vecs[0:1], vecs[1:2], vecs[2:3]
        g1, b1 = vecs[3:4], vecs[4:5]
        g2, b2 = vecs[5:6], vecs[6:7]

        # ---- fused q|k projection (q scale folded into weight+bias), v projection ----
        qk_in = (h + pos).astype(jnp.bfloat16)    # q = k = inputs + pos
        qk = jnp.dot(qk_in, wqk, preferred_element_type=jnp.float32) + bqk     # (L, 2D)
        v = jnp.dot(h.astype(jnp.bfloat16), wv,
                    preferred_element_type=jnp.float32) + bv                   # (L, D)
        v = v.astype(jnp.bfloat16)

        # ---- per-head softmax attention (exact softmax, f32 math) ----
        head_outs = []
        for hh in range(n_head):
            lo = hh * head_dim
            hi = lo + head_dim
            q_h = qk[:, lo:hi].astype(jnp.bfloat16)                 # (L, hd)
            k_h = qk[:, d_model + lo:d_model + hi].astype(jnp.bfloat16)
            v_h = v[:, lo:hi]
            s = jax.lax.dot_general(q_h, k_h, (((1,), (1,)), ((), ())),
                                    preferred_element_type=jnp.float32)        # (L, L)
            m = jnp.max(s, axis=-1, keepdims=True)
            p = jnp.exp(s - m)
            p = p / jnp.sum(p, axis=-1, keepdims=True)
            head_outs.append(jnp.dot(p.astype(jnp.bfloat16), v_h,
                                     preferred_element_type=jnp.float32))      # (L, hd)
        attn = jnp.concatenate(head_outs, axis=-1)                  # (L, D) f32

        # ---- Wo projection + residual + norm1 + FFN + residual + norm2 ----
        a = jnp.dot(attn.astype(jnp.bfloat16), wo,
                    preferred_element_type=jnp.float32) + bo
        h1 = _layernorm(h + a, g1, b1)                              # norm1(inputs + attn)
        f = jnp.dot(h1.astype(jnp.bfloat16), w1,
                    preferred_element_type=jnp.float32) + bf1
        f = jnp.maximum(f, 0.0)                                     # ReLU
        f = jnp.dot(f.astype(jnp.bfloat16), w2,
                    preferred_element_type=jnp.float32) + bf2
        h = _layernorm(f + h1, g2, b2)                              # norm2(features + inputs)

    out_ref[0] = h.astype(out_ref.dtype)


# ----------------------------------------------------------------------------- wrapper

def transformers_forward(x, params, *, n_head):
    """Full Transformers forward. x: (L, B, D) (torch nn.MultiheadAttention seq-first)."""
    L, B, D = x.shape
    NL = params['wqk_t'].shape[0]
    FF = params['w1_t'].shape[2]

    # Single layout transpose in/out: internal layout is (B, L, D) so each batch's
    # sequence rows form one contiguous block per grid step.
    x3 = jnp.transpose(x, (1, 0, 2))
    # PositionEmbedding quirk reproduced exactly: the torch module indexes the table
    # with arange(inputs.shape[1]) (= B) and repeats over inputs.shape[0]  ->
    # pos[l, b] = E[b].  Only B distinct rows exist, so pass a (B, 1, D) table.
    pos3 = params['pos_embed'][:B][:, None, :]

    N = B * L
    flops_layer = (2 * N * D * 2 * D      # fused q|k projection
                   + 2 * N * D * D        # v projection
                   + 4 * B * L * L * D    # scores + p@v
                   + 2 * N * D * D        # wo projection
                   + 4 * N * D * FF)      # FFN
    weight_bytes = 2 * NL * (2 * D * D + D * D + D * D + 2 * D * FF)
    cost = pl.CostEstimate(flops=NL * flops_layer,
                           transcendentals=NL * B * n_head * L * L,
                           bytes_accessed=8 * N * D + 4 * B * D + weight_bytes)

    out3 = pl.pallas_call(
        functools.partial(_stack_kernel, n_head=n_head),
        grid=(B,),
        in_specs=[
            pl.BlockSpec((1, L, D), lambda b: (b, 0, 0)),        # x (this batch)
            pl.BlockSpec((1, 1, D), lambda b: (b, 0, 0)),        # pos row E[b]
            pl.BlockSpec((NL, D, 2 * D), lambda b: (0, 0, 0)),   # wqk_t (resident)
            pl.BlockSpec((NL, D, D), lambda b: (0, 0, 0)),       # wv_t  (resident)
            pl.BlockSpec((NL, D, D), lambda b: (0, 0, 0)),       # wo_t  (resident)
            pl.BlockSpec((NL, D, FF), lambda b: (0, 0, 0)),      # w1_t  (resident)
            pl.BlockSpec((NL, FF, D), lambda b: (0, 0, 0)),      # w2_t  (resident)
            pl.BlockSpec((NL, 1, 2 * D), lambda b: (0, 0, 0)),   # bqk
            pl.BlockSpec((NL, 1, FF), lambda b: (0, 0, 0)),      # bf1
            pl.BlockSpec((NL, 8, D), lambda b: (0, 0, 0)),       # packed bias/norm vectors
        ],
        out_specs=pl.BlockSpec((1, L, D), lambda b: (b, 0, 0)),
        out_shape=jax.ShapeDtypeStruct((B, L, D), jnp.float32),
        compiler_params=pltpu.CompilerParams(
            dimension_semantics=("parallel",),
            vmem_limit_bytes=_vmem_limit_bytes()),
        cost_estimate=cost,
    )(x3, pos3, params['wqk_t'], params['wv_t'], params['wo_t'],
      params['w1_t'], params['w2_t'], params['bqk'], params['bf1'], params['vecs'])

    return jnp.transpose(out3, (1, 0, 2))


# ----------------------------------------------------------------------------- params

def _xavier_uniform(key, shape):
    fan_out, fan_in = shape            # PyTorch Linear weight convention: (out, in)
    limit = math.sqrt(6.0 / (fan_in + fan_out))
    return jax.random.uniform(key, shape, jnp.float32, -limit, limit)


def init_params(key, num_position, d_model, n_head, num_layers, dim_feedforward):
    head_dim = d_model // n_head
    scale = 1.0 / math.sqrt(head_dim)
    kp, key = jax.random.split(key)
    pos_embed = jax.random.uniform(kp, (num_position, d_model), jnp.float32)

    wqk_l, wv_l, wo_l, w1_l, w2_l, bqk_l, bf1_l, vecs_l = ([] for _ in range(8))
    for _ in range(num_layers):
        keys = jax.random.split(key, 7)
        key = keys[0]
        wq = _xavier_uniform(keys[1], (d_model, d_model))
        wk = _xavier_uniform(keys[2], (d_model, d_model))
        wv = _xavier_uniform(keys[3], (d_model, d_model))
        wo = _xavier_uniform(keys[4], (d_model, d_model))
        w1 = _xavier_uniform(keys[5], (dim_feedforward, d_model))
        w2 = _xavier_uniform(keys[6], (d_model, dim_feedforward))
        # torch MHA in_proj / out_proj biases init to 0; LayerNorm gamma=1, beta=0.
        bq = jnp.zeros((d_model,), jnp.float32)
        bk = jnp.zeros((d_model,), jnp.float32)
        bv = jnp.zeros((d_model,), jnp.float32)
        bo = jnp.zeros((d_model,), jnp.float32)
        bf1 = jnp.zeros((dim_feedforward,), jnp.float32)
        bf2 = jnp.zeros((d_model,), jnp.float32)
        g1 = jnp.ones((d_model,), jnp.float32)
        b1 = jnp.zeros((d_model,), jnp.float32)
        g2 = jnp.ones((d_model,), jnp.float32)
        b2 = jnp.zeros((d_model,), jnp.float32)

        # q/k fused into one (D, 2D) weight, pre-transposed; softmax scale folded into
        # BOTH the q half of the weight and the q half of the bias (so nonzero trained
        # biases would also be handled correctly).  All matmul weights stored bf16.
        wqk_l.append(jnp.concatenate([wq.T * scale, wk.T], axis=1).astype(jnp.bfloat16))
        wv_l.append(wv.T.astype(jnp.bfloat16))
        wo_l.append(wo.T.astype(jnp.bfloat16))
        w1_l.append(w1.T.astype(jnp.bfloat16))
        w2_l.append(w2.T.astype(jnp.bfloat16))
        bqk_l.append(jnp.concatenate([bq * scale, bk])[None, :])
        bf1_l.append(bf1[None, :])
        vecs_l.append(jnp.stack(
            [bv, bo, bf2, g1, b1, g2, b2, jnp.zeros((d_model,), jnp.float32)], axis=0))

    return {
        'pos_embed': pos_embed,
        'wqk_t': jnp.stack(wqk_l),   # (NL, D, 2D) bf16
        'wv_t': jnp.stack(wv_l),     # (NL, D, D)  bf16
        'wo_t': jnp.stack(wo_l),     # (NL, D, D)  bf16
        'w1_t': jnp.stack(w1_l),     # (NL, D, FF) bf16
        'w2_t': jnp.stack(w2_l),     # (NL, FF, D) bf16
        'bqk': jnp.stack(bqk_l),     # (NL, 1, 2D) f32
        'bf1': jnp.stack(bf1_l),     # (NL, 1, FF) f32
        'vecs': jnp.stack(vecs_l),   # (NL, 8, D)  f32
    }


# ----------------------------------------------------------------------------- main

if __name__ == "__main__":
    # Small but lane/sublane-friendly shapes: inputs are (seq=8, batch=2, d_model=256)
    # per torch MHA's default (L, N, E) convention; head_dim=128, FF=512, 2 layers.
    L, B = 8, 2
    num_position, d_model, n_head = 16, 256, 2
    num_layers, dim_feedforward = 2, 512

    key = jax.random.PRNGKey(0)
    kx, kparams = jax.random.split(key)
    x = jax.random.normal(kx, (L, B, d_model), jnp.float32)
    params = init_params(kparams, num_position, d_model, n_head,
                         num_layers, dim_feedforward)

    fwd = jax.jit(functools.partial(transformers_forward, n_head=n_head))
    out = jax.block_until_ready(fwd(x, params))
    assert out.shape == (L, B, d_model)
    assert bool(jnp.all(jnp.isfinite(out)))
    print("KERNEL_OK")
</pallas_src>

<mosaic_0001>
module attributes {stable_mosaic.version = 11 : i64} {
  func.func @_stack_kernel(%arg0: i32, %arg1: memref<1x8x256xf32, #tpu.memory_space<vmem>>, %arg2: memref<1x1x256xf32, #tpu.memory_space<vmem>>, %arg3: memref<2x256x512xbf16, #tpu.memory_space<vmem>>, %arg4: memref<2x256x256xbf16, #tpu.memory_space<vmem>>, %arg5: memref<2x256x256xbf16, #tpu.memory_space<vmem>>, %arg6: memref<2x256x512xbf16, #tpu.memory_space<vmem>>, %arg7: memref<2x512x256xbf16, #tpu.memory_space<vmem>>, %arg8: memref<2x1x512xf32, #tpu.memory_space<vmem>>, %arg9: memref<2x1x512xf32, #tpu.memory_space<vmem>>, %arg10: memref<2x8x256xf32, #tpu.memory_space<vmem>>, %arg11: memref<1x8x256xf32, #tpu.memory_space<vmem>>) attributes {dimension_semantics = [#tpu.dimension_semantics<parallel>], iteration_bounds = array<i64: 2>, scalar_prefetch = 0 : i64, scratch_operands = 0 : i64, tpu.core_type = #tpu.core_type<tc>, window_params = [{transform_indices = @transform_0, window_bounds = array<i64: 1, 8, 256>}, {transform_indices = @transform_1, window_bounds = array<i64: 1, 1, 256>}, {pipeline_mode = #tpu.pipeline_mode<synchronous>, transform_indices = @transform_2, window_bounds = array<i64: 2, 256, 512>}, {pipeline_mode = #tpu.pipeline_mode<synchronous>, transform_indices = @transform_3, window_bounds = array<i64: 2, 256, 256>}, {pipeline_mode = #tpu.pipeline_mode<synchronous>, transform_indices = @transform_4, window_bounds = array<i64: 2, 256, 256>}, {pipeline_mode = #tpu.pipeline_mode<synchronous>, transform_indices = @transform_5, window_bounds = array<i64: 2, 256, 512>}, {pipeline_mode = #tpu.pipeline_mode<synchronous>, transform_indices = @transform_6, window_bounds = array<i64: 2, 512, 256>}, {pipeline_mode = #tpu.pipeline_mode<synchronous>, transform_indices = @transform_7, window_bounds = array<i64: 2, 1, 512>}, {pipeline_mode = #tpu.pipeline_mode<synchronous>, transform_indices = @transform_8, window_bounds = array<i64: 2, 1, 512>}, {pipeline_mode = #tpu.pipeline_mode<synchronous>, transform_indices = @transform_9, window_bounds = array<i64: 2, 8, 256>}, {transform_indices = @transform_10, window_bounds = array<i64: 1, 8, 256>}]} {
    %c0 = arith.constant 0 : index
    %c0_0 = arith.constant 0 : index
    %c0_1 = arith.constant 0 : index
    %0 = vector.load %arg2[%c0, %c0_0, %c0_1] : memref<1x1x256xf32, #tpu.memory_space<vmem>>, vector<1x1x256xf32>
    %1 = vector.shape_cast %0 : vector<1x1x256xf32> to vector<1x256xf32>
    %c0_2 = arith.constant 0 : index
    %c0_3 = arith.constant 0 : index
    %c0_4 = arith.constant 0 : index
    %2 = vector.load %arg1[%c0_2, %c0_3, %c0_4] : memref<1x8x256xf32, #tpu.memory_space<vmem>>, vector<1x8x256xf32>
    %3 = vector.shape_cast %2 : vector<1x8x256xf32> to vector<8x256xf32>
    %c0_5 = arith.constant 0 : index
    %c0_6 = arith.constant 0 : index
    %c0_7 = arith.constant 0 : index
    %4 = vector.load %arg3[%c0_5, %c0_6, %c0_7] : memref<2x256x512xbf16, #tpu.memory_space<vmem>>, vector<1x256x512xbf16>
    %5 = vector.shape_cast %4 : vector<1x256x512xbf16> to vector<256x512xbf16>
    %c0_8 = arith.constant 0 : index
    %c0_9 = arith.constant 0 : index
    %c0_10 = arith.constant 0 : index
    %6 = vector.load %arg4[%c0_8, %c0_9, %c0_10] : memref<2x256x256xbf16, #tpu.memory_space<vmem>>, vector<1x256x256xbf16>
    %7 = vector.shape_cast %6 : vector<1x256x256xbf16> to vector<256x256xbf16>
    %c0_11 = arith.constant 0 : index
    %c0_12 = arith.constant 0 : index
    %c0_13 = arith.constant 0 : index
    %8 = vector.load %arg5[%c0_11, %c0_12, %c0_13] : memref<2x256x256xbf16, #tpu.memory_space<vmem>>, vector<1x256x256xbf16>
    %9 = vector.shape_cast %8 : vector<1x256x256xbf16> to vector<256x256xbf16>
    %c0_14 = arith.constant 0 : index
    %c0_15 = arith.constant 0 : index
    %c0_16 = arith.constant 0 : index
    %10 = vector.load %arg6[%c0_14, %c0_15, %c0_16] : memref<2x256x512xbf16, #tpu.memory_space<vmem>>, vector<1x256x512xbf16>
    %11 = vector.shape_cast %10 : vector<1x256x512xbf16> to vector<256x512xbf16>
    %c0_17 = arith.constant 0 : index
    %c0_18 = arith.constant 0 : index
    %c0_19 = arith.constant 0 : index
    %12 = vector.load %arg7[%c0_17, %c0_18, %c0_19] : memref<2x512x256xbf16, #tpu.memory_space<vmem>>, vector<1x512x256xbf16>
    %13 = vector.shape_cast %12 : vector<1x512x256xbf16> to vector<512x256xbf16>
    %c0_20 = arith.constant 0 : index
    %c0_21 = arith.constant 0 : index
    %c0_22 = arith.constant 0 : index
    %14 = vector.load %arg8[%c0_20, %c0_21, %c0_22] : memref<2x1x512xf32, #tpu.memory_space<vmem>>, vector<1x1x512xf32>
    %15 = vector.shape_cast %14 : vector<1x1x512xf32> to vector<1x512xf32>
    %c0_23 = arith.constant 0 : index
    %c0_24 = arith.constant 0 : index
    %c0_25 = arith.constant 0 : index
    %16 = vector.load %arg9[%c0_23, %c0_24, %c0_25] : memref<2x1x512xf32, #tpu.memory_space<vmem>>, vector<1x1x512xf32>
    %17 = vector.shape_cast %16 : vector<1x1x512xf32> to vector<1x512xf32>
    %c0_26 = arith.constant 0 : index
    %c0_27 = arith.constant 0 : index
    %c0_28 = arith.constant 0 : index
    %18 = vector.load %arg10[%c0_26, %c0_27, %c0_28] : memref<2x8x256xf32, #tpu.memory_space<vmem>>, vector<1x8x256xf32>
    %19 = vector.shape_cast %18 : vector<1x8x256xf32> to vector<8x256xf32>
    %20 = vector.extract_strided_slice %19 {offsets = [0, 0], sizes = [1, 256], strides = [1, 1]} : vector<8x256xf32> to vector<1x256xf32>
    %21 = vector.extract_strided_slice %19 {offsets = [1, 0], sizes = [1, 256], strides = [1, 1]} : vector<8x256xf32> to vector<1x256xf32>
    %22 = vector.extract_strided_slice %19 {offsets = [2, 0], sizes = [1, 256], strides = [1, 1]} : vector<8x256xf32> to vector<1x256xf32>
    %23 = vector.extract_strided_slice %19 {offsets = [3, 0], sizes = [1, 256], strides = [1, 1]} : vector<8x256xf32> to vector<1x256xf32>
    %24 = vector.extract_strided_slice %19 {offsets = [4, 0], sizes = [1, 256], strides = [1, 1]} : vector<8x256xf32> to vector<1x256xf32>
    %25 = vector.extract_strided_slice %19 {offsets = [5, 0], sizes = [1, 256], strides = [1, 1]} : vector<8x256xf32> to vector<1x256xf32>
    %26 = vector.extract_strided_slice %19 {offsets = [6, 0], sizes = [1, 256], strides = [1, 1]} : vector<8x256xf32> to vector<1x256xf32>
    %27 = vector.broadcast %1 : vector<1x256xf32> to vector<8x256xf32>
    %28 = arith.addf %3, %27 : vector<8x256xf32>
    %29 = arith.truncf %28 : vector<8x256xf32> to vector<8x256xbf16>
    %cst = arith.constant dense<0.000000e+00> : vector<8x512xf32>
    %30 = tpu.matmul %29, %5, %cst {dimension_numbers = #tpu.dot_dimension_numbers<[1], [0], [0], [1], [0, 0, 1, 1], [], []>} : vector<8x256xbf16>, vector<256x512xbf16>, vector<8x512xf32> -> vector<8x512xf32>
    %31 = vector.broadcast %15 : vector<1x512xf32> to vector<8x512xf32>
    %32 = arith.addf %30, %31 : vector<8x512xf32>
    %33 = arith.truncf %3 : vector<8x256xf32> to vector<8x256xbf16>
    %cst_29 = arith.constant dense<0.000000e+00> : vector<8x256xf32>
    %34 = tpu.matmul %33, %7, %cst_29 {dimension_numbers = #tpu.dot_dimension_numbers<[1], [0], [0], [1], [0, 0, 1, 1], [], []>} : vector<8x256xbf16>, vector<256x256xbf16>, vector<8x256xf32> -> vector<8x256xf32>
    %35 = vector.broadcast %20 : vector<1x256xf32> to vector<8x256xf32>
    %36 = arith.addf %34, %35 : vector<8x256xf32>
    %37 = arith.truncf %36 : vector<8x256xf32> to vector<8x256xbf16>
    %38 = vector.extract_strided_slice %32 {offsets = [0, 0], sizes = [8, 128], strides = [1, 1]} : vector<8x512xf32> to vector<8x128xf32>
    %39 = arith.truncf %38 : vector<8x128xf32> to vector<8x128xbf16>
    %40 = vector.extract_strided_slice %32 {offsets = [0, 256], sizes = [8, 128], strides = [1, 1]} : vector<8x512xf32> to vector<8x128xf32>
    %41 = arith.truncf %40 : vector<8x128xf32> to vector<8x128xbf16>
    %42 = vector.extract_strided_slice %37 {offsets = [0, 0], sizes = [8, 128], strides = [1, 1]} : vector<8x256xbf16> to vector<8x128xbf16>
    %cst_30 = arith.constant dense<0.000000e+00> : vector<8x8xf32>
    %43 = tpu.matmul %39, %41, %cst_30 {dimension_numbers = #tpu.dot_dimension_numbers<[1], [1], [0], [0], [0, 0, 1, 0], [], []>} : vector<8x128xbf16>, vector<8x128xbf16>, vector<8x8xf32> -> vector<8x8xf32>
    %cst_31 = arith.constant dense<0xFF800000> : vector<8xf32>
    %44 = vector.multi_reduction <maximumf>, %43, %cst_31 [1] : vector<8x8xf32> to vector<8xf32>
    %45 = vector.shape_cast %44 : vector<8xf32> to vector<8x1xf32>
    %46 = vector.broadcast %45 : vector<8x1xf32> to vector<8x8xf32>
    %47 = arith.subf %43, %46 : vector<8x8xf32>
    %48 = math.exp %47 : vector<8x8xf32>
    %cst_32 = arith.constant dense<0.000000e+00> : vector<8xf32>
    %49 = vector.multi_reduction <add>, %48, %cst_32 [1] : vector<8x8xf32> to vector<8xf32>
    %50 = vector.shape_cast %49 : vector<8xf32> to vector<8x1xf32>
    %51 = vector.broadcast %50 : vector<8x1xf32> to vector<8x8xf32>
    %52 = arith.divf %48, %51 : vector<8x8xf32>
    %53 = arith.truncf %52 : vector<8x8xf32> to vector<8x8xbf16>
    %cst_33 = arith.constant dense<0.000000e+00> : vector<8x128xf32>
    %54 = tpu.matmul %53, %42, %cst_33 {dimension_numbers = #tpu.dot_dimension_numbers<[1], [0], [0], [1], [0, 0, 1, 1], [], []>} : vector<8x8xbf16>, vector<8x128xbf16>, vector<8x128xf32> -> vector<8x128xf32>
    %55 = vector.extract_strided_slice %32 {offsets = [0, 128], sizes = [8, 128], strides = [1, 1]} : vector<8x512xf32> to vector<8x128xf32>
    %56 = arith.truncf %55 : vector<8x128xf32> to vector<8x128xbf16>
    %57 = vector.extract_strided_slice %32 {offsets = [0, 384], sizes = [8, 128], strides = [1, 1]} : vector<8x512xf32> to vector<8x128xf32>
    %58 = arith.truncf %57 : vector<8x128xf32> to vector<8x128xbf16>
    %59 = vector.extract_strided_slice %37 {offsets = [0, 128], sizes = [8, 128], strides = [1, 1]} : vector<8x256xbf16> to vector<8x128xbf16>
    %cst_34 = arith.constant dense<0.000000e+00> : vector<8x8xf32>
    %60 = tpu.matmul %56, %58, %cst_34 {dimension_numbers = #tpu.dot_dimension_numbers<[1], [1], [0], [0], [0, 0, 1, 0], [], []>} : vector<8x128xbf16>, vector<8x128xbf16>, vector<8x8xf32> -> vector<8x8xf32>
    %cst_35 = arith.constant dense<0xFF800000> : vector<8xf32>
    %61 = vector.multi_reduction <maximumf>, %60, %cst_35 [1] : vector<8x8xf32> to vector<8xf32>
    %62 = vector.shape_cast %61 : vector<8xf32> to vector<8x1xf32>
    %63 = vector.broadcast %62 : vector<8x1xf32> to vector<8x8xf32>
    %64 = arith.subf %60, %63 : vector<8x8xf32>
    %65 = math.exp %64 : vector<8x8xf32>
    %cst_36 = arith.constant dense<0.000000e+00> : vector<8xf32>
    %66 = vector.multi_reduction <add>, %65, %cst_36 [1] : vector<8x8xf32> to vector<8xf32>
    %67 = vector.shape_cast %66 : vector<8xf32> to vector<8x1xf32>
    %68 = vector.broadcast %67 : vector<8x1xf32> to vector<8x8xf32>
    %69 = arith.divf %65, %68 : vector<8x8xf32>
    %70 = arith.truncf %69 : vector<8x8xf32> to vector<8x8xbf16>
    %cst_37 = arith.constant dense<0.000000e+00> : vector<8x128xf32>
    %71 = tpu.matmul %70, %59, %cst_37 {dimension_numbers = #tpu.dot_dimension_numbers<[1], [0], [0], [1], [0, 0, 1, 1], [], []>} : vector<8x8xbf16>, vector<8x128xbf16>, vector<8x128xf32> -> vector<8x128xf32>
    %72 = tpu.concatenate %54, %71 in 1 : vector<8x128xf32>, vector<8x128xf32> -> vector<8x256xf32>
    %73 = arith.truncf %72 : vector<8x256xf32> to vector<8x256xbf16>
    %cst_38 = arith.constant dense<0.000000e+00> : vector<8x256xf32>
    %74 = tpu.matmul %73, %9, %cst_38 {dimension_numbers = #tpu.dot_dimension_numbers<[1], [0], [0], [1], [0, 0, 1, 1], [], []>} : vector<8x256xbf16>, vector<256x256xbf16>, vector<8x256xf32> -> vector<8x256xf32>
    %75 = vector.broadcast %21 : vector<1x256xf32> to vector<8x256xf32>
    %76 = arith.addf %74, %75 : vector<8x256xf32>
    %77 = arith.addf %3, %76 : vector<8x256xf32>
    %cst_39 = arith.constant dense<0.000000e+00> : vector<8xf32>
    %78 = vector.multi_reduction <add>, %77, %cst_39 [1] : vector<8x256xf32> to vector<8xf32>
    %79 = vector.shape_cast %78 : vector<8xf32> to vector<8x1xf32>
    %cst_40 = arith.constant 2.560000e+02 : f32
    %80 = vector.broadcast %cst_40 : f32 to vector<8x1xf32>
    %81 = arith.divf %79, %80 : vector<8x1xf32>
    %82 = vector.broadcast %81 : vector<8x1xf32> to vector<8x256xf32>
    %83 = arith.subf %77, %82 : vector<8x256xf32>
    %84 = arith.mulf %83, %83 : vector<8x256xf32>
    %cst_41 = arith.constant dense<0.000000e+00> : vector<8xf32>
    %85 = vector.multi_reduction <add>, %84, %cst_41 [1] : vector<8x256xf32> to vector<8xf32>
    %86 = vector.shape_cast %85 : vector<8xf32> to vector<8x1xf32>
    %cst_42 = arith.constant 2.560000e+02 : f32
    %87 = vector.broadcast %cst_42 : f32 to vector<8x1xf32>
    %88 = arith.divf %86, %87 : vector<8x1xf32>
    %cst_43 = arith.constant 9.99999974E-6 : f32
    %89 = vector.broadcast %cst_43 : f32 to vector<8x1xf32>
    %90 = arith.addf %88, %89 : vector<8x1xf32>
    %91 = math.rsqrt %90 : vector<8x1xf32>
    %92 = vector.broadcast %91 : vector<8x1xf32> to vector<8x256xf32>
    %93 = arith.mulf %83, %92 : vector<8x256xf32>
    %94 = vector.broadcast %23 : vector<1x256xf32> to vector<8x256xf32>
    %95 = arith.mulf %93, %94 : vector<8x256xf32>
    %96 = vector.broadcast %24 : vector<1x256xf32> to vector<8x256xf32>
    %97 = arith.addf %95, %96 : vector<8x256xf32>
    %98 = arith.truncf %97 : vector<8x256xf32> to vector<8x256xbf16>
    %cst_44 = arith.constant dense<0.000000e+00> : vector<8x512xf32>
    %99 = tpu.matmul %98, %11, %cst_44 {dimension_numbers = #tpu.dot_dimension_numbers<[1], [0], [0], [1], [0, 0, 1, 1], [], []>} : vector<8x256xbf16>, vector<256x512xbf16>, vector<8x512xf32> -> vector<8x512xf32>
    %100 = vector.broadcast %17 : vector<1x512xf32> to vector<8x512xf32>
    %101 = arith.addf %99, %100 : vector<8x512xf32>
    %cst_45 = arith.constant 0.000000e+00 : f32
    %102 = vector.broadcast %cst_45 : f32 to vector<8x512xf32>
    %103 = arith.maximumf %101, %102 : vector<8x512xf32>
    %104 = arith.truncf %103 : vector<8x512xf32> to vector<8x512xbf16>
    %cst_46 = arith.constant dense<0.000000e+00> : vector<8x256xf32>
    %105 = tpu.matmul %104, %13, %cst_46 {dimension_numbers = #tpu.dot_dimension_numbers<[1], [0], [0], [1], [0, 0, 1, 1], [], []>} : vector<8x512xbf16>, vector<512x256xbf16>, vector<8x256xf32> -> vector<8x256xf32>
    %106 = vector.broadcast %22 : vector<1x256xf32> to vector<8x256xf32>
    %107 = arith.addf %105, %106 : vector<8x256xf32>
    %108 = arith.addf %107, %97 : vector<8x256xf32>
    %cst_47 = arith.constant dense<0.000000e+00> : vector<8xf32>
    %109 = vector.multi_reduction <add>, %108, %cst_47 [1] : vector<8x256xf32> to vector<8xf32>
    %110 = vector.shape_cast %109 : vector<8xf32> to vector<8x1xf32>
    %cst_48 = arith.constant 2.560000e+02 : f32
    %111 = vector.broadcast %cst_48 : f32 to vector<8x1xf32>
    %112 = arith.divf %110, %111 : vector<8x1xf32>
    %113 = vector.broadcast %112 : vector<8x1xf32> to vector<8x256xf32>
    %114 = arith.subf %108, %113 : vector<8x256xf32>
    %115 = arith.mulf %114, %114 : vector<8x256xf32>
    %cst_49 = arith.constant dense<0.000000e+00> : vector<8xf32>
    %116 = vector.multi_reduction <add>, %115, %cst_49 [1] : vector<8x256xf32> to vector<8xf32>
    %117 = vector.shape_cast %116 : vector<8xf32> to vector<8x1xf32>
    %cst_50 = arith.constant 2.560000e+02 : f32
    %118 = vector.broadcast %cst_50 : f32 to vector<8x1xf32>
    %119 = arith.divf %117, %118 : vector<8x1xf32>
    %cst_51 = arith.constant 9.99999974E-6 : f32
    %120 = vector.broadcast %cst_51 : f32 to vector<8x1xf32>
    %121 = arith.addf %119, %120 : vector<8x1xf32>
    %122 = math.rsqrt %121 : vector<8x1xf32>
    %123 = vector.broadcast %122 : vector<8x1xf32> to vector<8x256xf32>
    %124 = arith.mulf %114, %123 : vector<8x256xf32>
    %125 = vector.broadcast %25 : vector<1x256xf32> to vector<8x256xf32>
    %126 = arith.mulf %124, %125 : vector<8x256xf32>
    %127 = vector.broadcast %26 : vector<1x256xf32> to vector<8x256xf32>
    %128 = arith.addf %126, %127 : vector<8x256xf32>
    %c1 = arith.constant 1 : index
    %c0_52 = arith.constant 0 : index
    %c0_53 = arith.constant 0 : index
    %129 = vector.load %arg3[%c1, %c0_52, %c0_53] : memref<2x256x512xbf16, #tpu.memory_space<vmem>>, vector<1x256x512xbf16>
    %130 = vector.shape_cast %129 : vector<1x256x512xbf16> to vector<256x512xbf16>
    %c1_54 = arith.constant 1 : index
    %c0_55 = arith.constant 0 : index
    %c0_56 = arith.constant 0 : index
    %131 = vector.load %arg4[%c1_54, %c0_55, %c0_56] : memref<2x256x256xbf16, #tpu.memory_space<vmem>>, vector<1x256x256xbf16>
    %132 = vector.shape_cast %131 : vector<1x256x256xbf16> to vector<256x256xbf16>
    %c1_57 = arith.constant 1 : index
    %c0_58 = arith.constant 0 : index
    %c0_59 = arith.constant 0 : index
    %133 = vector.load %arg5[%c1_57, %c0_58, %c0_59] : memref<2x256x256xbf16, #tpu.memory_space<vmem>>, vector<1x256x256xbf16>
    %134 = vector.shape_cast %133 : vector<1x256x256xbf16> to vector<256x256xbf16>
    %c1_60 = arith.constant 1 : index
    %c0_61 = arith.constant 0 : index
    %c0_62 = arith.constant 0 : index
    %135 = vector.load %arg6[%c1_60, %c0_61, %c0_62] : memref<2x256x512xbf16, #tpu.memory_space<vmem>>, vector<1x256x512xbf16>
    %136 = vector.shape_cast %135 : vector<1x256x512xbf16> to vector<256x512xbf16>
    %c1_63 = arith.constant 1 : index
    %c0_64 = arith.constant 0 : index
    %c0_65 = arith.constant 0 : index
    %137 = vector.load %arg7[%c1_63, %c0_64, %c0_65] : memref<2x512x256xbf16, #tpu.memory_space<vmem>>, vector<1x512x256xbf16>
    %138 = vector.shape_cast %137 : vector<1x512x256xbf16> to vector<512x256xbf16>
    %c1_66 = arith.constant 1 : index
    %c0_67 = arith.constant 0 : index
    %c0_68 = arith.constant 0 : index
    %139 = vector.load %arg8[%c1_66, %c0_67, %c0_68] : memref<2x1x512xf32, #tpu.memory_space<vmem>>, vector<1x1x512xf32>
    %140 = vector.shape_cast %139 : vector<1x1x512xf32> to vector<1x512xf32>
    %c1_69 = arith.constant 1 : index
    %c0_70 = arith.constant 0 : index
    %c0_71 = arith.constant 0 : index
    %141 = vector.load %arg9[%c1_69, %c0_70, %c0_71] : memref<2x1x512xf32, #tpu.memory_space<vmem>>, vector<1x1x512xf32>
    %142 = vector.shape_cast %141 : vector<1x1x512xf32> to vector<1x512xf32>
    %c1_72 = arith.constant 1 : index
    %c0_73 = arith.constant 0 : index
    %c0_74 = arith.constant 0 : index
    %143 = vector.load %arg10[%c1_72, %c0_73, %c0_74] : memref<2x8x256xf32, #tpu.memory_space<vmem>>, vector<1x8x256xf32>
    %144 = vector.shape_cast %143 : vector<1x8x256xf32> to vector<8x256xf32>
    %145 = vector.extract_strided_slice %144 {offsets = [0, 0], sizes = [1, 256], strides = [1, 1]} : vector<8x256xf32> to vector<1x256xf32>
    %146 = vector.extract_strided_slice %144 {offsets = [1, 0], sizes = [1, 256], strides = [1, 1]} : vector<8x256xf32> to vector<1x256xf32>
    %147 = vector.extract_strided_slice %144 {offsets = [2, 0], sizes = [1, 256], strides = [1, 1]} : vector<8x256xf32> to vector<1x256xf32>
    %148 = vector.extract_strided_slice %144 {offsets = [3, 0], sizes = [1, 256], strides = [1, 1]} : vector<8x256xf32> to vector<1x256xf32>
    %149 = vector.extract_strided_slice %144 {offsets = [4, 0], sizes = [1, 256], strides = [1, 1]} : vector<8x256xf32> to vector<1x256xf32>
    %150 = vector.extract_strided_slice %144 {offsets = [5, 0], sizes = [1, 256], strides = [1, 1]} : vector<8x256xf32> to vector<1x256xf32>
    %151 = vector.extract_strided_slice %144 {offsets = [6, 0], sizes = [1, 256], strides = [1, 1]} : vector<8x256xf32> to vector<1x256xf32>
    %152 = vector.broadcast %1 : vector<1x256xf32> to vector<8x256xf32>
    %153 = arith.addf %128, %152 : vector<8x256xf32>
    %154 = arith.truncf %153 : vector<8x256xf32> to vector<8x256xbf16>
    %cst_75 = arith.constant dense<0.000000e+00> : vector<8x512xf32>
    %155 = tpu.matmul %154, %130, %cst_75 {dimension_numbers = #tpu.dot_dimension_numbers<[1], [0], [0], [1], [0, 0, 1, 1], [], []>} : vector<8x256xbf16>, vector<256x512xbf16>, vector<8x512xf32> -> vector<8x512xf32>
    %156 = vector.broadcast %140 : vector<1x512xf32> to vector<8x512xf32>
    %157 = arith.addf %155, %156 : vector<8x512xf32>
    %158 = arith.truncf %128 : vector<8x256xf32> to vector<8x256xbf16>
    %cst_76 = arith.constant dense<0.000000e+00> : vector<8x256xf32>
    %159 = tpu.matmul %158, %132, %cst_76 {dimension_numbers = #tpu.dot_dimension_numbers<[1], [0], [0], [1], [0, 0, 1, 1], [], []>} : vector<8x256xbf16>, vector<256x256xbf16>, vector<8x256xf32> -> vector<8x256xf32>
    %160 = vector.broadcast %145 : vector<1x256xf32> to vector<8x256xf32>
    %161 = arith.addf %159, %160 : vector<8x256xf32>
    %162 = arith.truncf %161 : vector<8x256xf32> to vector<8x256xbf16>
    %163 = vector.extract_strided_slice %157 {offsets = [0, 0], sizes = [8, 128], strides = [1, 1]} : vector<8x512xf32> to vector<8x128xf32>
    %164 = arith.truncf %163 : vector<8x128xf32> to vector<8x128xbf16>
    %165 = vector.extract_strided_slice %157 {offsets = [0, 256], sizes = [8, 128], strides = [1, 1]} : vector<8x512xf32> to vector<8x128xf32>
    %166 = arith.truncf %165 : vector<8x128xf32> to vector<8x128xbf16>
    %167 = vector.extract_strided_slice %162 {offsets = [0, 0], sizes = [8, 128], strides = [1, 1]} : vector<8x256xbf16> to vector<8x128xbf16>
    %cst_77 = arith.constant dense<0.000000e+00> : vector<8x8xf32>
    %168 = tpu.matmul %164, %166, %cst_77 {dimension_numbers = #tpu.dot_dimension_numbers<[1], [1], [0], [0], [0, 0, 1, 0], [], []>} : vector<8x128xbf16>, vector<8x128xbf16>, vector<8x8xf32> -> vector<8x8xf32>
    %cst_78 = arith.constant dense<0xFF800000> : vector<8xf32>
    %169 = vector.multi_reduction <maximumf>, %168, %cst_78 [1] : vector<8x8xf32> to vector<8xf32>
    %170 = vector.shape_cast %169 : vector<8xf32> to vector<8x1xf32>
    %171 = vector.broadcast %170 : vector<8x1xf32> to vector<8x8xf32>
    %172 = arith.subf %168, %171 : vector<8x8xf32>
    %173 = math.exp %172 : vector<8x8xf32>
    %cst_79 = arith.constant dense<0.000000e+00> : vector<8xf32>
    %174 = vector.multi_reduction <add>, %173, %cst_79 [1] : vector<8x8xf32> to vector<8xf32>
    %175 = vector.shape_cast %174 : vector<8xf32> to vector<8x1xf32>
    %176 = vector.broadcast %175 : vector<8x1xf32> to vector<8x8xf32>
    %177 = arith.divf %173, %176 : vector<8x8xf32>
    %178 = arith.truncf %177 : vector<8x8xf32> to vector<8x8xbf16>
    %cst_80 = arith.constant dense<0.000000e+00> : vector<8x128xf32>
    %179 = tpu.matmul %178, %167, %cst_80 {dimension_numbers = #tpu.dot_dimension_numbers<[1], [0], [0], [1], [0, 0, 1, 1], [], []>} : vector<8x8xbf16>, vector<8x128xbf16>, vector<8x128xf32> -> vector<8x128xf32>
    %180 = vector.extract_strided_slice %157 {offsets = [0, 128], sizes = [8, 128], strides = [1, 1]} : vector<8x512xf32> to vector<8x128xf32>
    %181 = arith.truncf %180 : vector<8x128xf32> to vector<8x128xbf16>
    %182 = vector.extract_strided_slice %157 {offsets = [0, 384], sizes = [8, 128], strides = [1, 1]} : vector<8x512xf32> to vector<8x128xf32>
    %183 = arith.truncf %182 : vector<8x128xf32> to vector<8x128xbf16>
    %184 = vector.extract_strided_slice %162 {offsets = [0, 128], sizes = [8, 128], strides = [1, 1]} : vector<8x256xbf16> to vector<8x128xbf16>
    %cst_81 = arith.constant dense<0.000000e+00> : vector<8x8xf32>
    %185 = tpu.matmul %181, %183, %cst_81 {dimension_numbers = #tpu.dot_dimension_numbers<[1], [1], [0], [0], [0, 0, 1, 0], [], []>} : vector<8x128xbf16>, vector<8x128xbf16>, vector<8x8xf32> -> vector<8x8xf32>
    %cst_82 = arith.constant dense<0xFF800000> : vector<8xf32>
    %186 = vector.multi_reduction <maximumf>, %185, %cst_82 [1] : vector<8x8xf32> to vector<8xf32>
    %187 = vector.shape_cast %186 : vector<8xf32> to vector<8x1xf32>
    %188 = vector.broadcast %187 : vector<8x1xf32> to vector<8x8xf32>
    %189 = arith.subf %185, %188 : vector<8x8xf32>
    %190 = math.exp %189 : vector<8x8xf32>
    %cst_83 = arith.constant dense<0.000000e+00> : vector<8xf32>
    %191 = vector.multi_reduction <add>, %190, %cst_83 [1] : vector<8x8xf32> to vector<8xf32>
    %192 = vector.shape_cast %191 : vector<8xf32> to vector<8x1xf32>
    %193 = vector.broadcast %192 : vector<8x1xf32> to vector<8x8xf32>
    %194 = arith.divf %190, %193 : vector<8x8xf32>
    %195 = arith.truncf %194 : vector<8x8xf32> to vector<8x8xbf16>
    %cst_84 = arith.constant dense<0.000000e+00> : vector<8x128xf32>
    %196 = tpu.matmul %195, %184, %cst_84 {dimension_numbers = #tpu.dot_dimension_numbers<[1], [0], [0], [1], [0, 0, 1, 1], [], []>} : vector<8x8xbf16>, vector<8x128xbf16>, vector<8x128xf32> -> vector<8x128xf32>
    %197 = tpu.concatenate %179, %196 in 1 : vector<8x128xf32>, vector<8x128xf32> -> vector<8x256xf32>
    %198 = arith.truncf %197 : vector<8x256xf32> to vector<8x256xbf16>
    %cst_85 = arith.constant dense<0.000000e+00> : vector<8x256xf32>
    %199 = tpu.matmul %198, %134, %cst_85 {dimension_numbers = #tpu.dot_dimension_numbers<[1], [0], [0], [1], [0, 0, 1, 1], [], []>} : vector<8x256xbf16>, vector<256x256xbf16>, vector<8x256xf32> -> vector<8x256xf32>
    %200 = vector.broadcast %146 : vector<1x256xf32> to vector<8x256xf32>
    %201 = arith.addf %199, %200 : vector<8x256xf32>
    %202 = arith.addf %128, %201 : vector<8x256xf32>
    %cst_86 = arith.constant dense<0.000000e+00> : vector<8xf32>
    %203 = vector.multi_reduction <add>, %202, %cst_86 [1] : vector<8x256xf32> to vector<8xf32>
    %204 = vector.shape_cast %203 : vector<8xf32> to vector<8x1xf32>
    %cst_87 = arith.constant 2.560000e+02 : f32
    %205 = vector.broadcast %cst_87 : f32 to vector<8x1xf32>
    %206 = arith.divf %204, %205 : vector<8x1xf32>
    %207 = vector.broadcast %206 : vector<8x1xf32> to vector<8x256xf32>
    %208 = arith.subf %202, %207 : vector<8x256xf32>
    %209 = arith.mulf %208, %208 : vector<8x256xf32>
    %cst_88 = arith.constant dense<0.000000e+00> : vector<8xf32>
    %210 = vector.multi_reduction <add>, %209, %cst_88 [1] : vector<8x256xf32> to vector<8xf32>
    %211 = vector.shape_cast %210 : vector<8xf32> to vector<8x1xf32>
    %cst_89 = arith.constant 2.560000e+02 : f32
    %212 = vector.broadcast %cst_89 : f32 to vector<8x1xf32>
    %213 = arith.divf %211, %212 : vector<8x1xf32>
    %cst_90 = arith.constant 9.99999974E-6 : f32
    %214 = vector.broadcast %cst_90 : f32 to vector<8x1xf32>
    %215 = arith.addf %213, %214 : vector<8x1xf32>
    %216 = math.rsqrt %215 : vector<8x1xf32>
    %217 = vector.broadcast %216 : vector<8x1xf32> to vector<8x256xf32>
    %218 = arith.mulf %208, %217 : vector<8x256xf32>
    %219 = vector.broadcast %148 : vector<1x256xf32> to vector<8x256xf32>
    %220 = arith.mulf %218, %219 : vector<8x256xf32>
    %221 = vector.broadcast %149 : vector<1x256xf32> to vector<8x256xf32>
    %222 = arith.addf %220, %221 : vector<8x256xf32>
    %223 = arith.truncf %222 : vector<8x256xf32> to vector<8x256xbf16>
    %cst_91 = arith.constant dense<0.000000e+00> : vector<8x512xf32>
    %224 = tpu.matmul %223, %136, %cst_91 {dimension_numbers = #tpu.dot_dimension_numbers<[1], [0], [0], [1], [0, 0, 1, 1], [], []>} : vector<8x256xbf16>, vector<256x512xbf16>, vector<8x512xf32> -> vector<8x512xf32>
    %225 = vector.broadcast %142 : vector<1x512xf32> to vector<8x512xf32>
    %226 = arith.addf %224, %225 : vector<8x512xf32>
    %cst_92 = arith.constant 0.000000e+00 : f32
    %227 = vector.broadcast %cst_92 : f32 to vector<8x512xf32>
    %228 = arith.maximumf %226, %227 : vector<8x512xf32>
    %229 = arith.truncf %228 : vector<8x512xf32> to vector<8x512xbf16>
    %cst_93 = arith.constant dense<0.000000e+00> : vector<8x256xf32>
    %230 = tpu.matmul %229, %138, %cst_93 {dimension_numbers = #tpu.dot_dimension_numbers<[1], [0], [0], [1], [0, 0, 1, 1], [], []>} : vector<8x512xbf16>, vector<512x256xbf16>, vector<8x256xf32> -> vector<8x256xf32>
    %231 = vector.broadcast %147 : vector<1x256xf32> to vector<8x256xf32>
    %232 = arith.addf %230, %231 : vector<8x256xf32>
    %233 = arith.addf %232, %222 : vector<8x256xf32>
    %cst_94 = arith.constant dense<0.000000e+00> : vector<8xf32>
    %234 = vector.multi_reduction <add>, %233, %cst_94 [1] : vector<8x256xf32> to vector<8xf32>
    %235 = vector.shape_cast %234 : vector<8xf32> to vector<8x1xf32>
    %cst_95 = arith.constant 2.560000e+02 : f32
    %236 = vector.broadcast %cst_95 : f32 to vector<8x1xf32>
    %237 = arith.divf %235, %236 : vector<8x1xf32>
    %238 = vector.broadcast %237 : vector<8x1xf32> to vector<8x256xf32>
    %239 = arith.subf %233, %238 : vector<8x256xf32>
    %240 = arith.mulf %239, %239 : vector<8x256xf32>
    %cst_96 = arith.constant dense<0.000000e+00> : vector<8xf32>
    %241 = vector.multi_reduction <add>, %240, %cst_96 [1] : vector<8x256xf32> to vector<8xf32>
    %242 = vector.shape_cast %241 : vector<8xf32> to vector<8x1xf32>
    %cst_97 = arith.constant 2.560000e+02 : f32
    %243 = vector.broadcast %cst_97 : f32 to vector<8x1xf32>
    %244 = arith.divf %242, %243 : vector<8x1xf32>
    %cst_98 = arith.constant 9.99999974E-6 : f32
    %245 = vector.broadcast %cst_98 : f32 to vector<8x1xf32>
    %246 = arith.addf %244, %245 : vector<8x1xf32>
    %247 = math.rsqrt %246 : vector<8x1xf32>
    %248 = vector.broadcast %247 : vector<8x1xf32> to vector<8x256xf32>
    %249 = arith.mulf %239, %248 : vector<8x256xf32>
    %250 = vector.broadcast %150 : vector<1x256xf32> to vector<8x256xf32>
    %251 = arith.mulf %249, %250 : vector<8x256xf32>
    %252 = vector.broadcast %151 : vector<1x256xf32> to vector<8x256xf32>
    %253 = arith.addf %251, %252 : vector<8x256xf32>
    %c0_99 = arith.constant 0 : index
    %c0_100 = arith.constant 0 : index
    %c0_101 = arith.constant 0 : index
    %254 = vector.load %arg11[%c0_99, %c0_100, %c0_101] : memref<1x8x256xf32, #tpu.memory_space<vmem>>, vector<1x8x256xf32>
    %255 = vector.shape_cast %254 : vector<1x8x256xf32> to vector<8x256xf32>
    %256 = vector.shape_cast %253 : vector<8x256xf32> to vector<1x8x256xf32>
    tpu.vector_store %arg11[%c0_99, %c0_100, %c0_101], %256 {strides = array<i32>} : memref<1x8x256xf32, #tpu.memory_space<vmem>>, vector<1x8x256xf32>,
    return
  }
  func.func @transform_0(%arg0: i32) -> (i32, i32, i32) {
    %c0_i32 = arith.constant 0 : i32
    %c0_i32_0 = arith.constant 0 : i32
    %c0_i32_1 = arith.constant 0 : i32
    return %arg0, %c0_i32, %c0_i32_0 : i32, i32, i32
  }
  func.func @transform_1(%arg0: i32) -> (i32, i32, i32) {
    %c0_i32 = arith.constant 0 : i32
    %c0_i32_0 = arith.constant 0 : i32
    %c0_i32_1 = arith.constant 0 : i32
    return %arg0, %c0_i32, %c0_i32_0 : i32, i32, i32
  }
  func.func @transform_2(%arg0: i32) -> (i32, i32, i32) {
    %c0_i32 = arith.constant 0 : i32
    %c0_i32_0 = arith.constant 0 : i32
    %c0_i32_1 = arith.constant 0 : i32
    %c0_i32_2 = arith.constant 0 : i32
    return %c0_i32, %c0_i32_0, %c0_i32_1 : i32, i32, i32
  }
  func.func @transform_3(%arg0: i32) -> (i32, i32, i32) {
    %c0_i32 = arith.constant 0 : i32
    %c0_i32_0 = arith.constant 0 : i32
    %c0_i32_1 = arith.constant 0 : i32
    %c0_i32_2 = arith.constant 0 : i32
    return %c0_i32, %c0_i32_0, %c0_i32_1 : i32, i32, i32
  }
  func.func @transform_4(%arg0: i32) -> (i32, i32, i32) {
    %c0_i32 = arith.constant 0 : i32
    %c0_i32_0 = arith.constant 0 : i32
    %c0_i32_1 = arith.constant 0 : i32
    %c0_i32_2 = arith.constant 0 : i32
    return %c0_i32, %c0_i32_0, %c0_i32_1 : i32, i32, i32
  }
  func.func @transform_5(%arg0: i32) -> (i32, i32, i32) {
    %c0_i32 = arith.constant 0 : i32
    %c0_i32_0 = arith.constant 0 : i32
    %c0_i32_1 = arith.constant 0 : i32
    %c0_i32_2 = arith.constant 0 : i32
    return %c0_i32, %c0_i32_0, %c0_i32_1 : i32, i32, i32
  }
  func.func @transform_6(%arg0: i32) -> (i32, i32, i32) {
    %c0_i32 = arith.constant 0 : i32
    %c0_i32_0 = arith.constant 0 : i32
    %c0_i32_1 = arith.constant 0 : i32
    %c0_i32_2 = arith.constant 0 : i32
    return %c0_i32, %c0_i32_0, %c0_i32_1 : i32, i32, i32
  }
  func.func @transform_7(%arg0: i32) -> (i32, i32, i32) {
    %c0_i32 = arith.constant 0 : i32
    %c0_i32_0 = arith.constant 0 : i32
    %c0_i32_1 = arith.constant 0 : i32
    %c0_i32_2 = arith.constant 0 : i32
    return %c0_i32, %c0_i32_0, %c0_i32_1 : i32, i32, i32
  }
  func.func @transform_8(%arg0: i32) -> (i32, i32, i32) {
    %c0_i32 = arith.constant 0 : i32
    %c0_i32_0 = arith.constant 0 : i32
    %c0_i32_1 = arith.constant 0 : i32
    %c0_i32_2 = arith.constant 0 : i32
    return %c0_i32, %c0_i32_0, %c0_i32_1 : i32, i32, i32
  }
  func.func @transform_9(%arg0: i32) -> (i32, i32, i32) {
    %c0_i32 = arith.constant 0 : i32
    %c0_i32_0 = arith.constant 0 : i32
    %c0_i32_1 = arith.constant 0 : i32
    %c0_i32_2 = arith.constant 0 : i32
    return %c0_i32, %c0_i32_0, %c0_i32_1 : i32, i32, i32
  }
  func.func @transform_10(%arg0: i32) -> (i32, i32, i32) {
    %c0_i32 = arith.constant 0 : i32
    %c0_i32_0 = arith.constant 0 : i32
    %c0_i32_1 = arith.constant 0 : i32
    return %arg0, %c0_i32, %c0_i32_0 : i32, i32, i32
  }
}

</mosaic_0001>

<bundles_post_ra>
// kernel: transformers_forward.1
= control target key start
LH: loop header
LB: loop body
LE: loop exit
PB: predicated region body
PF: predicated region fallthrough
CT: control target
= control target key end

     0   :  { %15 = vsyncpa [#allocation3], 0  ;;  %s7247_s0 = inlined_call_operand.vmem [shape: f32[2,8,256], index: 0, kind: input, shape index: {}]   ;;  %s7248_s1 = inlined_call_operand.vmem [shape: f32[2,1,256], index: 1, kind: input, shape index: {}]   ;;  %s7249_s2 = inlined_call_operand.hbm [shape: bf16[2,256,512], index: 2, kind: input, shape index: {}]   ;;  %s7250_s3 = inlined_call_operand.hbm [shape: bf16[2,256,256], index: 3, kind: input, shape index: {}]   ;;  %s7251_s4 = inlined_call_operand.hbm [shape: bf16[2,256,256], index: 4, kind: input, shape index: {}]   ;;  %s7252_s5 = inlined_call_operand.hbm [shape: bf16[2,256,512], index: 5, kind: input, shape index: {}]   ;;  %s7253_s6 = inlined_call_operand.hbm [shape: bf16[2,512,256], index: 6, kind: input, shape index: {}]   ;;  %s7254_s7 = inlined_call_operand.vmem [shape: f32[2,1,512], index: 7, kind: input, shape index: {}]   ;;  %s7255_s8 = inlined_call_operand.vmem [shape: f32[2,1,512], index: 8, kind: input, shape index: {}]   ;;  %s7256_s9 = inlined_call_operand.vmem [shape: f32[2,8,256], index: 9, kind: input, shape index: {}]   ;;  %s7257_s10 = inlined_call_operand.vmem [shape: f32[2,8,256], index: 10, kind: output, shape index: {}]  }
   0x1   :  { %16 = vsyncpa [#allocation5], 0 }
   0x2   :  { %17 = vsyncpa [#allocation8], 0  ;;  %s6750_s13 = smov 0  }
   0x3 LB: > { %s6684_s14 = smov [#allocation4]   ;;  %s6756_s16 = sadd.s32 4294967295, %s6682_s13   ;;  %s6682_s13 = sphi %s6750_s13, %s23_s13  }
   0x4   : > { %s299_s15 = sshll.u32 %s6684_s14, 4  ;;  %p5057_p0 = scmp.ge.s32.totalorder %s6682_s13, 1  ;;  %s6761_s15 = int_to_ptr.vmem [resolvable:$true] %s299_s15 }
   0x5   : > { %p274_p1 = scmp.lt.s32.totalorder %s6682_s13, 3  ;;  %p7260_p2 = scmp.eq.s32.totalorder %s6756_s16, 0 }
   0x6   : > { %s6685_s19 = smov [#allocation7]   ;;  %s6686_s21 = smov [#allocation2]  }
   0x7   : > { %p6763_p3 = pnand %p5057_p0, %p274_p1  ;;  %s325_s20 = sshll.u32 %s6685_s19, 4  ;;  %s6775_s20 = int_to_ptr.vmem [resolvable:$true] %s325_s20 }
   0x8   : > { %s286_s22 = sshll.u32 %s6686_s21, 4  ;;  %s6524_s25 = scalar_lea.hbm %s7250_s3, 8192  ;;  %s6777_s22 = int_to_ptr.vmem [resolvable:$true] %s286_s22 }
   0x9   : > { %s7262_s17 = scalar_select %p6763_p3, 1, 0 }
   0xa   : > { %p5683_p4 = pneg %p6763_p3  ;;  %p6525_p6 = scmp.ne.s32.totalorder %s7250_s3, %s6524_s25 }
   0xb   : > { %p6531_p10 = scmp.lt.u32.totalorder %s6524_s25, %s7250_s3 }
   0xc   : > { %p6771_p5 = pnand %p7260_p2, %p5683_p4 }
   0xe   : > { %p6787_p7 = pneg %p6771_p5 }
  0x10   : > { %p6527_p8 = pnand %p6787_p7, %p6525_p6 }
  0x12   : > { %p6528_p9 = pneg %p6527_p8 }
  0x14   : > { %p6533_p11 = pnand %p6531_p10, %p6528_p9 }
  0x16   : > { %6536 = shalt.err (!%p6533_p11)
}
  0x17   : > { %s6537_s11 = scalar_lea.vmem %s6761_s15, 8192  ;;  %p6545_p1 = scmp.lt.s32.totalorder %s6761_s15, %s6761_s15 }
  0x18   : > { %p6538_p12 = scmp.ne.s32.totalorder %s6761_s15, %s6537_s11  ;;  %p6546_p4 = scmp.lt.s32.totalorder %s6537_s11, %s6537_s11 }
  0x1a   : > { %p6540_p13 = pnand %p6538_p12, %p6787_p7  ;;  %p6547_p6 = por %p6546_p4, %p6545_p1 }
  0x1c   : > { %p6541_p0 = pneg %p6540_p13 }
  0x1e   : > { %p6548_p8 = pnand %p6547_p6, %p6541_p0 }
  0x20   : > { %6551 = shalt.err (!%p6548_p8)
}
  0x21   : > { %s7258_s12 = smov 128   ;;  %s6688_s14 = smov 8  }
  0x22   : > { %5689 = dma.hbm_to_vmem [thread:$0]  (!%p6771_p5), %s7250_s3, 8192, %s6761_s15, [#allocation5], %s7258_s12, %s7258_s12, %s6688_s14  }
  0x23   : > { %s6552_s25 = scalar_lea.hbm %s7252_s5, 16384 }
  0x24   : > { %p6553_p9 = scmp.ne.s32.totalorder %s7252_s5, %s6552_s25  ;;  %p6559_p12 = scmp.lt.u32.totalorder %s6552_s25, %s7252_s5 }
  0x26   : > { %p6555_p10 = pnand %p6553_p9, %p6787_p7 }
  0x28   : > { %p6556_p11 = pneg %p6555_p10 }
  0x2a   : > { %p6561_p13 = pnand %p6559_p12, %p6556_p11 }
  0x2c   : > { %6564 = shalt.err (!%p6561_p13)
}
  0x2d   : > { %s6565_s15 = scalar_lea.vmem %s6775_s20, 16384  ;;  %p6573_p6 = scmp.lt.s32.totalorder %s6775_s20, %s6775_s20 }
  0x2e   : > { %p6566_p0 = scmp.ne.s32.totalorder %s6775_s20, %s6565_s15  ;;  %p6574_p8 = scmp.lt.s32.totalorder %s6565_s15, %s6565_s15 }
  0x30   : > { %p6568_p1 = pnand %p6566_p0, %p6787_p7  ;;  %p6575_p9 = por %p6574_p8, %p6573_p6 }
  0x32   : > { %p6569_p4 = pneg %p6568_p1 }
  0x34   : > { %p6576_p10 = pnand %p6575_p9, %p6569_p4 }
  0x36   : > { %6579 = shalt.err (!%p6576_p10)
}
  0x37   : > { %s6689_s11 = smov 256   ;;  %s6690_s19 = smov 16  }
  0x38   : > { %5695 = dma.hbm_to_vmem [thread:$0]  (!%p6771_p5), %s7252_s5, 16384, %s6775_s20, [#allocation8], %s6689_s11, %s6689_s11, %s6690_s19  }
  0x39   : > { %s6580_s26 = scalar_lea.hbm %s7249_s2, 16384 }
  0x3a   : > { %p6581_p11 = scmp.ne.s32.totalorder %s7249_s2, %s6580_s26  ;;  %p6587_p0 = scmp.lt.u32.totalorder %s6580_s26, %s7249_s2 }
  0x3c   : > { %p6583_p12 = pnand %p6581_p11, %p6787_p7 }
  0x3e   : > { %p6584_p13 = pneg %p6583_p12 }
  0x40   : > { %p6589_p1 = pnand %p6587_p0, %p6584_p13 }
  0x42   : > { %6592 = shalt.err (!%p6589_p1)
}
  0x43   : > { %s6593_s20 = scalar_lea.vmem %s6777_s22, 16384  ;;  %p6601_p9 = scmp.lt.s32.totalorder %s6777_s22, %s6777_s22 }
  0x44   : > { %p6594_p4 = scmp.ne.s32.totalorder %s6777_s22, %s6593_s20  ;;  %p6602_p10 = scmp.lt.s32.totalorder %s6593_s20, %s6593_s20 }
  0x46   : > { %p6596_p6 = pnand %p6594_p4, %p6787_p7  ;;  %p6603_p11 = por %p6602_p10, %p6601_p9 }
  0x48   : > { %p6597_p8 = pneg %p6596_p6 }
  0x4a   : > { %p6604_p12 = pnand %p6603_p11, %p6597_p8 }
  0x4c   : > { %6607 = shalt.err (!%p6604_p12)
}
  0x4d   : > { %5686 = dma.hbm_to_vmem [thread:$0]  (!%p6771_p5), %s7249_s2, 16384, %s6777_s22, [#allocation3], %s6689_s11, %s6689_s11, %s6690_s19  }
  0x4e   : > { %s6691_s24 = smov [#allocation6]   ;;  %s6692_s26 = smov [#allocation9]  }
  0x4f   : > { %s312_s25 = sshll.u32 %s6691_s24, 4  ;;  %s338_s27 = sshll.u32 %s6692_s26, 4  ;;  %s313_s25 = int_to_ptr.vmem [resolvable:$true] %s312_s25  ;;  %s6857_s27 = int_to_ptr.vmem [resolvable:$true] %s338_s27 }
  0x50   : > { %s6608_s15 = scalar_lea.hbm %s7251_s4, 8192 }
  0x51   : > { %p6609_p13 = scmp.ne.s32.totalorder %s7251_s4, %s6608_s15  ;;  %p6615_p4 = scmp.lt.u32.totalorder %s6608_s15, %s7251_s4 }
  0x53   : > { %p6611_p0 = pnand %p6609_p13, %p6787_p7 }
  0x55   : > { %p6612_p1 = pneg %p6611_p0 }
  0x57   : > { %p6617_p6 = pnand %p6615_p4, %p6612_p1 }
  0x59   : > { %6620 = shalt.err (!%p6617_p6)
}
  0x5a   : > { %s6621_s11 = scalar_lea.vmem %s313_s25, 8192  ;;  %p6629_p11 = scmp.lt.s32.totalorder %s313_s25, %s313_s25 }
  0x5b   : > { %p6622_p8 = scmp.ne.s32.totalorder %s313_s25, %s6621_s11  ;;  %p6630_p12 = scmp.lt.s32.totalorder %s6621_s11, %s6621_s11 }
  0x5d   : > { %p6624_p9 = pnand %p6622_p8, %p6787_p7  ;;  %p6631_p2 = por %p6630_p12, %p6629_p11 }
  0x5f   : > { %p6625_p10 = pneg %p6624_p9 }
  0x61   : > { %p6632_p3 = pnand %p6631_p2, %p6625_p10 }
  0x63   : > { %6635 = shalt.err (!%p6632_p3)
}
  0x64   : > { %s7265_s12 = smov 128   ;;  %s6636_s29 = scalar_lea.hbm %s7253_s6, 16384 }
  0x65   : > { %5692 = dma.hbm_to_vmem [thread:$0]  (!%p6771_p5), %s7251_s4, 8192, %s313_s25, [#allocation5], %s7265_s12, %s7265_s12, %s6688_s14  }
  0x66   : > { %p6637_p13 = scmp.ne.s32.totalorder %s7253_s6, %s6636_s29  ;;  %p6643_p0 = scmp.lt.u32.totalorder %s6636_s29, %s7253_s6 }
  0x68   : > { %p6639_p2 = pnand %p6637_p13, %p6787_p7 }
  0x6a   : > { %p6640_p3 = pneg %p6639_p2 }
  0x6c   : > { %p6645_p1 = pnand %p6643_p0, %p6640_p3 }
  0x6e   : > { %6648 = shalt.err (!%p6645_p1)
}
  0x6f   : > { %s6649_s25 = scalar_lea.vmem %s6857_s27, 16384  ;;  %p6657_p9 = scmp.lt.s32.totalorder %s6857_s27, %s6857_s27 }
  0x70   : > { %p6650_p4 = scmp.ne.s32.totalorder %s6857_s27, %s6649_s25  ;;  %p6658_p10 = scmp.lt.s32.totalorder %s6649_s25, %s6649_s25 }
  0x72   : > { %p6652_p6 = pnand %p6650_p4, %p6787_p7  ;;  %p6659_p11 = por %p6658_p10, %p6657_p9 }
  0x74   : > { %p6653_p8 = pneg %p6652_p6 }
  0x76   : > { %p6660_p12 = pnand %p6659_p11, %p6653_p8 }
  0x78   : > { %6663 = shalt.err (!%p6660_p12)
}
  0x79   : > { %5698 = dma.hbm_to_vmem [thread:$0]  (!%p6771_p5), %s7253_s6, 16384, %s6857_s27, [#allocation8], %s7265_s12, %s7265_s12, %s6688_s14  }
  0x7a   : > { %p7266_p13 = scmp.ne.s32.totalorder %s7262_s17, 0 }
  0x7b   : > { %p7267_p7 = scmp.eq.s32.totalorder (!%p7266_p13), %s6756_s16, 0 }
  0x7c   : > { %378 = sbr.rel (%p7266_p13) target bundleno = 5792 (0x16a0), region = 60 }
  0x83   : > { %6669 = dma.done.wait (%p7267_p7), [#allocation3], 16384   ;;  %p7268_p2 = pmov %p7267_p7 }
  0x85   : > { %6671 = vsyncadd (%p7268_p2), [#allocation3], 4294950912  ;;  %p7269_p3 = pmov %p7268_p2 }
  0x86   : > { %p7270_p0 = pmov %p7268_p2 }
  0x87   : > { %6673 = dma.done.wait (%p7269_p3), [#allocation5], 16384  }
  0x88   : > { %6675 = vsyncadd (%p7270_p0), [#allocation5], 4294950912  ;;  %p7271_p1 = pmov %p7270_p0 }
  0x89   : > { %p7272_p5 = pmov %p7270_p0 }
  0x8a   : > { %6677 = dma.done.wait (%p7271_p1), [#allocation8], 32768  }
  0x8b   : > { %6679 = vsyncadd (%p7272_p5), [#allocation8], 4294934528  ;;  %v5728_v0 = vld [vmem:[#allocation2 + $0xc] ss:$16 sps:$4 sm:$0xff]   ;;  %v5730_v1 = vld [vmem:[#allocation2 + $0x8] ss:$16 sps:$4 sm:$0xff]   ;;  %v715_v34 = vlaneseq }
  0x8c   : > { %1111 = vmatprep.subr.bf16.mxu1 %v5728_v0  ;;  %v5731_v2 = vld [vmem:[#allocation2 + $0x4] ss:$16 sps:$4 sm:$0xff]   ;;  %v5733_v3 = vld [vmem:[#allocation2 + $0x2c] ss:$16 sps:$4 sm:$0xff]   ;;  %v5735_v4 = vld [vmem:[#allocation2] ss:$16 sps:$4 sm:$0xff]  }
  0x8d   : > { %1112 = vmatpush1.bf16.msra.mxu1 %v5730_v1  ;;  %v5736_v5 = vld [vmem:[#allocation2 + $0x28] ss:$16 sps:$4 sm:$0xff]   ;;  %1070 = vmatprep.subr.bf16.mxu0 %v5731_v2  ;;  %v5737_v6 = vld [vmem:[#allocation2 + $0x24] ss:$16 sps:$4 sm:$0xff]   ;;  %v5739_v7 = vld [vmem:[#allocation2 + $0x4c] ss:$16 sps:$4 sm:$0xff]  }
  0x8e   : > { %1113 = vmatprep.subr.bf16.mxu1 %v5733_v3  ;;  %1071 = vmatpush1.bf16.msra.mxu0 %v5735_v4  ;;  %v5741_v8 = vld [vmem:[#allocation2 + $0x20] ss:$16 sps:$4 sm:$0xff]   ;;  %v5742_v9 = vld [vmem:[#allocation2 + $0x48] ss:$16 sps:$4 sm:$0xff]   ;;  %v5743_v10 = vld [vmem:[#allocation2 + $0x44] ss:$16 sps:$4 sm:$0xff]  }
  0x8f   : > { %1072 = vmatprep.subr.bf16.mxu0 %v5737_v6  ;;  %v5745_v11 = vld [vmem:[#allocation2 + $0x6c] ss:$16 sps:$4 sm:$0xff]   ;;  %v5747_v12 = vld [vmem:[#allocation2 + $0x40] ss:$16 sps:$4 sm:$0xff]   ;;  %v5749_v13 = vld [vmem:[#allocation2 + $0x64] ss:$16 sps:$4 sm:$0xff]  }
  0x90   : > { %v5748_v14 = vld [vmem:[#allocation2 + $0x68] ss:$16 sps:$4 sm:$0xff]   ;;  %v5751_v15 = vld [vmem:[#allocation2 + $0x8c] ss:$16 sps:$4 sm:$0xff]   ;;  %v5753_v16 = vld [vmem:[#allocation2 + $0x60] ss:$16 sps:$4 sm:$0xff]  }
  0x91   : > { %1114 = vmatpush1.bf16.msra.mxu1 %v5736_v5  ;;  %v5755_v17 = vld [vmem:[#allocation2 + $0x84] ss:$16 sps:$4 sm:$0xff]   ;;  %v5754_v18 = vld [vmem:[#allocation2 + $0x88] ss:$16 sps:$4 sm:$0xff]   ;;  %v5757_v19 = vld [vmem:[#allocation2 + $0xac] ss:$16 sps:$4 sm:$0xff]  }
  0x92   : > { %1115 = vmatprep.subr.bf16.mxu1 %v5739_v7  ;;  %1073 = vmatpush1.bf16.msra.mxu0 %v5741_v8  ;;  %v5759_v20 = vld [vmem:[#allocation2 + $0x80] ss:$16 sps:$4 sm:$0xff]   ;;  %v5761_v21 = vld [vmem:[#allocation2 + $0xa4] ss:$16 sps:$4 sm:$0xff]   ;;  %v5760_v22 = vld [vmem:[#allocation2 + $0xa8] ss:$16 sps:$4 sm:$0xff]  }
  0x93   : > { %1074 = vmatprep.subr.bf16.mxu0 %v5743_v10  ;;  %v5763_v23 = vld [vmem:[#allocation2 + $0xcc] ss:$16 sps:$4 sm:$0xff]   ;;  %v5765_v24 = vld [vmem:[#allocation2 + $0xa0] ss:$16 sps:$4 sm:$0xff]   ;;  %v5767_v25 = vld [vmem:[#allocation2 + $0xc4] ss:$16 sps:$4 sm:$0xff]  }
  0x94   : > { %v5766_v26 = vld [vmem:[#allocation2 + $0xc8] ss:$16 sps:$4 sm:$0xff]   ;;  %v5769_v27 = vld [vmem:[#allocation2 + $0xec] ss:$16 sps:$4 sm:$0xff]   ;;  %v5771_v28 = vld [vmem:[#allocation2 + $0xc0] ss:$16 sps:$4 sm:$0xff]  }
  0x95   : > { %1116 = vmatpush1.bf16.msra.mxu1 %v5742_v9  ;;  %v5773_v29 = vld [vmem:[#allocation2 + $0xe4] ss:$16 sps:$4 sm:$0xff]   ;;  %v5772_v30 = vld [vmem:[#allocation2 + $0xe8] ss:$16 sps:$4 sm:$0xff]   ;;  %p436_p4 = scmp.lt.s32.totalorder %s6756_s16, 1  ;;  %v6924_v39 = vshrl.u32 %v715_v34, 7 }
  0x96   : > { %1117 = vmatprep.subr.bf16.mxu1 %v5745_v11  ;;  %1075 = vmatpush1.bf16.msra.mxu0 %v5747_v12  ;;  %v5775_v31 = vld [vmem:[#allocation2 + $0x10c] ss:$16 sps:$4 sm:$0xff]   ;;  %v5777_v32 = vld [vmem:[#allocation2 + $0xe0] ss:$16 sps:$4 sm:$0xff]   ;;  %v5779_v33 = vld [vmem:[#allocation2 + $0x104] ss:$16 sps:$4 sm:$0xff]  }
  0x97   : > { %1076 = vmatprep.subr.bf16.mxu0 %v5749_v13  ;;  %v5778_v35 = vld [vmem:[#allocation2 + $0x108] ss:$16 sps:$4 sm:$0xff]   ;;  %s7274_s16 = smov (!%p436_p4, %s6756_s16), 1  ;;  %v5781_v36 = vld [vmem:[#allocation2 + $0x12c] ss:$16 sps:$4 sm:$0xff]   ;;  %v6932_v44 = vsub.s32 1, %v6924_v39 }
  0x98   : > { %v5783_v37 = vld [vmem:[#allocation2 + $0x100] ss:$16 sps:$4 sm:$0xff]   ;;  %v5785_v38 = vld [vmem:[#allocation2 + $0x124] ss:$16 sps:$4 sm:$0xff]   ;;  %v5784_v40 = vld [vmem:[#allocation2 + $0x128] ss:$16 sps:$4 sm:$0xff]  }
  0x99   : > { %1118 = vmatpush1.bf16.msra.mxu1 %v5748_v14  ;;  %s5072_s17 = sshll.u32 %s7274_s16, 1  ;;  %v5787_v41 = vld [vmem:[#allocation2 + $0x14c] ss:$16 sps:$4 sm:$0xff]   ;;  %s5597_s18 = sshll.u32 %s7274_s16, 4  ;;  %v5789_v42 = vld [vmem:[#allocation2 + $0x120] ss:$16 sps:$4 sm:$0xff]  }
  0x9a   : > { %1119 = vmatprep.subr.bf16.mxu1 %v5751_v15  ;;  %1077 = vmatpush1.bf16.msra.mxu0 %v5753_v16  ;;  %v5791_v43 = vld [vmem:[#allocation2 + $0x144] ss:$16 sps:$4 sm:$0xff]   ;;  %s444_s27 = scalar_lea.vmem %s7248_s1, %s5072_s17  ;;  %v5790_v45 = vld [vmem:[#allocation2 + $0x148] ss:$16 sps:$4 sm:$0xff]   ;;  %s6939_s23 = scalar_lea.vmem %s7247_s0, %s5597_s18  ;;  %v5793_v46 = vld [vmem:[#allocation2 + $0x16c] ss:$16 sps:$4 sm:$0xff]  }
  0x9b   : > { %1078 = vmatprep.subr.bf16.mxu0 %v5755_v17  ;;  %v5795_v47 = vld [vmem:[#allocation2 + $0x140] ss:$16 sps:$4 sm:$0xff]   ;;  %v5797_v48 = vld [vmem:[#allocation2 + $0x164] ss:$16 sps:$4 sm:$0xff]   ;;  %v453_v50 = vld [vmem:[%s6939_s23 + $0x8] sm:$0xff]  ;;  %v6947_v0 = vsub.s32 0, %v6924_v39  ;;  %s449_s20 = scalar_lea.vmem %s7257_s10, %s5597_s18 }
  0x9c   : > { %v451_v49 = vld [vmem:[%s444_s27] sm:$0x3]  ;;  %v5796_v52 = vld [vmem:[#allocation2 + $0x168] ss:$16 sps:$4 sm:$0xff]   ;;  %v5799_v53 = vld [vmem:[#allocation2 + $0x18c] ss:$16 sps:$4 sm:$0xff]  }
  0x9d   : > { %1120 = vmatpush1.bf16.msra.mxu1 %v5754_v18  ;;  %v6943_v51 = vrot.slane %v451_v49, %v6932_v44  ;;  %v5801_v54 = vld [vmem:[#allocation2 + $0x160] ss:$16 sps:$4 sm:$0xff]   ;;  %v5803_v55 = vld [vmem:[#allocation2 + $0x184] ss:$16 sps:$4 sm:$0xff]   ;;  %v5802_v57 = vld [vmem:[#allocation2 + $0x188] ss:$16 sps:$4 sm:$0xff]   ;;  %v6951_v6 = vrot.slane %v451_v49, %v6947_v0 }
  0x9e   : > { %1121 = vmatprep.subr.bf16.mxu1 %v5757_v19  ;;  %1079 = vmatpush1.bf16.msra.mxu0 %v5759_v20  ;;  %v5805_v58 = vld [vmem:[#allocation2 + $0x1ac] ss:$16 sps:$4 sm:$0xff]   ;;  %v5807_v60 = vld [vmem:[#allocation2 + $0x180] ss:$16 sps:$4 sm:$0xff]   ;;  %v5809_v61 = vld [vmem:[#allocation2 + $0x1a4] ss:$16 sps:$4 sm:$0xff]  }
  0x9f   : > { %1080 = vmatprep.subr.bf16.mxu0 %v5761_v21  ;;  %v726_v56 = vadd.f32 %v6943_v51, %v453_v50  ;;  %v5808_v62 = vld [vmem:[#allocation2 + $0x1a8] ss:$16 sps:$4 sm:$0xff]   ;;  %v5811_v63 = vld [vmem:[#allocation2 + $0x1cc] ss:$16 sps:$4 sm:$0xff]   ;;  %v5813_v1 = vld [vmem:[#allocation2 + $0x1a0] ss:$16 sps:$4 sm:$0xff]  }
  0xa0   : > { %v5815_v2 = vld [vmem:[#allocation2 + $0x1c4] ss:$16 sps:$4 sm:$0xff]   ;;  %v5814_v3 = vld [vmem:[#allocation2 + $0x1c8] ss:$16 sps:$4 sm:$0xff]   ;;  %v5817_v5 = vld [vmem:[#allocation2 + $0x1ec] ss:$16 sps:$4 sm:$0xff]  }
  0xa1   : > { %1122 = vmatpush1.bf16.msra.mxu1 %v5760_v22  ;;  %v728_v59 = vpack.c.bf16 %v726_v56, %v726_v56  ;;  %v452_v4 = vld [vmem:[%s6939_s23] sm:$0xff]  ;;  %v5820_v9 = vld [vmem:[#allocation2 + $0x1e8] ss:$16 sps:$4 sm:$0xff]   ;;  %v6693_v13 = vmov 0.0   ;;  %vm6694_vm0 = vmmov 0   ;;  %v6958_v14 = vsub.s32 2, %v6924_v39 }
  0xa2   : > { %1123 = vmatprep.subr.bf16.mxu1 %v5763_v23  ;;  %1081 = vmatpush1.bf16.msra.mxu0 %v5765_v24  ;;  %v5819_v7 = vld [vmem:[#allocation2 + $0x1c0] ss:$16 sps:$4 sm:$0xff]   ;;  %v5821_v8 = vld [vmem:[#allocation2 + $0x1e4] ss:$16 sps:$4 sm:$0xff]   ;;  %v725_v10 = vadd.f32 %v6951_v6, %v452_v4  ;;  %vm1407_vm1 = vcmask 64512   ;;  %vm1423_vm2 = vcmask 1043456  }
  0xa3   : > { %1082 = vmatprep.subr.bf16.mxu0 %v5767_v25  ;;  %1143 = vmatprep.mubr.bf16.mxu1 %v728_v59  ;;  %v5823_v11 = vld [vmem:[#allocation2 + $0x1e0] ss:$16 sps:$4 sm:$0xff]   ;;  %v5829_v34 = vld [vmem:[#allocation4 + $0x14] ss:$8 sps:$4 sm:$0xff]   ;;  %v5850_v50 = vld [vmem:[#allocation4 + $0x84] ss:$8 sps:$4 sm:$0xff]  }
  0xa4   : > { %1102 = vmatprep.mubr.bf16.mxu0 %v728_v59  ;;  %v727_v12 = vpack.c.bf16 %v725_v10, %v725_v10  ;;  %v6963_v15 = vld [vmem:[%s7254_s7] sm:$0xf]  ;;  %v5845_v49 = vld [vmem:[#allocation4 + $0x70] ss:$8 sps:$4 sm:$0xff]   ;;  %v5862_v59 = vld [vmem:[#allocation4 + $0xc4] ss:$8 sps:$4 sm:$0xff]  }
  0xa5   : > { %1124 = vmatpush1.bf16.msra.mxu1 %v5766_v26  ;;  %v741_v16 = vrot.slane %v6963_v15, %v6958_v14  ;;  %v733_v18 = vrot.slane %v6963_v15, %v6947_v0  ;;  %v5854_v56 = vld [vmem:[#allocation4 + $0xa0] ss:$8 sps:$4 sm:$0xff]  }
  0xa6   : > { %1125 = vmatprep.subr.bf16.mxu1 %v5769_v27  ;;  %1083 = vmatpush1.bf16.msra.mxu0 %v5771_v28  ;;  %v6982_v4 = vld [vmem:[%s6939_s23] sm:$0xff] }
  0xa7   : > { %1084 = vmatprep.subr.bf16.mxu0 %v5773_v29 }
  0xa9   : > { %1126 = vmatpush1.bf16.msra.mxu1 %v5772_v30  ;;  %v5824_v30 = vld [vmem:[#allocation4] ss:$8 sps:$4 sm:$0xff]  }
  0xaa   : > { %1127 = vmatprep.subr.bf16.mxu1 %v5775_v31  ;;  %1085 = vmatpush1.bf16.msra.mxu0 %v5777_v32  ;;  %v5826_v31 = vld [vmem:[#allocation4 + $0x4] ss:$8 sps:$4 sm:$0xff]  }
  0xab   : > { %1086 = vmatprep.subr.bf16.mxu0 %v5779_v33  ;;  %v6977_v32 = vld [vmem:[%s6939_s23 + $0x8] sm:$0xff] }
  0xac   : > { %v1153_v33 = vpack.c.bf16 %v6977_v32, %v6977_v32 }
  0xad   : > { %1128 = vmatpush1.bf16.msra.mxu1 %v5778_v35  ;;  %v5827_v35 = vld [vmem:[#allocation4 + $0x10] ss:$8 sps:$4 sm:$0xff]  }
  0xae   : > { %1129 = vmatprep.subr.bf16.mxu1 %v5781_v36  ;;  %1087 = vmatpush1.bf16.msra.mxu0 %v5783_v37  ;;  %v5832_v36 = vld [vmem:[#allocation4 + $0x24] ss:$8 sps:$4 sm:$0xff]   ;;  %v5830_v37 = vld [vmem:[#allocation4 + $0x20] ss:$8 sps:$4 sm:$0xff]  }
  0xaf   : > { %1088 = vmatprep.subr.bf16.mxu0 %v5785_v38  ;;  %v5835_v38 = vld [vmem:[#allocation4 + $0x34] ss:$8 sps:$4 sm:$0xff]  }
  0xb1   : > { %1130 = vmatpush1.bf16.msra.mxu1 %v5784_v40  ;;  %v5833_v40 = vld [vmem:[#allocation4 + $0x30] ss:$8 sps:$4 sm:$0xff]  }
  0xb2   : > { %1131 = vmatprep.subr.bf16.mxu1 %v5787_v41  ;;  %1089 = vmatpush1.bf16.msra.mxu0 %v5789_v42  ;;  %v5838_v41 = vld [vmem:[#allocation4 + $0x44] ss:$8 sps:$4 sm:$0xff]   ;;  %v5836_v42 = vld [vmem:[#allocation4 + $0x40] ss:$8 sps:$4 sm:$0xff]  }
  0xb3   : > { %1090 = vmatprep.subr.bf16.mxu0 %v5791_v43  ;;  %v5841_v43 = vld [vmem:[#allocation4 + $0x54] ss:$8 sps:$4 sm:$0xff]  }
  0xb5   : > { %1132 = vmatpush1.bf16.msra.mxu1 %v5790_v45  ;;  %v5839_v45 = vld [vmem:[#allocation4 + $0x50] ss:$8 sps:$4 sm:$0xff]  }
  0xb6   : > { %1133 = vmatprep.subr.bf16.mxu1 %v5793_v46  ;;  %1091 = vmatpush1.bf16.msra.mxu0 %v5795_v47  ;;  %v5844_v46 = vld [vmem:[#allocation4 + $0x64] ss:$8 sps:$4 sm:$0xff]   ;;  %v5842_v47 = vld [vmem:[#allocation4 + $0x60] ss:$8 sps:$4 sm:$0xff]  }
  0xb7   : > { %1092 = vmatprep.subr.bf16.mxu0 %v5797_v48  ;;  %v5847_v48 = vld [vmem:[#allocation4 + $0x74] ss:$8 sps:$4 sm:$0xff]  }
  0xb9   : > { %1134 = vmatpush1.bf16.msra.mxu1 %v5796_v52  ;;  %v5848_v52 = vld [vmem:[#allocation4 + $0x80] ss:$8 sps:$4 sm:$0xff]  }
  0xba   : > { %1135 = vmatprep.subr.bf16.mxu1 %v5799_v53  ;;  %1093 = vmatpush1.bf16.msra.mxu0 %v5801_v54  ;;  %v5853_v53 = vld [vmem:[#allocation4 + $0x94] ss:$8 sps:$4 sm:$0xff]   ;;  %v5851_v54 = vld [vmem:[#allocation4 + $0x90] ss:$8 sps:$4 sm:$0xff]  }
  0xbb   : > { %1094 = vmatprep.subr.bf16.mxu0 %v5803_v55  ;;  %v5856_v55 = vld [vmem:[#allocation4 + $0xa4] ss:$8 sps:$4 sm:$0xff]  }
  0xbd   : > { %1136 = vmatpush1.bf16.msra.mxu1 %v5802_v57  ;;  %v5859_v57 = vld [vmem:[#allocation4 + $0xb4] ss:$8 sps:$4 sm:$0xff]  }
  0xbe   : > { %1137 = vmatprep.subr.bf16.mxu1 %v5805_v58  ;;  %1095 = vmatpush1.bf16.msra.mxu0 %v5807_v60  ;;  %v5857_v58 = vld [vmem:[#allocation4 + $0xb0] ss:$8 sps:$4 sm:$0xff]   ;;  %v5860_v60 = vld [vmem:[#allocation4 + $0xc0] ss:$8 sps:$4 sm:$0xff]  }
  0xbf   : > { %1096 = vmatprep.subr.bf16.mxu0 %v5809_v61  ;;  %v5865_v61 = vld [vmem:[#allocation4 + $0xd4] ss:$8 sps:$4 sm:$0xff]  }
  0xc1   : > { %1138 = vmatpush1.bf16.msra.mxu1 %v5808_v62  ;;  %v5863_v62 = vld [vmem:[#allocation4 + $0xd0] ss:$8 sps:$4 sm:$0xff]  }
  0xc2   : > { %1139 = vmatprep.subr.bf16.mxu1 %v5811_v63  ;;  %1097 = vmatpush1.bf16.msra.mxu0 %v5813_v1  ;;  %v5868_v63 = vld [vmem:[#allocation4 + $0xe4] ss:$8 sps:$4 sm:$0xff]   ;;  %v5866_v1 = vld [vmem:[#allocation4 + $0xe0] ss:$8 sps:$4 sm:$0xff]  }
  0xc3   : > { %1098 = vmatprep.subr.bf16.mxu0 %v5815_v2  ;;  %v5871_v2 = vld [vmem:[#allocation4 + $0xf4] ss:$8 sps:$4 sm:$0xff]  }
  0xc5   : > { %1140 = vmatpush1.bf16.msra.mxu1 %v5814_v3  ;;  %v5869_v3 = vld [vmem:[#allocation4 + $0xf0] ss:$8 sps:$4 sm:$0xff]  }
  0xc6   : > { %1141 = vmatprep.subr.bf16.mxu1 %v5817_v5  ;;  %1099 = vmatpush1.bf16.msra.mxu0 %v5819_v7  ;;  %v1152_v5 = vpack.c.bf16 %v6982_v4, %v6982_v4 }
  0xc7   : > { %1100 = vmatprep.subr.bf16.mxu0 %v5821_v8 }
  0xc9   : > { %1142 = vmatpush1.bf16.msra.mxu1 %v5820_v9 }
  0xca   : > { %1101 = vmatpush1.bf16.msra.mxu0 %v5823_v11  ;;  %5615 = vmatprep.subr.bf16.mxu1 %v6693_v13 }
  0xcb   : > { %1322 = vmatprep.subr.bf16.mxu0 %v5826_v31 }
  0xcc   : > { %1144 = vmatmul.mubr.bf16.vlgmr.msra.gmra.mrb[0].mxu1 %v727_v12 }
  0xcd   : > { %1103 = vmatmul.mubr.bf16.vlgmr.msra.gmra.mrb[0].mxu0 %v727_v12  ;;  %5617 = vmatprep.mubr.msk.bf16.mxu1 %vm6694_vm0, %v6693_v13 }
  0xce   : > { %1354 = vmatprep.mubr.bf16.mxu0 %v1153_v33  ;;  %1323 = vmatpush1.bf16.msra.mxu0 %v5824_v30  ;;  %v6998_v33 = vsub.s32 3, %v6924_v39 }
  0xcf   : > { %1324 = vmatprep.subr.bf16.mxu0 %v5829_v34 }
  0xd0   : > { %v745_v34 = vrot.slane %v6963_v15, %v6998_v33 }
  0xd2   : > { %1325 = vmatpush1.bf16.msra.mxu0 %v5827_v35  ;;  %v7005_v35 = vld [vmem:[%s7256_s9 + $0x8] sm:$0xff] }
  0xd3   : > { %1326 = vmatprep.subr.bf16.mxu0 %v5832_v36 }
  0xd6   : > { %1327 = vmatpush1.bf16.msra.mxu0 %v5830_v37 }
  0xd7   : > { %1328 = vmatprep.subr.bf16.mxu0 %v5835_v38  ;;  %v1161_v38 = vrot.slane %v7005_v35, %v6947_v0 }
  0xda   : > { %1329 = vmatpush1.bf16.msra.mxu0 %v5833_v40 }
  0xdb   : > { %1330 = vmatprep.subr.bf16.mxu0 %v5838_v41  ;;  %v737_v41 = vrot.slane %v6963_v15, %v6932_v44 }
  0xde   : > { %1331 = vmatpush1.bf16.msra.mxu0 %v5836_v42 }
  0xdf   : > { %1332 = vmatprep.subr.bf16.mxu0 %v5841_v43 }
  0xe2   : > { %1333 = vmatpush1.bf16.msra.mxu0 %v5839_v45 }
  0xe3   : > { %1334 = vmatprep.subr.bf16.mxu0 %v5844_v46 }
  0xe6   : > { %1335 = vmatpush1.bf16.msra.mxu0 %v5842_v47 }
  0xe7   : > { %1336 = vmatprep.subr.bf16.mxu0 %v5847_v48 }
  0xea   : > { %1337 = vmatpush1.bf16.msra.mxu0 %v5845_v49 }
  0xeb   : > { %1338 = vmatprep.subr.bf16.mxu0 %v5850_v50 }
  0xee   : > { %1339 = vmatpush1.bf16.msra.mxu0 %v5848_v52 }
  0xef   : > { %1340 = vmatprep.subr.bf16.mxu0 %v5853_v53 }
  0xf2   : > { %1341 = vmatpush1.bf16.msra.mxu0 %v5851_v54 }
  0xf3   : > { %1342 = vmatprep.subr.bf16.mxu0 %v5856_v55 }
  0xf6   : > { %1343 = vmatpush1.bf16.msra.mxu0 %v5854_v56 }
  0xf7   : > { %1344 = vmatprep.subr.bf16.mxu0 %v5859_v57 }
  0xfa   : > { %1345 = vmatpush1.bf16.msra.mxu0 %v5857_v58 }
  0xfb   : > { %1346 = vmatprep.subr.bf16.mxu0 %v5862_v59 }
  0xfe   : > { %1347 = vmatpush1.bf16.msra.mxu0 %v5860_v60 }
  0xff   : > { %1348 = vmatprep.subr.bf16.mxu0 %v5865_v61 }
 0x102   : > { %1349 = vmatpush1.bf16.msra.mxu0 %v5863_v62  ;;  %v5874_v62 = vld [vmem:[#allocation6 + $0x4] ss:$8 sps:$4 sm:$0xff]  }
 0x103   : > { %1350 = vmatprep.subr.bf16.mxu0 %v5868_v63 }
 0x106   : > { %1351 = vmatpush1.bf16.msra.mxu0 %v5866_v1 }
 0x107   : > { %1352 = vmatprep.subr.bf16.mxu0 %v5871_v2 }
 0x10a   : > { %1353 = vmatpush1.bf16.msra.mxu0 %v5869_v3  ;;  %v5872_v3 = vld [vmem:[#allocation6] ss:$8 sps:$4 sm:$0xff]  }
 0x10d   : > { %1355 = vmatmul.mubr.bf16.vlgmr.msra.gmra.mrb[4].mxu0 %v1152_v5 }
 0x19f   : > { %v1145_v17 = vpop.f32.mrb[0].mxu1 }
 0x1a0   : > { %v1146_v19 = vadd.f32 %v1145_v17, %v741_v16  ;;  %v6969_v20 = vpop.f32.mrb[1].mxu1  ;;  %v1104_v22 = vpop.f32.mrb[0].mxu0 }
 0x1a1   : > { %v1149_v21 = vpop.f32.mrb[2].mxu1  ;;  %v6971_v25 = vpop.f32.mrb[1].mxu0  ;;  %v1105_v26 = vadd.f32 %v1104_v22, %v733_v18  ;;  %v6990_v18 = vld [vmem:[%s7256_s9] sm:$0xff]  ;;  %v1148_v37 = vadd.f32 %v6969_v20, %v745_v34 }
 0x1a2   : > { %v1366_v23 = vpack.c.bf16 %v1146_v19, %v1146_v19  ;;  %v1150_v24 = vpop.f32.mrb[3].mxu1  ;;  %v1108_v27 = vpop.f32.mrb[2].mxu0  ;;  %v1157_v19 = vrot.slane %v6990_v18, %v6947_v0  ;;  %v1107_v46 = vadd.f32 %v6971_v25, %v737_v41  ;;  %v5902_v34 = vld [vmem:[#allocation6 + $0xa0] ss:$8 sps:$4 sm:$0xff]   ;;  %v5913_v41 = vld [vmem:[#allocation6 + $0xd4] ss:$8 sps:$4 sm:$0xff]  }
 0x1a3   : > { %v1109_v28 = vpop.f32.mrb[3].mxu0  ;;  %v1365_v29 = vpack.c.bf16 %v1105_v26, %v1105_v26  ;;  %v1468_v43 = vpack.c.bf16 %v1148_v37, %v1148_v37  ;;  %v5905_v37 = vld [vmem:[#allocation6 + $0xb0] ss:$8 sps:$4 sm:$0xff]  }
 0x1a4   : > { %5616 = vmatpush3.bf16.xpose.msra.mxu1 %v1366_v23  ;;  %v1467_v47 = vpack.c.bf16 %v1107_v46, %v1107_v46  ;;  %v5919_v46 = vld [vmem:[#allocation6 + $0xf4] ss:$8 sps:$4 sm:$0xff]  }
 0x1a5   : > { %5621 = vmatprep.subr.bf16.mxu1 %v6693_v13 }
 0x1ab   : > { %5618 = vmatmul.mubr.bf16.vlgmr.msra.gmra.mrb[4].mxu1 %v1365_v29 }
 0x1ac   : > { %5623 = vmatprep.mubr.msk.bf16.mxu1 %vm6694_vm0, %v6693_v13 }
 0x1e0   : > { %v1356_v21 = vpop.f32.mrb[4].mxu0 }
 0x1e1   : > { %v1357_v22 = vadd.f32 %v1356_v21, %v1157_v19  ;;  %v1358_v23 = vpop.f32.mrb[5].mxu0  ;;  %v5889_v19 = vld [vmem:[#allocation6 + $0x54] ss:$8 sps:$4 sm:$0xff]   ;;  %v5887_v21 = vld [vmem:[#allocation6 + $0x50] ss:$8 sps:$4 sm:$0xff]  }
 0x1e2   : > { %v1360_v24 = vpop.f32.mrb[6].mxu0  ;;  %v1359_v45 = vadd.f32 %v1358_v23, %v1161_v38  ;;  %v5890_v23 = vld [vmem:[#allocation6 + $0x60] ss:$8 sps:$4 sm:$0xff]   ;;  %v5910_v38 = vld [vmem:[#allocation6 + $0xc4] ss:$8 sps:$4 sm:$0xff]  }
 0x1e3   : > { %v1363_v26 = vpack.c.bf16 %v1357_v22, %v1357_v22  ;;  %v1361_v27 = vpop.f32.mrb[7].mxu0  ;;  %v5892_v22 = vld [vmem:[#allocation6 + $0x64] ss:$8 sps:$4 sm:$0xff]   ;;  %v5895_v24 = vld [vmem:[#allocation6 + $0x74] ss:$8 sps:$4 sm:$0xff]  }
 0x1e4   : > { %v1364_v20 = vpack.c.bf16 %v1359_v45, %v1359_v45  ;;  %v5898_v27 = vld [vmem:[#allocation6 + $0x84] ss:$8 sps:$4 sm:$0xff]   ;;  %v5914_v45 = vld [vmem:[#allocation6 + $0xe0] ss:$8 sps:$4 sm:$0xff]  }
 0x1e5   : > { %v1425_v28 = vsel %vm1423_vm2, %v1363_v26, 0  ;;  %v5893_v26 = vld [vmem:[#allocation6 + $0x70] ss:$8 sps:$4 sm:$0xff]  }
 0x1e6   : > { %5622 = vmatpush3.bf16.msra.mxu1 %v1425_v28  ;;  %v1525_v48 = vsel %vm1423_vm2, %v1364_v20, 0  ;;  %v5896_v28 = vld [vmem:[#allocation6 + $0x80] ss:$8 sps:$4 sm:$0xff]   ;;  %v5917_v20 = vld [vmem:[#allocation6 + $0xf0] ss:$8 sps:$4 sm:$0xff]  }
 0x1e7   : > { %5627 = vmatprep.subr.bf16.mxu1 %v6693_v13 }
 0x27e   : > { %v1401_v7 = vpop.f32.mrb[4].mxu1 }
 0x27f   : > { %v5619_v8 = vpop.f32.mrb[5].mxu1  ;;  %v1408_v9 = vsel %vm1407_vm1, %v1401_v7, -inf }
 0x280   : > { %1409 = vmax.xlane.f32.xlu0 %v1408_v9  ;;  %v1404_v10 = vpop.f32.mrb[6].mxu1  ;;  %v5875_v8 = vld [vmem:[#allocation6 + $0x10] ss:$8 sps:$4 sm:$0xff]   ;;  %v5880_v9 = vld [vmem:[#allocation6 + $0x24] ss:$8 sps:$4 sm:$0xff]  }
 0x281   : > { %v5620_v11 = vpop.f32.mrb[7].mxu1  ;;  %v5878_v10 = vld [vmem:[#allocation6 + $0x20] ss:$8 sps:$4 sm:$0xff]  }
 0x282   : > { %v5883_v11 = vld [vmem:[#allocation6 + $0x34] ss:$8 sps:$4 sm:$0xff]  }
 0x30d   : > { %v1410_v12 = vpop.xlane.xlu0 %1409 }
 0x30e   : > { %v1411_v16 = vsub.f32 %v1401_v7, %v1410_v12  ;;  %v5877_v7 = vld [vmem:[#allocation6 + $0x14] ss:$8 sps:$4 sm:$0xff]   ;;  %v5881_v12 = vld [vmem:[#allocation6 + $0x30] ss:$8 sps:$4 sm:$0xff]  }
 0x310   : > { %v1412_v17 = vmul.f32 1.442695, %v1411_v16  ;;  %v5886_v16 = vld [vmem:[#allocation6 + $0x44] ss:$8 sps:$4 sm:$0xff]  }
 0x312   : > { %6496 = vpow2.f32 %v1412_v17  ;;  %v5884_v17 = vld [vmem:[#allocation6 + $0x40] ss:$8 sps:$4 sm:$0xff]  }
 0x31c   : > { %v6497_v29 = vpop.eup %6496 }
 0x31d   : > { %v1414_v30 = vsel %vm1407_vm1, %v6497_v29, 0.0 }
 0x31e   : > { %1415 = vadd.xlane.f32.xlu0 %v1414_v30  ;;  %v5899_v30 = vld [vmem:[#allocation6 + $0x90] ss:$8 sps:$4 sm:$0xff]  }
 0x3ab   : > { %v1416_v31 = vpop.xlane.xlu0 %1415 }
 0x3ac   : > { %6498 = vrcp.f32 %v1416_v31  ;;  %v5904_v31 = vld [vmem:[#allocation6 + $0xa4] ss:$8 sps:$4 sm:$0xff]  }
 0x3b6   : > { %v6499_v36 = vpop.eup %6498 }
 0x3b7   : > { %v1418_v40 = vmul.f32 %v6499_v36, %v6497_v29  ;;  %v5901_v29 = vld [vmem:[#allocation6 + $0x94] ss:$8 sps:$4 sm:$0xff]  }
 0x3b8   : > { %v5907_v36 = vld [vmem:[#allocation6 + $0xb4] ss:$8 sps:$4 sm:$0xff]  }
 0x3b9   : > { %v1419_v42 = vpack.c.bf16 %v1418_v40, %v1418_v40  ;;  %v5908_v40 = vld [vmem:[#allocation6 + $0xc0] ss:$8 sps:$4 sm:$0xff]  }
 0x3bb   : > { %5624 = vmatmul.mubr.msk.bf16.vlgmr.msra.gmra.mrb[8].mxu1 %vm1407_vm1, %v1419_v42  ;;  %v5911_v42 = vld [vmem:[#allocation6 + $0xd0] ss:$8 sps:$4 sm:$0xff]  }
 0x3bc   : > { %5628 = vmatpush3.bf16.xpose.msra.mxu1 %v1468_v43  ;;  %5629 = vmatprep.mubr.msk.bf16.mxu1 %vm6694_vm0, %v6693_v13  ;;  %v5916_v43 = vld [vmem:[#allocation6 + $0xe4] ss:$8 sps:$4 sm:$0xff]  }
 0x3bd   : > { %5633 = vmatprep.subr.bf16.mxu1 %v6693_v13 }
 0x3c3   : > { %5630 = vmatmul.mubr.bf16.vlgmr.msra.gmra.mrb[12].mxu1 %v1467_v47 }
 0x3c4   : > { %5634 = vmatpush3.bf16.msra.mxu1 %v1525_v48  ;;  %5635 = vmatprep.mubr.msk.bf16.mxu1 %vm6694_vm0, %v6693_v13 }
 0x3c5   : > { %1737 = vmatprep.subr.bf16.mxu1 %v5874_v62 }
 0x48e   : > { %v7020_v15 = vpop.f32.mrb[8].mxu1 }
 0x48f   : > { %v5625_v49 = vpop.f32.mrb[9].mxu1 }
 0x490   : > { %v1464_v50 = vpop.f32.mrb[10].mxu1 }
 0x491   : > { %v5626_v52 = vpop.f32.mrb[11].mxu1  ;;  %v1567_v50 = vpack.c.bf16 %v7020_v15, %v7020_v15 }
 0x496   : > { %v1503_v53 = vpop.f32.mrb[12].mxu1 }
 0x497   : > { %v5631_v54 = vpop.f32.mrb[13].mxu1  ;;  %v1509_v25 = vsel %vm1407_vm1, %v1503_v53, -inf }
 0x498   : > { %1510 = vmax.xlane.f32.xlu1 %v1509_v25  ;;  %v1506_v55 = vpop.f32.mrb[14].mxu1  ;;  %v1572_v54 = vrot.slane %v6990_v18, %v6932_v44  ;;  %v1576_v25 = vrot.slane %v7005_v35, %v6932_v44 }
 0x499   : > { %v5632_v56 = vpop.f32.mrb[15].mxu1 }
 0x525   : > { %v1511_v57 = vpop.xlane.xlu1 %1510 }
 0x526   : > { %v1512_v58 = vsub.f32 %v1503_v53, %v1511_v57 }
 0x528   : > { %v1513_v59 = vmul.f32 1.442695, %v1512_v58 }
 0x52a   : > { %6500 = vpow2.f32 %v1513_v59 }
 0x534   : > { %v6501_v60 = vpop.eup %6500 }
 0x535   : > { %v1515_v61 = vsel %vm1407_vm1, %v6501_v60, 0.0 }
 0x536   : > { %1516 = vadd.xlane.f32.xlu1 %v1515_v61 }
 0x5c3   : > { %v1517_v63 = vpop.xlane.xlu1 %1516 }
 0x5c4   : > { %6502 = vrcp.f32 %v1517_v63  ;;  %v5920_v63 = vld [vmem:[#allocation7] ss:$16 sps:$4 sm:$0xff]  }
 0x5ce   : > { %v6503_v1 = vpop.eup %6502 }
 0x5cf   : > { %v1519_v2 = vmul.f32 %v6503_v1, %v6501_v60  ;;  %v5922_v1 = vld [vmem:[#allocation7 + $0x4] ss:$16 sps:$4 sm:$0xff]  }
 0x5d0   : > { %2160 = vmatprep.subr.bf16.mxu0 %v5922_v1  ;;  %v5994_v1 = vld [vmem:[#allocation7 + $0x184] ss:$16 sps:$4 sm:$0xff]  }
 0x5d1   : > { %v1520_v5 = vpack.c.bf16 %v1519_v2, %v1519_v2  ;;  %v5923_v2 = vld [vmem:[#allocation7 + $0x8] ss:$16 sps:$4 sm:$0xff]   ;;  %2161 = vmatpush1.bf16.msra.mxu0 %v5920_v63 }
 0x5d2   : > { %v5989_v63 = vld [vmem:[#allocation7 + $0x168] ss:$16 sps:$4 sm:$0xff]  }
 0x5d3   : > { %5636 = vmatmul.mubr.msk.bf16.vlgmr.msra.gmra.mrb[16].mxu1 %vm1407_vm1, %v1520_v5  ;;  %v5928_v5 = vld [vmem:[#allocation7 + $0x24] ss:$16 sps:$4 sm:$0xff]  }
 0x5d4   : > { %1738 = vmatpush1.bf16.msra.mxu1 %v5872_v3  ;;  %v5925_v3 = vld [vmem:[#allocation7 + $0xc] ss:$16 sps:$4 sm:$0xff]   ;;  %2162 = vmatprep.subr.bf16.mxu0 %v5928_v5  ;;  %v5995_v5 = vld [vmem:[#allocation7 + $0x188] ss:$16 sps:$4 sm:$0xff]  }
 0x5d5   : > { %1739 = vmatprep.subr.bf16.mxu1 %v5877_v7  ;;  %v5931_v7 = vld [vmem:[#allocation7 + $0x2c] ss:$16 sps:$4 sm:$0xff]  }
 0x5d8   : > { %1740 = vmatpush1.bf16.msra.mxu1 %v5875_v8  ;;  %v5926_v8 = vld [vmem:[#allocation7 + $0x20] ss:$16 sps:$4 sm:$0xff]  }
 0x5d9   : > { %1741 = vmatprep.subr.bf16.mxu1 %v5880_v9  ;;  %v5934_v9 = vld [vmem:[#allocation7 + $0x44] ss:$16 sps:$4 sm:$0xff]   ;;  %2163 = vmatpush1.bf16.msra.mxu0 %v5926_v8  ;;  %v6003_v8 = vld [vmem:[#allocation7 + $0x1ac] ss:$16 sps:$4 sm:$0xff]  }
 0x5da   : > { %2164 = vmatprep.subr.bf16.mxu0 %v5934_v9  ;;  %v6001_v9 = vld [vmem:[#allocation7 + $0x1a8] ss:$16 sps:$4 sm:$0xff]  }
 0x5dc   : > { %1742 = vmatpush1.bf16.msra.mxu1 %v5878_v10  ;;  %v5932_v10 = vld [vmem:[#allocation7 + $0x40] ss:$16 sps:$4 sm:$0xff]  }
 0x5dd   : > { %1743 = vmatprep.subr.bf16.mxu1 %v5883_v11  ;;  %v5935_v11 = vld [vmem:[#allocation7 + $0x48] ss:$16 sps:$4 sm:$0xff]   ;;  %2165 = vmatpush1.bf16.msra.mxu0 %v5932_v10  ;;  %v6006_v10 = vld [vmem:[#allocation7 + $0x1c4] ss:$16 sps:$4 sm:$0xff]  }
 0x5e0   : > { %1744 = vmatpush1.bf16.msra.mxu1 %v5881_v12  ;;  %v5940_v12 = vld [vmem:[#allocation7 + $0x64] ss:$16 sps:$4 sm:$0xff]  }
 0x5e1   : > { %1745 = vmatprep.subr.bf16.mxu1 %v5886_v16  ;;  %v5943_v16 = vld [vmem:[#allocation7 + $0x6c] ss:$16 sps:$4 sm:$0xff]   ;;  %2166 = vmatprep.subr.bf16.mxu0 %v5940_v12 }
 0x5e2   : > { %v6009_v12 = vld [vmem:[#allocation7 + $0x1cc] ss:$16 sps:$4 sm:$0xff]  }
 0x5e4   : > { %1746 = vmatpush1.bf16.msra.mxu1 %v5884_v17  ;;  %v5938_v17 = vld [vmem:[#allocation7 + $0x60] ss:$16 sps:$4 sm:$0xff]  }
 0x5e5   : > { %1747 = vmatprep.subr.bf16.mxu1 %v5889_v19  ;;  %v5941_v19 = vld [vmem:[#allocation7 + $0x68] ss:$16 sps:$4 sm:$0xff]   ;;  %2167 = vmatpush1.bf16.msra.mxu0 %v5938_v17  ;;  %v6015_v17 = vld [vmem:[#allocation7 + $0x1ec] ss:$16 sps:$4 sm:$0xff]  }
 0x5e8   : > { %1748 = vmatpush1.bf16.msra.mxu1 %v5887_v21  ;;  %v5946_v21 = vld [vmem:[#allocation7 + $0x84] ss:$16 sps:$4 sm:$0xff]  }
 0x5e9   : > { %1749 = vmatprep.subr.bf16.mxu1 %v5892_v22  ;;  %v5949_v22 = vld [vmem:[#allocation7 + $0x8c] ss:$16 sps:$4 sm:$0xff]   ;;  %2168 = vmatprep.subr.bf16.mxu0 %v5946_v21  ;;  %v6013_v21 = vld [vmem:[#allocation7 + $0x1e8] ss:$16 sps:$4 sm:$0xff]  }
 0x5ec   : > { %1750 = vmatpush1.bf16.msra.mxu1 %v5890_v23  ;;  %v5944_v23 = vld [vmem:[#allocation7 + $0x80] ss:$16 sps:$4 sm:$0xff]  }
 0x5ed   : > { %1751 = vmatprep.subr.bf16.mxu1 %v5895_v24  ;;  %v5947_v24 = vld [vmem:[#allocation7 + $0x88] ss:$16 sps:$4 sm:$0xff]   ;;  %2169 = vmatpush1.bf16.msra.mxu0 %v5944_v23  ;;  %v6021_v23 = vld [vmem:[#allocation9 + $0x104] ss:$8 sps:$4 sm:$0xff]  }
 0x5f0   : > { %1752 = vmatpush1.bf16.msra.mxu1 %v5893_v26  ;;  %v5952_v26 = vld [vmem:[#allocation7 + $0xa4] ss:$16 sps:$4 sm:$0xff]  }
 0x5f1   : > { %1753 = vmatprep.subr.bf16.mxu1 %v5898_v27  ;;  %v5955_v27 = vld [vmem:[#allocation7 + $0xac] ss:$16 sps:$4 sm:$0xff]   ;;  %2170 = vmatprep.subr.bf16.mxu0 %v5952_v26 }
 0x5f4   : > { %1754 = vmatpush1.bf16.msra.mxu1 %v5896_v28  ;;  %v5950_v28 = vld [vmem:[#allocation7 + $0xa0] ss:$16 sps:$4 sm:$0xff]  }
 0x5f5   : > { %1755 = vmatprep.subr.bf16.mxu1 %v5901_v29  ;;  %v5953_v29 = vld [vmem:[#allocation7 + $0xa8] ss:$16 sps:$4 sm:$0xff]   ;;  %2171 = vmatpush1.bf16.msra.mxu0 %v5950_v28  ;;  %v7050_v28 = vsub.s32 4, %v6924_v39 }
 0x5f8   : > { %1756 = vmatpush1.bf16.msra.mxu1 %v5899_v30  ;;  %v5958_v30 = vld [vmem:[#allocation7 + $0xc4] ss:$16 sps:$4 sm:$0xff]  }
 0x5f9   : > { %1757 = vmatprep.subr.bf16.mxu1 %v5904_v31  ;;  %v5961_v31 = vld [vmem:[#allocation7 + $0xcc] ss:$16 sps:$4 sm:$0xff]   ;;  %2172 = vmatprep.subr.bf16.mxu0 %v5958_v30  ;;  %v1800_v30 = vrot.slane %v6990_v18, %v6998_v33 }
 0x5fc   : > { %1758 = vmatpush1.bf16.msra.mxu1 %v5902_v34  ;;  %v5956_v34 = vld [vmem:[#allocation7 + $0xc0] ss:$16 sps:$4 sm:$0xff]  }
 0x5fd   : > { %1759 = vmatprep.subr.bf16.mxu1 %v5907_v36  ;;  %v5959_v36 = vld [vmem:[#allocation7 + $0xc8] ss:$16 sps:$4 sm:$0xff]   ;;  %2173 = vmatpush1.bf16.msra.mxu0 %v5956_v34 }
 0x600   : > { %1760 = vmatpush1.bf16.msra.mxu1 %v5905_v37  ;;  %v5964_v37 = vld [vmem:[#allocation7 + $0xe4] ss:$16 sps:$4 sm:$0xff]  }
 0x601   : > { %1761 = vmatprep.subr.bf16.mxu1 %v5910_v38  ;;  %v5967_v38 = vld [vmem:[#allocation7 + $0xec] ss:$16 sps:$4 sm:$0xff]   ;;  %2174 = vmatprep.subr.bf16.mxu0 %v5964_v37  ;;  %v1814_v37 = vrot.slane %v7005_v35, %v7050_v28 }
 0x604   : > { %1762 = vmatpush1.bf16.msra.mxu1 %v5908_v40  ;;  %v5962_v40 = vld [vmem:[#allocation7 + $0xe0] ss:$16 sps:$4 sm:$0xff]  }
 0x605   : > { %1763 = vmatprep.subr.bf16.mxu1 %v5913_v41  ;;  %v5965_v41 = vld [vmem:[#allocation7 + $0xe8] ss:$16 sps:$4 sm:$0xff]   ;;  %2175 = vmatpush1.bf16.msra.mxu0 %v5962_v40 }
 0x608   : > { %1764 = vmatpush1.bf16.msra.mxu1 %v5911_v42  ;;  %v5970_v42 = vld [vmem:[#allocation7 + $0x104] ss:$16 sps:$4 sm:$0xff]  }
 0x609   : > { %1765 = vmatprep.subr.bf16.mxu1 %v5916_v43  ;;  %v5973_v43 = vld [vmem:[#allocation7 + $0x10c] ss:$16 sps:$4 sm:$0xff]   ;;  %2176 = vmatprep.subr.bf16.mxu0 %v5970_v42 }
 0x60c   : > { %1766 = vmatpush1.bf16.msra.mxu1 %v5914_v45  ;;  %v5968_v45 = vld [vmem:[#allocation7 + $0x100] ss:$16 sps:$4 sm:$0xff]  }
 0x60d   : > { %1767 = vmatprep.subr.bf16.mxu1 %v5919_v46  ;;  %v5971_v46 = vld [vmem:[#allocation7 + $0x108] ss:$16 sps:$4 sm:$0xff]   ;;  %2177 = vmatpush1.bf16.msra.mxu0 %v5968_v45 }
 0x610   : > { %1768 = vmatpush1.bf16.msra.mxu1 %v5917_v20  ;;  %v5976_v20 = vld [vmem:[#allocation7 + $0x124] ss:$16 sps:$4 sm:$0xff]  }
 0x611   : > { %2201 = vmatprep.subr.bf16.mxu1 %v5925_v3  ;;  %2178 = vmatprep.subr.bf16.mxu0 %v5976_v20  ;;  %v5992_v3 = vld [vmem:[#allocation7 + $0x180] ss:$16 sps:$4 sm:$0xff]  }
 0x612   : > { %v6016_v20 = vld [vmem:[#allocation9] ss:$8 sps:$4 sm:$0xff]  }
 0x6a6   : > { %v1561_v47 = vpop.f32.mrb[16].mxu1 }
 0x6a7   : > { %v1568_v48 = vpack.c.bf16 %v1561_v47, %v1561_v47  ;;  %v5637_v49 = vpop.f32.mrb[17].mxu1  ;;  %v5979_v47 = vld [vmem:[#allocation7 + $0x12c] ss:$16 sps:$4 sm:$0xff]  }
 0x6a8   : > { %v1564_v52 = vpop.f32.mrb[18].mxu1  ;;  %v5977_v49 = vld [vmem:[#allocation7 + $0x128] ss:$16 sps:$4 sm:$0xff]  }
 0x6a9   : > { %v5638_v53 = vpop.f32.mrb[19].mxu1  ;;  %1769 = vmatprep.mubr.bf16.mxu1 %v1568_v48  ;;  %v5974_v48 = vld [vmem:[#allocation7 + $0x120] ss:$16 sps:$4 sm:$0xff]  }
 0x6aa   : > { %1770 = vmatmul.mubr.bf16.vlgmr.msra.gmra.mrb[20].mxu1 %v1567_v50  ;;  %2179 = vmatpush1.bf16.msra.mxu0 %v5974_v48  ;;  %v6024_v48 = vld [vmem:[#allocation9 + $0x14] ss:$8 sps:$4 sm:$0xff]  }
 0x6ab   : > { %2202 = vmatpush1.bf16.msra.mxu1 %v5923_v2  ;;  %v5997_v2 = vld [vmem:[#allocation7 + $0x18c] ss:$16 sps:$4 sm:$0xff]  }
 0x6ac   : > { %2203 = vmatprep.subr.bf16.mxu1 %v5931_v7  ;;  %v6000_v7 = vld [vmem:[#allocation7 + $0x1a4] ss:$16 sps:$4 sm:$0xff]  }
 0x77d   : > { %v1771_v55 = vpop.f32.mrb[20].mxu1 }
 0x77e   : > { %v1772_v56 = vadd.f32 %v1771_v55, %v1572_v54  ;;  %v1773_v57 = vpop.f32.mrb[21].mxu1 }
 0x77f   : > { %v1774_v58 = vadd.f32 %v1773_v57, %v1576_v25  ;;  %v1775_v59 = vpop.f32.mrb[22].mxu1  ;;  %v5982_v57 = vld [vmem:[#allocation7 + $0x144] ss:$16 sps:$4 sm:$0xff]  }
 0x780   : > { %v7032_v60 = vadd.f32 %v6982_v4, %v1772_v56  ;;  %v1776_v61 = vpop.f32.mrb[23].mxu1  ;;  %v5929_v4 = vld [vmem:[#allocation7 + $0x28] ss:$16 sps:$4 sm:$0xff]   ;;  %v5980_v59 = vld [vmem:[#allocation7 + $0x140] ss:$16 sps:$4 sm:$0xff]   ;;  %2180 = vmatprep.subr.bf16.mxu0 %v5982_v57 }
 0x781   : > { %v7035_v15 = vadd.f32 %v6977_v32, %v1774_v58  ;;  %v5937_v32 = vld [vmem:[#allocation7 + $0x4c] ss:$16 sps:$4 sm:$0xff]   ;;  %2204 = vmatpush1.bf16.msra.mxu1 %v5929_v4  ;;  %v5983_v61 = vld [vmem:[#allocation7 + $0x148] ss:$16 sps:$4 sm:$0xff]   ;;  %2181 = vmatpush1.bf16.msra.mxu0 %v5980_v59  ;;  %v5998_v4 = vld [vmem:[#allocation7 + $0x1a0] ss:$16 sps:$4 sm:$0xff]  }
 0x782   : > { %2205 = vmatprep.subr.bf16.mxu1 %v5937_v32  ;;  %v5985_v58 = vld [vmem:[#allocation7 + $0x14c] ss:$16 sps:$4 sm:$0xff]   ;;  %v6004_v32 = vld [vmem:[#allocation7 + $0x1c0] ss:$16 sps:$4 sm:$0xff]  }
 0x783   : > { %v1780_v62 = vadd.f32 %v7035_v15, %v7032_v60  ;;  %v6039_v57 = vld [vmem:[#allocation9 + $0x134] ss:$8 sps:$4 sm:$0xff]   ;;  %v6037_v59 = vld [vmem:[#allocation9 + $0x130] ss:$8 sps:$4 sm:$0xff]  }
 0x785   : > { %1781 = vadd.xlane.f32.xlu0 %v1780_v62  ;;  %2206 = vmatpush1.bf16.msra.mxu1 %v5935_v11  ;;  %v5991_v62 = vld [vmem:[#allocation7 + $0x16c] ss:$16 sps:$4 sm:$0xff]   ;;  %v6007_v11 = vld [vmem:[#allocation7 + $0x1c8] ss:$16 sps:$4 sm:$0xff]  }
 0x786   : > { %2207 = vmatprep.subr.bf16.mxu1 %v5943_v16  ;;  %v6012_v16 = vld [vmem:[#allocation7 + $0x1e4] ss:$16 sps:$4 sm:$0xff]  }
 0x789   : > { %2208 = vmatpush1.bf16.msra.mxu1 %v5941_v19  ;;  %v6010_v19 = vld [vmem:[#allocation7 + $0x1e0] ss:$16 sps:$4 sm:$0xff]  }
 0x78a   : > { %2209 = vmatprep.subr.bf16.mxu1 %v5949_v22  ;;  %v6018_v22 = vld [vmem:[#allocation9 + $0x4] ss:$8 sps:$4 sm:$0xff]  }
 0x78d   : > { %2210 = vmatpush1.bf16.msra.mxu1 %v5947_v24 }
 0x78e   : > { %2211 = vmatprep.subr.bf16.mxu1 %v5955_v27 }
 0x791   : > { %2212 = vmatpush1.bf16.msra.mxu1 %v5953_v29  ;;  %v1804_v29 = vrot.slane %v7005_v35, %v6998_v33 }
 0x792   : > { %2213 = vmatprep.subr.bf16.mxu1 %v5961_v31 }
 0x795   : > { %2214 = vmatpush1.bf16.msra.mxu1 %v5959_v36 }
 0x796   : > { %2215 = vmatprep.subr.bf16.mxu1 %v5967_v38  ;;  %v1810_v38 = vrot.slane %v6990_v18, %v7050_v28 }
 0x799   : > { %2216 = vmatpush1.bf16.msra.mxu1 %v5965_v41 }
 0x79a   : > { %2217 = vmatprep.subr.bf16.mxu1 %v5973_v43 }
 0x79d   : > { %2218 = vmatpush1.bf16.msra.mxu1 %v5971_v46 }
 0x79e   : > { %2219 = vmatprep.subr.bf16.mxu1 %v5979_v47  ;;  %v6019_v47 = vld [vmem:[#allocation9 + $0x100] ss:$8 sps:$4 sm:$0xff]  }
 0x7a1   : > { %2220 = vmatpush1.bf16.msra.mxu1 %v5977_v49  ;;  %v6027_v49 = vld [vmem:[#allocation9 + $0x114] ss:$8 sps:$4 sm:$0xff]  }
 0x7a2   : > { %2221 = vmatprep.subr.bf16.mxu1 %v5985_v58  ;;  %v6034_v58 = vld [vmem:[#allocation9 + $0x30] ss:$8 sps:$4 sm:$0xff]  }
 0x7a5   : > { %2222 = vmatpush1.bf16.msra.mxu1 %v5983_v61  ;;  %v6042_v61 = vld [vmem:[#allocation9 + $0x44] ss:$8 sps:$4 sm:$0xff]  }
 0x7a6   : > { %2223 = vmatprep.subr.bf16.mxu1 %v5991_v62  ;;  %v6040_v62 = vld [vmem:[#allocation9 + $0x40] ss:$8 sps:$4 sm:$0xff]  }
 0x7a9   : > { %2224 = vmatpush1.bf16.msra.mxu1 %v5989_v63  ;;  %v6048_v63 = vld [vmem:[#allocation9 + $0x54] ss:$8 sps:$4 sm:$0xff]  }
 0x7aa   : > { %2225 = vmatprep.subr.bf16.mxu1 %v5997_v2  ;;  %v6046_v2 = vld [vmem:[#allocation9 + $0x50] ss:$8 sps:$4 sm:$0xff]  }
 0x7ad   : > { %2226 = vmatpush1.bf16.msra.mxu1 %v5995_v5  ;;  %v6054_v5 = vld [vmem:[#allocation9 + $0x64] ss:$8 sps:$4 sm:$0xff]  }
 0x7ae   : > { %2227 = vmatprep.subr.bf16.mxu1 %v6003_v8  ;;  %v6052_v8 = vld [vmem:[#allocation9 + $0x60] ss:$8 sps:$4 sm:$0xff]  }
 0x7b1   : > { %2228 = vmatpush1.bf16.msra.mxu1 %v6001_v9  ;;  %v6060_v9 = vld [vmem:[#allocation9 + $0x74] ss:$8 sps:$4 sm:$0xff]  }
 0x7b2   : > { %2229 = vmatprep.subr.bf16.mxu1 %v6009_v12  ;;  %v6066_v12 = vld [vmem:[#allocation9 + $0x84] ss:$8 sps:$4 sm:$0xff]  }
 0x7b5   : > { %2230 = vmatpush1.bf16.msra.mxu1 %v6007_v11  ;;  %v6061_v11 = vld [vmem:[#allocation9 + $0x170] ss:$8 sps:$4 sm:$0xff]  }
 0x7b6   : > { %2231 = vmatprep.subr.bf16.mxu1 %v6015_v17  ;;  %v6064_v17 = vld [vmem:[#allocation9 + $0x80] ss:$8 sps:$4 sm:$0xff]  }
 0x7b9   : > { %2232 = vmatpush1.bf16.msra.mxu1 %v6013_v21  ;;  %v6072_v21 = vld [vmem:[#allocation9 + $0x94] ss:$8 sps:$4 sm:$0xff]  }
 0x7ba   : > { %2619 = vmatprep.subr.bf16.mxu1 %v6021_v23  ;;  %v6070_v23 = vld [vmem:[#allocation9 + $0x90] ss:$8 sps:$4 sm:$0xff]  }
 0x812   : > { %v1782_v50 = vpop.xlane.xlu0 %1781 }
 0x813   : > { %v1784_v52 = vmul.f32 0.00390625, %v1782_v50  ;;  %v6022_v50 = vld [vmem:[#allocation9 + $0x10] ss:$8 sps:$4 sm:$0xff]  }
 0x815   : > { %v7040_v53 = vsub.f32 %v7032_v60, %v1784_v52  ;;  %v7043_v54 = vsub.f32 %v7035_v15, %v1784_v52  ;;  %v5988_v60 = vld [vmem:[#allocation7 + $0x164] ss:$16 sps:$4 sm:$0xff]   ;;  %v5986_v15 = vld [vmem:[#allocation7 + $0x160] ss:$16 sps:$4 sm:$0xff]  }
 0x816   : > { %2182 = vmatprep.subr.bf16.mxu0 %v5988_v60  ;;  %v6025_v52 = vld [vmem:[#allocation9 + $0x110] ss:$8 sps:$4 sm:$0xff]   ;;  %v6045_v60 = vld [vmem:[#allocation9 + $0x144] ss:$8 sps:$4 sm:$0xff]  }
 0x817   : > { %v1787_v25 = vmul.f32 %v7040_v53, %v7040_v53  ;;  %v1788_v55 = vmul.f32 %v7043_v54, %v7043_v54  ;;  %2183 = vmatpush1.bf16.msra.mxu0 %v5986_v15  ;;  %v6043_v15 = vld [vmem:[#allocation9 + $0x140] ss:$8 sps:$4 sm:$0xff]  }
 0x818   : > { %2184 = vmatprep.subr.bf16.mxu0 %v5994_v1  ;;  %v6051_v1 = vld [vmem:[#allocation9 + $0x154] ss:$8 sps:$4 sm:$0xff]  }
 0x819   : > { %v1789_v56 = vadd.f32 %v1788_v55, %v1787_v25  ;;  %v6028_v25 = vld [vmem:[#allocation9 + $0x20] ss:$8 sps:$4 sm:$0xff]  }
 0x81a   : > { %v6031_v55 = vld [vmem:[#allocation9 + $0x120] ss:$8 sps:$4 sm:$0xff]  }
 0x81b   : > { %1790 = vadd.xlane.f32.xlu1 %v1789_v56  ;;  %2185 = vmatpush1.bf16.msra.mxu0 %v5992_v3  ;;  %v6036_v56 = vld [vmem:[#allocation9 + $0x34] ss:$8 sps:$4 sm:$0xff]   ;;  %v6049_v3 = vld [vmem:[#allocation9 + $0x150] ss:$8 sps:$4 sm:$0xff]  }
 0x81c   : > { %2186 = vmatprep.subr.bf16.mxu0 %v6000_v7  ;;  %v6057_v7 = vld [vmem:[#allocation9 + $0x164] ss:$8 sps:$4 sm:$0xff]  }
 0x81f   : > { %2187 = vmatpush1.bf16.msra.mxu0 %v5998_v4  ;;  %v6055_v4 = vld [vmem:[#allocation9 + $0x160] ss:$8 sps:$4 sm:$0xff]  }
 0x820   : > { %2188 = vmatprep.subr.bf16.mxu0 %v6006_v10  ;;  %v6058_v10 = vld [vmem:[#allocation9 + $0x70] ss:$8 sps:$4 sm:$0xff]  }
 0x823   : > { %2189 = vmatpush1.bf16.msra.mxu0 %v6004_v32  ;;  %v6063_v32 = vld [vmem:[#allocation9 + $0x174] ss:$8 sps:$4 sm:$0xff]  }
 0x824   : > { %2190 = vmatprep.subr.bf16.mxu0 %v6012_v16  ;;  %v6069_v16 = vld [vmem:[#allocation9 + $0x184] ss:$8 sps:$4 sm:$0xff]  }
 0x827   : > { %2191 = vmatpush1.bf16.msra.mxu0 %v6010_v19  ;;  %v6067_v19 = vld [vmem:[#allocation9 + $0x180] ss:$8 sps:$4 sm:$0xff]  }
 0x828   : > { %2578 = vmatprep.subr.bf16.mxu0 %v6018_v22  ;;  %v6075_v22 = vld [vmem:[#allocation9 + $0x194] ss:$8 sps:$4 sm:$0xff]  }
 0x8a8   : > { %v1791_v24 = vpop.xlane.xlu1 %1790 }
 0x8a9   : > { %v1792_v26 = vmul.f32 0.00390625, %v1791_v24  ;;  %v6073_v24 = vld [vmem:[#allocation9 + $0x190] ss:$8 sps:$4 sm:$0xff]  }
 0x8ab   : > { %v1793_v27 = vadd.f32 1e-05, %v1792_v26  ;;  %v6078_v26 = vld [vmem:[#allocation9 + $0xa4] ss:$8 sps:$4 sm:$0xff]  }
 0x8ad   : > { %6504 = vrsqrt.f32 %v1793_v27  ;;  %v6081_v27 = vld [vmem:[#allocation9 + $0x1a4] ss:$8 sps:$4 sm:$0xff]  }
 0x8b7   : > { %v6505_v31 = vpop.eup %6504 }
 0x8b8   : > { %v1795_v34 = vmul.f32 %v6505_v31, %v7040_v53  ;;  %v1796_v36 = vmul.f32 %v6505_v31, %v7043_v54  ;;  %v6030_v53 = vld [vmem:[#allocation9 + $0x24] ss:$8 sps:$4 sm:$0xff]   ;;  %v6084_v31 = vld [vmem:[#allocation9 + $0xb4] ss:$8 sps:$4 sm:$0xff]  }
 0x8b9   : > { %v6033_v54 = vld [vmem:[#allocation9 + $0x124] ss:$8 sps:$4 sm:$0xff]  }
 0x8ba   : > { %v1806_v40 = vmul.f32 %v1804_v29, %v1796_v36  ;;  %v1805_v41 = vmul.f32 %v1800_v30, %v1795_v34  ;;  %v6076_v29 = vld [vmem:[#allocation9 + $0xa0] ss:$8 sps:$4 sm:$0xff]   ;;  %v6087_v34 = vld [vmem:[#allocation9 + $0x1b4] ss:$8 sps:$4 sm:$0xff]   ;;  %v6082_v36 = vld [vmem:[#allocation9 + $0xb0] ss:$8 sps:$4 sm:$0xff]  }
 0x8bb   : > { %v6079_v30 = vld [vmem:[#allocation9 + $0x1a0] ss:$8 sps:$4 sm:$0xff]  }
 0x8bc   : > { %v7062_v42 = vadd.f32 %v1814_v37, %v1806_v40  ;;  %v7064_v43 = vadd.f32 %v1810_v38, %v1805_v41  ;;  %v6085_v37 = vld [vmem:[#allocation9 + $0x1b0] ss:$8 sps:$4 sm:$0xff]   ;;  %v6090_v38 = vld [vmem:[#allocation9 + $0xc4] ss:$8 sps:$4 sm:$0xff]   ;;  %v6088_v41 = vld [vmem:[#allocation9 + $0xc0] ss:$8 sps:$4 sm:$0xff]  }
 0x8bd   : > { %v6093_v40 = vld [vmem:[#allocation9 + $0x1c4] ss:$8 sps:$4 sm:$0xff]  }
 0x8be   : > { %v1818_v45 = vpack.c.bf16 %v7062_v42, %v7062_v42  ;;  %v1817_v46 = vpack.c.bf16 %v7064_v43, %v7064_v43 }
 0x8c0   : > { %2192 = vmatprep.mubr.bf16.mxu0 %v1818_v45  ;;  %2233 = vmatprep.mubr.bf16.mxu1 %v1818_v45  ;;  %v6091_v45 = vld [vmem:[#allocation9 + $0x1c0] ss:$8 sps:$4 sm:$0xff]  }
 0x8c1   : > { %2193 = vmatmul.mubr.bf16.vlgmr.msra.gmra.mrb[8].mxu0 %v1817_v46  ;;  %2234 = vmatmul.mubr.bf16.vlgmr.msra.gmra.mrb[24].mxu1 %v1817_v46  ;;  %v6096_v46 = vld [vmem:[#allocation9 + $0xd4] ss:$8 sps:$4 sm:$0xff]  }
 0x8c2   : > { %2579 = vmatpush1.bf16.msra.mxu0 %v6016_v20  ;;  %2620 = vmatpush1.bf16.msra.mxu1 %v6019_v47  ;;  %v6099_v20 = vld [vmem:[#allocation9 + $0x1d4] ss:$8 sps:$4 sm:$0xff]   ;;  %v6094_v47 = vld [vmem:[#allocation9 + $0xd0] ss:$8 sps:$4 sm:$0xff]  }
 0x8c3   : > { %2580 = vmatprep.subr.bf16.mxu0 %v6024_v48  ;;  %2621 = vmatprep.subr.bf16.mxu1 %v6027_v49  ;;  %v6097_v48 = vld [vmem:[#allocation9 + $0x1d0] ss:$8 sps:$4 sm:$0xff]   ;;  %v6102_v49 = vld [vmem:[#allocation9 + $0xe4] ss:$8 sps:$4 sm:$0xff]  }
 0x8c6   : > { %2581 = vmatpush1.bf16.msra.mxu0 %v6022_v50  ;;  %2622 = vmatpush1.bf16.msra.mxu1 %v6025_v52  ;;  %v6105_v50 = vld [vmem:[#allocation9 + $0x1e4] ss:$8 sps:$4 sm:$0xff]   ;;  %v6100_v52 = vld [vmem:[#allocation9 + $0xe0] ss:$8 sps:$4 sm:$0xff]  }
 0x8c7   : > { %2582 = vmatprep.subr.bf16.mxu0 %v6030_v53  ;;  %2623 = vmatprep.subr.bf16.mxu1 %v6033_v54  ;;  %v6103_v53 = vld [vmem:[#allocation9 + $0x1e0] ss:$8 sps:$4 sm:$0xff]   ;;  %v6108_v54 = vld [vmem:[#allocation9 + $0xf4] ss:$8 sps:$4 sm:$0xff]  }
 0x8ca   : > { %2583 = vmatpush1.bf16.msra.mxu0 %v6028_v25  ;;  %2624 = vmatpush1.bf16.msra.mxu1 %v6031_v55  ;;  %v6111_v25 = vld [vmem:[#allocation9 + $0x1f4] ss:$8 sps:$4 sm:$0xff]   ;;  %v6106_v55 = vld [vmem:[#allocation9 + $0xf0] ss:$8 sps:$4 sm:$0xff]  }
 0x8cb   : > { %2584 = vmatprep.subr.bf16.mxu0 %v6036_v56  ;;  %2625 = vmatprep.subr.bf16.mxu1 %v6039_v57  ;;  %v6109_v56 = vld [vmem:[#allocation9 + $0x1f0] ss:$8 sps:$4 sm:$0xff]   ;;  %v711_v57 = vld [vmem:[%s7255_s8] sm:$0xf] }
 0x8ce   : > { %2585 = vmatpush1.bf16.msra.mxu0 %v6034_v58  ;;  %2626 = vmatpush1.bf16.msra.mxu1 %v6037_v59  ;;  %v1823_v58 = vrot.slane %v711_v57, %v6947_v0  ;;  %v1831_v59 = vrot.slane %v711_v57, %v6958_v14 }
 0x8cf   : > { %2586 = vmatprep.subr.bf16.mxu0 %v6042_v61  ;;  %2627 = vmatprep.subr.bf16.mxu1 %v6045_v60  ;;  %v1827_v61 = vrot.slane %v711_v57, %v6932_v44  ;;  %v1835_v60 = vrot.slane %v711_v57, %v6998_v33  ;;  %v6135_v57 = vld [vmem:[#allocation2 + $0x26c] ss:$16 sps:$4 sm:$0xff]  }
 0x8d2   : > { %2587 = vmatpush1.bf16.msra.mxu0 %v6040_v62  ;;  %2628 = vmatpush1.bf16.msra.mxu1 %v6043_v15 }
 0x8d3   : > { %2588 = vmatprep.subr.bf16.mxu0 %v6048_v63  ;;  %2629 = vmatprep.subr.bf16.mxu1 %v6051_v1 }
 0x8d6   : > { %2589 = vmatpush1.bf16.msra.mxu0 %v6046_v2  ;;  %2630 = vmatpush1.bf16.msra.mxu1 %v6049_v3 }
 0x8d7   : > { %2590 = vmatprep.subr.bf16.mxu0 %v6054_v5  ;;  %2631 = vmatprep.subr.bf16.mxu1 %v6057_v7 }
 0x8da   : > { %2591 = vmatpush1.bf16.msra.mxu0 %v6052_v8  ;;  %2632 = vmatpush1.bf16.msra.mxu1 %v6055_v4 }
 0x8db   : > { %2592 = vmatprep.subr.bf16.mxu0 %v6060_v9  ;;  %2633 = vmatprep.subr.bf16.mxu1 %v6063_v32 }
 0x8de   : > { %2593 = vmatpush1.bf16.msra.mxu0 %v6058_v10  ;;  %2634 = vmatpush1.bf16.msra.mxu1 %v6061_v11 }
 0x8df   : > { %2594 = vmatprep.subr.bf16.mxu0 %v6066_v12  ;;  %2635 = vmatprep.subr.bf16.mxu1 %v6069_v16 }
 0x8e2   : > { %2595 = vmatpush1.bf16.msra.mxu0 %v6064_v17  ;;  %2636 = vmatpush1.bf16.msra.mxu1 %v6067_v19 }
 0x8e3   : > { %2596 = vmatprep.subr.bf16.mxu0 %v6072_v21  ;;  %2637 = vmatprep.subr.bf16.mxu1 %v6075_v22 }
 0x8e6   : > { %2597 = vmatpush1.bf16.msra.mxu0 %v6070_v23  ;;  %2638 = vmatpush1.bf16.msra.mxu1 %v6073_v24  ;;  %v2253_v23 = vrot.slane %v6990_v18, %v6958_v14  ;;  %v2257_v24 = vrot.slane %v7005_v35, %v6958_v14 }
 0x8e7   : > { %2598 = vmatprep.subr.bf16.mxu0 %v6078_v26  ;;  %2639 = vmatprep.subr.bf16.mxu1 %v6081_v27 }
 0x8ea   : > { %2599 = vmatpush1.bf16.msra.mxu0 %v6076_v29  ;;  %2640 = vmatpush1.bf16.msra.mxu1 %v6079_v30 }
 0x8eb   : > { %2600 = vmatprep.subr.bf16.mxu0 %v6084_v31  ;;  %2641 = vmatprep.subr.bf16.mxu1 %v6087_v34 }
 0x8ee   : > { %2601 = vmatpush1.bf16.msra.mxu0 %v6082_v36  ;;  %2642 = vmatpush1.bf16.msra.mxu1 %v6085_v37 }
 0x8ef   : > { %2602 = vmatprep.subr.bf16.mxu0 %v6090_v38  ;;  %2643 = vmatprep.subr.bf16.mxu1 %v6093_v40 }
 0x8f2   : > { %2603 = vmatpush1.bf16.msra.mxu0 %v6088_v41  ;;  %2644 = vmatpush1.bf16.msra.mxu1 %v6091_v45 }
 0x8f3   : > { %2604 = vmatprep.subr.bf16.mxu0 %v6096_v46  ;;  %2645 = vmatprep.subr.bf16.mxu1 %v6099_v20  ;;  %v6112_v20 = vld [vmem:[#allocation2 + $0x200] ss:$16 sps:$4 sm:$0xff]  }
 0x8f6   : > { %2605 = vmatpush1.bf16.msra.mxu0 %v6094_v47  ;;  %2646 = vmatpush1.bf16.msra.mxu1 %v6097_v48  ;;  %v6114_v47 = vld [vmem:[#allocation2 + $0x204] ss:$16 sps:$4 sm:$0xff]   ;;  %v6115_v48 = vld [vmem:[#allocation2 + $0x208] ss:$16 sps:$4 sm:$0xff]  }
 0x8f7   : > { %2606 = vmatprep.subr.bf16.mxu0 %v6102_v49  ;;  %2647 = vmatprep.subr.bf16.mxu1 %v6105_v50  ;;  %v6117_v49 = vld [vmem:[#allocation2 + $0x20c] ss:$16 sps:$4 sm:$0xff]   ;;  %v6120_v50 = vld [vmem:[#allocation2 + $0x224] ss:$16 sps:$4 sm:$0xff]  }
 0x8fa   : > { %2607 = vmatpush1.bf16.msra.mxu0 %v6100_v52  ;;  %2648 = vmatpush1.bf16.msra.mxu1 %v6103_v53  ;;  %v6123_v52 = vld [vmem:[#allocation2 + $0x22c] ss:$16 sps:$4 sm:$0xff]   ;;  %v6118_v53 = vld [vmem:[#allocation2 + $0x220] ss:$16 sps:$4 sm:$0xff]  }
 0x8fb   : > { %2608 = vmatprep.subr.bf16.mxu0 %v6108_v54  ;;  %2649 = vmatprep.subr.bf16.mxu1 %v6111_v25  ;;  %v6126_v54 = vld [vmem:[#allocation2 + $0x244] ss:$16 sps:$4 sm:$0xff]   ;;  %v6124_v25 = vld [vmem:[#allocation2 + $0x240] ss:$16 sps:$4 sm:$0xff]  }
 0x8fe   : > { %2609 = vmatpush1.bf16.msra.mxu0 %v6106_v55  ;;  %2650 = vmatpush1.bf16.msra.mxu1 %v6109_v56  ;;  %v6127_v55 = vld [vmem:[#allocation2 + $0x248] ss:$16 sps:$4 sm:$0xff]   ;;  %v6132_v56 = vld [vmem:[#allocation2 + $0x264] ss:$16 sps:$4 sm:$0xff]  }
 0x8ff   : > { %3311 = vmatprep.subr.bf16.mxu0 %v6114_v47  ;;  %3352 = vmatprep.subr.bf16.mxu1 %v6117_v49  ;;  %v6184_v47 = vld [vmem:[#allocation2 + $0x380] ss:$16 sps:$4 sm:$0xff]   ;;  %v6187_v49 = vld [vmem:[#allocation2 + $0x388] ss:$16 sps:$4 sm:$0xff]  }
 0x994   : > { %v2194_v62 = vpop.f32.mrb[8].mxu0  ;;  %v2235_v15 = vpop.f32.mrb[24].mxu1 }
 0x995   : > { %v2195_v63 = vadd.f32 %v2194_v62, %v1823_v58  ;;  %v2236_v1 = vadd.f32 %v2235_v15, %v1831_v59  ;;  %v2196_v2 = vpop.f32.mrb[9].mxu0  ;;  %v2237_v3 = vpop.f32.mrb[25].mxu1  ;;  %v6130_v58 = vld [vmem:[#allocation2 + $0x260] ss:$16 sps:$4 sm:$0xff]   ;;  %v6133_v59 = vld [vmem:[#allocation2 + $0x268] ss:$16 sps:$4 sm:$0xff]  }
 0x996   : > { %v2197_v5 = vadd.f32 %v2196_v2, %v1827_v61  ;;  %v2238_v7 = vadd.f32 %v2237_v3, %v1835_v60  ;;  %v2198_v8 = vpop.f32.mrb[10].mxu0  ;;  %v2239_v4 = vpop.f32.mrb[26].mxu1  ;;  %v6138_v61 = vld [vmem:[#allocation2 + $0x284] ss:$16 sps:$4 sm:$0xff]   ;;  %v6141_v60 = vld [vmem:[#allocation2 + $0x28c] ss:$16 sps:$4 sm:$0xff]  }
 0x997   : > { %v2242_v9 = vmax.f32 %v2195_v63, 0.0  ;;  %v2244_v32 = vmax.f32 %v2236_v1, 0.0  ;;  %v2199_v10 = vpop.f32.mrb[11].mxu0  ;;  %v2240_v11 = vpop.f32.mrb[27].mxu1  ;;  %v6136_v62 = vld [vmem:[#allocation2 + $0x280] ss:$16 sps:$4 sm:$0xff]  }
 0x998   : > { %v2243_v12 = vmax.f32 %v2197_v5, 0.0  ;;  %v2245_v16 = vmax.f32 %v2238_v7, 0.0  ;;  %v6139_v15 = vld [vmem:[#allocation2 + $0x288] ss:$16 sps:$4 sm:$0xff]   ;;  %v6144_v63 = vld [vmem:[#allocation2 + $0x2a4] ss:$16 sps:$4 sm:$0xff]  }
 0x999   : > { %v2246_v21 = vpack.c.bf16 %v2242_v9, %v2242_v9  ;;  %v2248_v22 = vpack.c.bf16 %v2244_v32, %v2244_v32  ;;  %v6147_v1 = vld [vmem:[#allocation2 + $0x2ac] ss:$16 sps:$4 sm:$0xff]   ;;  %v6142_v2 = vld [vmem:[#allocation2 + $0x2a0] ss:$16 sps:$4 sm:$0xff]   ;;  %v6145_v3 = vld [vmem:[#allocation2 + $0x2a8] ss:$16 sps:$4 sm:$0xff]  }
 0x99a   : > { %v2247_v17 = vpack.c.bf16 %v2243_v12, %v2243_v12  ;;  %v2249_v19 = vpack.c.bf16 %v2245_v16, %v2245_v16  ;;  %v6150_v5 = vld [vmem:[#allocation2 + $0x2c4] ss:$16 sps:$4 sm:$0xff]   ;;  %v6153_v7 = vld [vmem:[#allocation2 + $0x2cc] ss:$16 sps:$4 sm:$0xff]   ;;  %v6148_v8 = vld [vmem:[#allocation2 + $0x2c0] ss:$16 sps:$4 sm:$0xff]  }
 0x99b   : > { %v6151_v4 = vld [vmem:[#allocation2 + $0x2c8] ss:$16 sps:$4 sm:$0xff]   ;;  %v6156_v9 = vld [vmem:[#allocation2 + $0x2e4] ss:$16 sps:$4 sm:$0xff]   ;;  %v6159_v32 = vld [vmem:[#allocation2 + $0x2ec] ss:$16 sps:$4 sm:$0xff]  }
 0x99c   : > { %2610 = vmatprep.mubr.bf16.mxu0 %v2247_v17  ;;  %2651 = vmatprep.mubr.bf16.mxu1 %v2249_v19  ;;  %v6154_v10 = vld [vmem:[#allocation2 + $0x2e0] ss:$16 sps:$4 sm:$0xff]   ;;  %v6157_v11 = vld [vmem:[#allocation2 + $0x2e8] ss:$16 sps:$4 sm:$0xff]   ;;  %v6162_v12 = vld [vmem:[#allocation2 + $0x304] ss:$16 sps:$4 sm:$0xff]  }
 0x99d   : > { %2611 = vmatmul.mubr.bf16.vlgmr.msra.gmra.mrb[12].mxu0 %v2246_v21  ;;  %2652 = vmatmul.mubr.bf16.vlgmr.msra.gmra.mrb[28].mxu1 %v2248_v22  ;;  %v6165_v16 = vld [vmem:[#allocation2 + $0x30c] ss:$16 sps:$4 sm:$0xff]   ;;  %v6160_v17 = vld [vmem:[#allocation2 + $0x300] ss:$16 sps:$4 sm:$0xff]   ;;  %v6163_v19 = vld [vmem:[#allocation2 + $0x308] ss:$16 sps:$4 sm:$0xff]  }
 0x99e   : > { %3312 = vmatpush1.bf16.msra.mxu0 %v6112_v20  ;;  %3353 = vmatpush1.bf16.msra.mxu1 %v6115_v48  ;;  %v6168_v21 = vld [vmem:[#allocation2 + $0x324] ss:$16 sps:$4 sm:$0xff]   ;;  %v6171_v22 = vld [vmem:[#allocation2 + $0x32c] ss:$16 sps:$4 sm:$0xff]  }
 0x99f   : > { %3313 = vmatprep.subr.bf16.mxu0 %v6120_v50  ;;  %3354 = vmatprep.subr.bf16.mxu1 %v6123_v52  ;;  %v6186_v20 = vld [vmem:[#allocation2 + $0x384] ss:$16 sps:$4 sm:$0xff]   ;;  %v6189_v48 = vld [vmem:[#allocation2 + $0x38c] ss:$16 sps:$4 sm:$0xff]   ;;  %v6190_v52 = vld [vmem:[#allocation2 + $0x3a0] ss:$16 sps:$4 sm:$0xff]  }
 0x9a0   : > { %v6192_v50 = vld [vmem:[#allocation2 + $0x3a4] ss:$16 sps:$4 sm:$0xff]  }
 0x9a2   : > { %3314 = vmatpush1.bf16.msra.mxu0 %v6118_v53  ;;  %v6195_v53 = vld [vmem:[#allocation2 + $0x3ac] ss:$16 sps:$4 sm:$0xff]  }
 0x9a3   : > { %3315 = vmatprep.subr.bf16.mxu0 %v6126_v54  ;;  %v6196_v54 = vld [vmem:[#allocation2 + $0x3c0] ss:$16 sps:$4 sm:$0xff]  }
 0x9a6   : > { %3316 = vmatpush1.bf16.msra.mxu0 %v6124_v25  ;;  %v6199_v25 = vld [vmem:[#allocation2 + $0x3c8] ss:$16 sps:$4 sm:$0xff]  }
 0x9a7   : > { %3317 = vmatprep.subr.bf16.mxu0 %v6132_v56  ;;  %v6204_v56 = vld [vmem:[#allocation2 + $0x3e4] ss:$16 sps:$4 sm:$0xff]  }
 0x9aa   : > { %3318 = vmatpush1.bf16.msra.mxu0 %v6130_v58  ;;  %v6202_v58 = vld [vmem:[#allocation2 + $0x3e0] ss:$16 sps:$4 sm:$0xff]  }
 0x9ab   : > { %3319 = vmatprep.subr.bf16.mxu0 %v6138_v61  ;;  %v6210_v61 = vld [vmem:[#allocation4 + $0x104] ss:$8 sps:$4 sm:$0xff]  }
 0x9ae   : > { %3320 = vmatpush1.bf16.msra.mxu0 %v6136_v62 }
 0x9af   : > { %3321 = vmatprep.subr.bf16.mxu0 %v6144_v63  ;;  %v7101_v63 = vsub.s32 5, %v6924_v39 }
 0x9b2   : > { %3322 = vmatpush1.bf16.msra.mxu0 %v6142_v2  ;;  %v6522_v2 = vld [vmem:[%s7256_s9 + $0x8] sm:$0xff] }
 0x9b3   : > { %3323 = vmatprep.subr.bf16.mxu0 %v6150_v5  ;;  %v6523_v5 = vld [vmem:[%s7256_s9] sm:$0xff] }
 0x9b6   : > { %3324 = vmatpush1.bf16.msra.mxu0 %v6148_v8 }
 0x9b7   : > { %3325 = vmatprep.subr.bf16.mxu0 %v6156_v9 }
 0x9ba   : > { %3326 = vmatpush1.bf16.msra.mxu0 %v6154_v10 }
 0x9bb   : > { %3327 = vmatprep.subr.bf16.mxu0 %v6162_v12 }
 0x9be   : > { %3328 = vmatpush1.bf16.msra.mxu0 %v6160_v17 }
 0x9bf   : > { %3329 = vmatprep.subr.bf16.mxu0 %v6168_v21 }
 0xa70   : > { %v2612_v26 = vpop.f32.mrb[12].mxu0  ;;  %v2653_v27 = vpop.f32.mrb[28].mxu1 }
 0xa71   : > { %v2613_v29 = vadd.f32 %v2612_v26, %v2253_v23  ;;  %v2614_v30 = vpop.f32.mrb[13].mxu0  ;;  %v2655_v31 = vpop.f32.mrb[29].mxu1  ;;  %v6166_v23 = vld [vmem:[#allocation2 + $0x320] ss:$16 sps:$4 sm:$0xff]  }
 0xa72   : > { %v2615_v34 = vadd.f32 %v2614_v30, %v2257_v24  ;;  %v2616_v36 = vpop.f32.mrb[14].mxu0  ;;  %v2657_v37 = vpop.f32.mrb[30].mxu1  ;;  %v6169_v24 = vld [vmem:[#allocation2 + $0x328] ss:$16 sps:$4 sm:$0xff]   ;;  %3330 = vmatpush1.bf16.msra.mxu0 %v6166_v23 }
 0xa73   : > { %v2654_v38 = vadd.f32 %v2653_v27, %v2613_v29  ;;  %v2617_v40 = vpop.f32.mrb[15].mxu0  ;;  %v2658_v41 = vpop.f32.mrb[31].mxu1  ;;  %v6174_v37 = vld [vmem:[#allocation2 + $0x344] ss:$16 sps:$4 sm:$0xff]  }
 0xa74   : > { %v2656_v45 = vadd.f32 %v2655_v31, %v2615_v34  ;;  %v6177_v40 = vld [vmem:[#allocation2 + $0x34c] ss:$16 sps:$4 sm:$0xff]   ;;  %3331 = vmatprep.subr.bf16.mxu0 %v6174_v37  ;;  %v6175_v41 = vld [vmem:[#allocation2 + $0x348] ss:$16 sps:$4 sm:$0xff]  }
 0xa75   : > { %v7082_v46 = vadd.f32 %v2654_v38, %v7064_v43  ;;  %v6121_v43 = vld [vmem:[#allocation2 + $0x228] ss:$16 sps:$4 sm:$0xff]   ;;  %v6172_v38 = vld [vmem:[#allocation2 + $0x340] ss:$16 sps:$4 sm:$0xff]  }
 0xa76   : > { %v7085_v18 = vadd.f32 %v2656_v45, %v7062_v42  ;;  %v6129_v42 = vld [vmem:[#allocation2 + $0x24c] ss:$16 sps:$4 sm:$0xff]   ;;  %3355 = vmatpush1.bf16.msra.mxu1 %v6121_v43  ;;  %3332 = vmatpush1.bf16.msra.mxu0 %v6172_v38  ;;  %v6180_v45 = vld [vmem:[#allocation2 + $0x364] ss:$16 sps:$4 sm:$0xff]   ;;  %v6193_v43 = vld [vmem:[#allocation2 + $0x3a8] ss:$16 sps:$4 sm:$0xff]  }
 0xa77   : > { %3356 = vmatprep.subr.bf16.mxu1 %v6129_v42  ;;  %3333 = vmatprep.subr.bf16.mxu0 %v6180_v45  ;;  %v6198_v42 = vld [vmem:[#allocation2 + $0x3c4] ss:$16 sps:$4 sm:$0xff]   ;;  %v6223_v37 = vld [vmem:[#allocation4 + $0x150] ss:$8 sps:$4 sm:$0xff]  }
 0xa78   : > { %v2662_v35 = vadd.f32 %v7085_v18, %v7082_v46  ;;  %v6228_v38 = vld [vmem:[#allocation4 + $0x164] ss:$8 sps:$4 sm:$0xff]   ;;  %v6229_v45 = vld [vmem:[#allocation4 + $0x170] ss:$8 sps:$4 sm:$0xff]  }
 0xa7a   : > { %2663 = vadd.xlane.f32.xlu0 %v2662_v35  ;;  %3357 = vmatpush1.bf16.msra.mxu1 %v6127_v55  ;;  %v6181_v35 = vld [vmem:[#allocation2 + $0x368] ss:$16 sps:$4 sm:$0xff]   ;;  %v6201_v55 = vld [vmem:[#allocation2 + $0x3cc] ss:$16 sps:$4 sm:$0xff]  }
 0xa7b   : > { %3358 = vmatprep.subr.bf16.mxu1 %v6135_v57  ;;  %v6207_v57 = vld [vmem:[#allocation2 + $0x3ec] ss:$16 sps:$4 sm:$0xff]  }
 0xa7e   : > { %3359 = vmatpush1.bf16.msra.mxu1 %v6133_v59  ;;  %v6205_v59 = vld [vmem:[#allocation2 + $0x3e8] ss:$16 sps:$4 sm:$0xff]  }
 0xa7f   : > { %3360 = vmatprep.subr.bf16.mxu1 %v6141_v60 }
 0xa82   : > { %3361 = vmatpush1.bf16.msra.mxu1 %v6139_v15 }
 0xa83   : > { %3362 = vmatprep.subr.bf16.mxu1 %v6147_v1  ;;  %v7104_v1 = vsub.s32 6, %v6924_v39 }
 0xa85   : > { %v2695_v39 = vrot.slane %v6522_v2, %v7104_v1 }
 0xa86   : > { %3363 = vmatpush1.bf16.msra.mxu1 %v6145_v3  ;;  %v2685_v3 = vrot.slane %v6522_v2, %v7101_v63 }
 0xa87   : > { %3364 = vmatprep.subr.bf16.mxu1 %v6153_v7  ;;  %v2681_v7 = vrot.slane %v6523_v5, %v7101_v63 }
 0xa8a   : > { %3365 = vmatpush1.bf16.msra.mxu1 %v6151_v4 }
 0xa8b   : > { %3366 = vmatprep.subr.bf16.mxu1 %v6159_v32  ;;  %v2691_v32 = vrot.slane %v6523_v5, %v7104_v1 }
 0xa8e   : > { %3367 = vmatpush1.bf16.msra.mxu1 %v6157_v11 }
 0xa8f   : > { %3368 = vmatprep.subr.bf16.mxu1 %v6165_v16 }
 0xa92   : > { %3369 = vmatpush1.bf16.msra.mxu1 %v6163_v19 }
 0xa93   : > { %3370 = vmatprep.subr.bf16.mxu1 %v6171_v22  ;;  %v6208_v22 = vld [vmem:[#allocation4 + $0x100] ss:$8 sps:$4 sm:$0xff]  }
 0xa96   : > { %3371 = vmatpush1.bf16.msra.mxu1 %v6169_v24  ;;  %v6213_v24 = vld [vmem:[#allocation4 + $0x114] ss:$8 sps:$4 sm:$0xff]  }
 0xa97   : > { %3372 = vmatprep.subr.bf16.mxu1 %v6177_v40  ;;  %v6226_v40 = vld [vmem:[#allocation4 + $0x160] ss:$8 sps:$4 sm:$0xff]  }
 0xa9a   : > { %3373 = vmatpush1.bf16.msra.mxu1 %v6175_v41  ;;  %v6231_v41 = vld [vmem:[#allocation4 + $0x174] ss:$8 sps:$4 sm:$0xff]  }
 0xb07   : > { %v2664_v26 = vpop.xlane.xlu0 %2663 }
 0xb08   : > { %v2665_v27 = vmul.f32 0.00390625, %v2664_v26 }
 0xb0a   : > { %v7090_v29 = vsub.f32 %v7082_v46, %v2665_v27  ;;  %v7093_v30 = vsub.f32 %v7085_v18, %v2665_v27  ;;  %v6178_v46 = vld [vmem:[#allocation2 + $0x360] ss:$16 sps:$4 sm:$0xff]   ;;  %v6183_v18 = vld [vmem:[#allocation2 + $0x36c] ss:$16 sps:$4 sm:$0xff]  }
 0xb0b   : > { %3334 = vmatpush1.bf16.msra.mxu0 %v6178_v46  ;;  %3374 = vmatprep.subr.bf16.mxu1 %v6183_v18  ;;  %v6211_v27 = vld [vmem:[#allocation4 + $0x110] ss:$8 sps:$4 sm:$0xff]   ;;  %v6234_v46 = vld [vmem:[#allocation4 + $0x184] ss:$8 sps:$4 sm:$0xff]   ;;  %v6232_v18 = vld [vmem:[#allocation4 + $0x180] ss:$8 sps:$4 sm:$0xff]  }
 0xb0c   : > { %v2668_v31 = vmul.f32 %v7090_v29, %v7090_v29  ;;  %v2669_v34 = vmul.f32 %v7093_v30, %v7093_v30  ;;  %3375 = vmatpush1.bf16.msra.mxu1 %v6181_v35  ;;  %3335 = vmatprep.subr.bf16.mxu0 %v6186_v20  ;;  %v6237_v35 = vld [vmem:[#allocation4 + $0x194] ss:$8 sps:$4 sm:$0xff]   ;;  %v6235_v20 = vld [vmem:[#allocation4 + $0x190] ss:$8 sps:$4 sm:$0xff]  }
 0xb0d   : > { %3376 = vmatprep.subr.bf16.mxu1 %v6189_v48  ;;  %v6238_v48 = vld [vmem:[#allocation4 + $0x1a0] ss:$8 sps:$4 sm:$0xff]  }
 0xb0e   : > { %v2670_v36 = vadd.f32 %v2669_v34, %v2668_v31  ;;  %v6222_v31 = vld [vmem:[#allocation4 + $0x144] ss:$8 sps:$4 sm:$0xff]   ;;  %v6220_v34 = vld [vmem:[#allocation4 + $0x140] ss:$8 sps:$4 sm:$0xff]  }
 0xb0f   : > { %3336 = vmatpush1.bf16.msra.mxu0 %v6184_v47  ;;  %v6240_v47 = vld [vmem:[#allocation4 + $0x1a4] ss:$8 sps:$4 sm:$0xff]  }
 0xb10   : > { %2671 = vadd.xlane.f32.xlu1 %v2670_v36  ;;  %3377 = vmatpush1.bf16.msra.mxu1 %v6187_v49  ;;  %v6225_v36 = vld [vmem:[#allocation4 + $0x154] ss:$8 sps:$4 sm:$0xff]  }
 0xb11   : > { %3337 = vmatprep.subr.bf16.mxu0 %v6192_v50  ;;  %3378 = vmatprep.subr.bf16.mxu1 %v6195_v53  ;;  %v6243_v49 = vld [vmem:[#allocation4 + $0x1b4] ss:$8 sps:$4 sm:$0xff]   ;;  %v6241_v50 = vld [vmem:[#allocation4 + $0x1b0] ss:$8 sps:$4 sm:$0xff]   ;;  %v6244_v53 = vld [vmem:[#allocation4 + $0x1c0] ss:$8 sps:$4 sm:$0xff]  }
 0xb13   : > { %3338 = vmatpush1.bf16.msra.mxu0 %v6190_v52  ;;  %v6246_v52 = vld [vmem:[#allocation4 + $0x1c4] ss:$8 sps:$4 sm:$0xff]  }
 0xb14   : > { %3379 = vmatpush1.bf16.msra.mxu1 %v6193_v43  ;;  %3339 = vmatprep.subr.bf16.mxu0 %v6198_v42  ;;  %v6249_v43 = vld [vmem:[#allocation4 + $0x1d4] ss:$8 sps:$4 sm:$0xff]   ;;  %v6252_v42 = vld [vmem:[#allocation4 + $0x1e4] ss:$8 sps:$4 sm:$0xff]  }
 0xb15   : > { %3380 = vmatprep.subr.bf16.mxu1 %v6201_v55  ;;  %v6255_v55 = vld [vmem:[#allocation4 + $0x1f4] ss:$8 sps:$4 sm:$0xff]  }
 0xb17   : > { %3340 = vmatpush1.bf16.msra.mxu0 %v6196_v54  ;;  %v6247_v54 = vld [vmem:[#allocation4 + $0x1d0] ss:$8 sps:$4 sm:$0xff]  }
 0xb18   : > { %3381 = vmatpush1.bf16.msra.mxu1 %v6199_v25  ;;  %3341 = vmatprep.subr.bf16.mxu0 %v6204_v56  ;;  %v6250_v25 = vld [vmem:[#allocation4 + $0x1e0] ss:$8 sps:$4 sm:$0xff]   ;;  %v6253_v56 = vld [vmem:[#allocation4 + $0x1f0] ss:$8 sps:$4 sm:$0xff]  }
 0xb19   : > { %3382 = vmatprep.subr.bf16.mxu1 %v6207_v57 }
 0xb1b   : > { %3342 = vmatpush1.bf16.msra.mxu0 %v6202_v58  ;;  %v5333_v58 = vld [vmem:[%s7254_s7 + $0x4] sm:$0xf] }
 0xb1c   : > { %3383 = vmatpush1.bf16.msra.mxu1 %v6205_v59  ;;  %3563 = vmatprep.subr.bf16.mxu0 %v6210_v61  ;;  %v2982_v59 = vrot.slane %v5333_v58, %v6958_v14 }
 0xb1d   : > { %5639 = vmatprep.subr.bf16.mxu1 %v6693_v13 }
 0xb9d   : > { %v2672_v60 = vpop.xlane.xlu1 %2671 }
 0xb9e   : > { %v2673_v62 = vmul.f32 0.00390625, %v2672_v60 }
 0xba0   : > { %v2674_v15 = vadd.f32 1e-05, %v2673_v62 }
 0xba2   : > { %6506 = vrsqrt.f32 %v2674_v15 }
 0xbac   : > { %v6507_v8 = vpop.eup %6506 }
 0xbad   : > { %v2676_v4 = vmul.f32 %v6507_v8, %v7090_v29  ;;  %v2677_v9 = vmul.f32 %v6507_v8, %v7093_v30  ;;  %v6216_v29 = vld [vmem:[#allocation4 + $0x124] ss:$8 sps:$4 sm:$0xff]   ;;  %v6217_v30 = vld [vmem:[#allocation4 + $0x130] ss:$8 sps:$4 sm:$0xff]  }
 0xbaf   : > { %v2687_v10 = vmul.f32 %v2685_v3, %v2677_v9  ;;  %v2686_v11 = vmul.f32 %v2681_v7, %v2676_v4  ;;  %v2974_v3 = vrot.slane %v5333_v58, %v6947_v0 }
 0xbb1   : > { %v7118_v12 = vadd.f32 %v2695_v39, %v2687_v10  ;;  %v7120_v16 = vadd.f32 %v2691_v32, %v2686_v11  ;;  %v7143_v10 = vld [vmem:[%s7256_s9 + $0x10] sm:$0xff] }
 0xbb2   : > { %v3398_v11 = vrot.slane %v7143_v10, %v6947_v0 }
 0xbb3   : > { %v2967_v17 = vadd.f32 %v7118_v12, %v6943_v51  ;;  %v2966_v19 = vadd.f32 %v7120_v16, %v6951_v6  ;;  %v3394_v26 = vpack.c.bf16 %v7118_v12, %v7118_v12  ;;  %v6214_v51 = vld [vmem:[#allocation4 + $0x120] ss:$8 sps:$4 sm:$0xff]   ;;  %v6219_v6 = vld [vmem:[#allocation4 + $0x134] ss:$8 sps:$4 sm:$0xff]   ;;  %v3393_v57 = vpack.c.bf16 %v7120_v16, %v7120_v16 }
 0xbb5   : > { %v2969_v21 = vpack.c.bf16 %v2967_v17, %v2967_v17  ;;  %v2968_v23 = vpack.c.bf16 %v2966_v19, %v2966_v19 }
 0xbb7   : > { %3343 = vmatprep.mubr.bf16.mxu0 %v2969_v21  ;;  %3384 = vmatprep.mubr.bf16.mxu1 %v2969_v21 }
 0xbb8   : > { %3344 = vmatmul.mubr.bf16.vlgmr.msra.gmra.mrb[16].mxu0 %v2968_v23  ;;  %3385 = vmatmul.mubr.bf16.vlgmr.msra.gmra.mrb[32].mxu1 %v2968_v23 }
 0xbb9   : > { %3564 = vmatpush1.bf16.msra.mxu0 %v6208_v22  ;;  %3595 = vmatprep.mubr.bf16.mxu0 %v3394_v26 }
 0xbba   : > { %3565 = vmatprep.subr.bf16.mxu0 %v6213_v24  ;;  %5641 = vmatprep.mubr.msk.bf16.mxu1 %vm6694_vm0, %v6693_v13 }
 0xbbd   : > { %3566 = vmatpush1.bf16.msra.mxu0 %v6211_v27 }
 0xbbe   : > { %3567 = vmatprep.subr.bf16.mxu0 %v6216_v29 }
 0xbc1   : > { %3568 = vmatpush1.bf16.msra.mxu0 %v6214_v51 }
 0xbc2   : > { %3569 = vmatprep.subr.bf16.mxu0 %v6219_v6 }
 0xbc5   : > { %3570 = vmatpush1.bf16.msra.mxu0 %v6217_v30 }
 0xbc6   : > { %3571 = vmatprep.subr.bf16.mxu0 %v6222_v31 }
 0xbc9   : > { %3572 = vmatpush1.bf16.msra.mxu0 %v6220_v34 }
 0xbca   : > { %3573 = vmatprep.subr.bf16.mxu0 %v6225_v36 }
 0xbcd   : > { %3574 = vmatpush1.bf16.msra.mxu0 %v6223_v37 }
 0xbce   : > { %3575 = vmatprep.subr.bf16.mxu0 %v6228_v38 }
 0xbd1   : > { %3576 = vmatpush1.bf16.msra.mxu0 %v6226_v40 }
 0xbd2   : > { %3577 = vmatprep.subr.bf16.mxu0 %v6231_v41  ;;  %v2986_v41 = vrot.slane %v5333_v58, %v6998_v33 }
 0xbd5   : > { %3578 = vmatpush1.bf16.msra.mxu0 %v6229_v45  ;;  %v7155_v45 = vld [vmem:[%s7256_s9 + $0x18] sm:$0xff] }
 0xbd6   : > { %3579 = vmatprep.subr.bf16.mxu0 %v6234_v46 }
 0xbd9   : > { %3580 = vmatpush1.bf16.msra.mxu0 %v6232_v18 }
 0xbda   : > { %3581 = vmatprep.subr.bf16.mxu0 %v6237_v35  ;;  %v3402_v35 = vrot.slane %v7155_v45, %v6947_v0 }
 0xbdd   : > { %3582 = vmatpush1.bf16.msra.mxu0 %v6235_v20 }
 0xbde   : > { %3583 = vmatprep.subr.bf16.mxu0 %v6240_v47  ;;  %v2978_v47 = vrot.slane %v5333_v58, %v6932_v44 }
 0xbe1   : > { %3584 = vmatpush1.bf16.msra.mxu0 %v6238_v48 }
 0xbe2   : > { %3585 = vmatprep.subr.bf16.mxu0 %v6243_v49 }
 0xbe5   : > { %3586 = vmatpush1.bf16.msra.mxu0 %v6241_v50 }
 0xbe6   : > { %3587 = vmatprep.subr.bf16.mxu0 %v6246_v52 }
 0xbe9   : > { %3588 = vmatpush1.bf16.msra.mxu0 %v6244_v53 }
 0xbea   : > { %3589 = vmatprep.subr.bf16.mxu0 %v6249_v43 }
 0xbed   : > { %3590 = vmatpush1.bf16.msra.mxu0 %v6247_v54 }
 0xbee   : > { %3591 = vmatprep.subr.bf16.mxu0 %v6252_v42 }
 0xbf1   : > { %3592 = vmatpush1.bf16.msra.mxu0 %v6250_v25 }
 0xbf2   : > { %3593 = vmatprep.subr.bf16.mxu0 %v6255_v55 }
 0xbf5   : > { %3594 = vmatpush1.bf16.msra.mxu0 %v6253_v56 }
 0xbf8   : > { %3596 = vmatmul.mubr.bf16.vlgmr.msra.gmra.mrb[20].mxu0 %v3393_v57 }
 0xc8b   : > { %v3345_v61 = vpop.f32.mrb[16].mxu0  ;;  %v3386_v60 = vpop.f32.mrb[32].mxu1 }
 0xc8c   : > { %v3387_v62 = vadd.f32 %v3386_v60, %v2982_v59  ;;  %v3347_v15 = vpop.f32.mrb[17].mxu0  ;;  %v3388_v2 = vpop.f32.mrb[33].mxu1  ;;  %v3346_v39 = vadd.f32 %v3345_v61, %v2974_v3 }
 0xc8d   : > { %v3349_v5 = vpop.f32.mrb[18].mxu0  ;;  %v3390_v7 = vpop.f32.mrb[34].mxu1  ;;  %v3389_v18 = vadd.f32 %v3388_v2, %v2986_v41  ;;  %v3348_v52 = vadd.f32 %v3347_v15, %v2978_v47  ;;  %v6297_v41 = vld [vmem:[#allocation6 + $0x1d4] ss:$8 sps:$4 sm:$0xff]  }
 0xc8e   : > { %v3607_v8 = vpack.c.bf16 %v3387_v62, %v3387_v62  ;;  %v3350_v4 = vpop.f32.mrb[19].mxu0  ;;  %v3391_v9 = vpop.f32.mrb[35].mxu1  ;;  %v3606_v32 = vpack.c.bf16 %v3346_v39, %v3346_v39  ;;  %v6256_v5 = vld [vmem:[#allocation6 + $0x100] ss:$8 sps:$4 sm:$0xff]   ;;  %v6258_v7 = vld [vmem:[#allocation6 + $0x104] ss:$8 sps:$4 sm:$0xff]  }
 0xc8f   : > { %v3707_v49 = vpack.c.bf16 %v3389_v18, %v3389_v18  ;;  %v3706_v43 = vpack.c.bf16 %v3348_v52, %v3348_v52  ;;  %3976 = vmatprep.subr.bf16.mxu0 %v6258_v7  ;;  %v6259_v4 = vld [vmem:[#allocation6 + $0x110] ss:$8 sps:$4 sm:$0xff]   ;;  %v6264_v9 = vld [vmem:[#allocation6 + $0x124] ss:$8 sps:$4 sm:$0xff]   ;;  %v6262_v39 = vld [vmem:[#allocation6 + $0x120] ss:$8 sps:$4 sm:$0xff]  }
 0xc90   : > { %5640 = vmatpush3.bf16.xpose.msra.mxu1 %v3607_v8  ;;  %v6261_v8 = vld [vmem:[#allocation6 + $0x114] ss:$8 sps:$4 sm:$0xff]   ;;  %3977 = vmatpush1.bf16.msra.mxu0 %v6256_v5  ;;  %v6300_v18 = vld [vmem:[#allocation6 + $0x1e4] ss:$8 sps:$4 sm:$0xff]   ;;  %v6301_v52 = vld [vmem:[#allocation6 + $0x1f0] ss:$8 sps:$4 sm:$0xff]  }
 0xc91   : > { %5645 = vmatprep.subr.bf16.mxu1 %v6693_v13  ;;  %3978 = vmatprep.subr.bf16.mxu0 %v6261_v8  ;;  %v6304_v5 = vld [vmem:[#allocation7 + $0x200] ss:$16 sps:$4 sm:$0xff]   ;;  %v6306_v7 = vld [vmem:[#allocation7 + $0x204] ss:$16 sps:$4 sm:$0xff]   ;;  %v6307_v8 = vld [vmem:[#allocation7 + $0x208] ss:$16 sps:$4 sm:$0xff]  }
 0xc94   : > { %3979 = vmatpush1.bf16.msra.mxu0 %v6259_v4  ;;  %v6309_v4 = vld [vmem:[#allocation7 + $0x20c] ss:$16 sps:$4 sm:$0xff]  }
 0xc95   : > { %3980 = vmatprep.subr.bf16.mxu0 %v6264_v9  ;;  %v6312_v9 = vld [vmem:[#allocation7 + $0x224] ss:$16 sps:$4 sm:$0xff]  }
 0xc97   : > { %5642 = vmatmul.mubr.bf16.vlgmr.msra.gmra.mrb[36].mxu1 %v3606_v32  ;;  %v6267_v32 = vld [vmem:[#allocation6 + $0x134] ss:$8 sps:$4 sm:$0xff]  }
 0xc98   : > { %5647 = vmatprep.mubr.msk.bf16.mxu1 %vm6694_vm0, %v6693_v13  ;;  %3981 = vmatpush1.bf16.msra.mxu0 %v6262_v39  ;;  %v6315_v39 = vld [vmem:[#allocation7 + $0x22c] ss:$16 sps:$4 sm:$0xff]  }
 0xc99   : > { %3982 = vmatprep.subr.bf16.mxu0 %v6267_v32  ;;  %v6310_v32 = vld [vmem:[#allocation7 + $0x220] ss:$16 sps:$4 sm:$0xff]  }
 0xccb   : > { %v3597_v17 = vpop.f32.mrb[20].mxu0 }
 0xccc   : > { %v3598_v19 = vadd.f32 %v3597_v17, %v3398_v11  ;;  %v3599_v21 = vpop.f32.mrb[21].mxu0  ;;  %v6265_v11 = vld [vmem:[#allocation6 + $0x130] ss:$8 sps:$4 sm:$0xff]   ;;  %v6270_v17 = vld [vmem:[#allocation6 + $0x144] ss:$8 sps:$4 sm:$0xff]  }
 0xccd   : > { %v3601_v22 = vpop.f32.mrb[22].mxu0  ;;  %v3600_v50 = vadd.f32 %v3599_v21, %v3402_v35  ;;  %3983 = vmatpush1.bf16.msra.mxu0 %v6265_v11  ;;  %v6273_v21 = vld [vmem:[#allocation6 + $0x154] ss:$8 sps:$4 sm:$0xff]   ;;  %v6298_v35 = vld [vmem:[#allocation6 + $0x1e0] ss:$8 sps:$4 sm:$0xff]  }
 0xcce   : > { %v3604_v23 = vpack.c.bf16 %v3598_v19, %v3598_v19  ;;  %v3602_v24 = vpop.f32.mrb[23].mxu0  ;;  %v6268_v19 = vld [vmem:[#allocation6 + $0x140] ss:$8 sps:$4 sm:$0xff]   ;;  %3984 = vmatprep.subr.bf16.mxu0 %v6270_v17  ;;  %v6271_v22 = vld [vmem:[#allocation6 + $0x150] ss:$8 sps:$4 sm:$0xff]  }
 0xccf   : > { %v3605_v53 = vpack.c.bf16 %v3600_v50, %v3600_v50  ;;  %v6274_v24 = vld [vmem:[#allocation6 + $0x160] ss:$8 sps:$4 sm:$0xff]   ;;  %v6303_v50 = vld [vmem:[#allocation6 + $0x1f4] ss:$8 sps:$4 sm:$0xff]  }
 0xcd0   : > { %v3664_v26 = vsel %vm1423_vm2, %v3604_v23, 0  ;;  %v6276_v23 = vld [vmem:[#allocation6 + $0x164] ss:$8 sps:$4 sm:$0xff]   ;;  %v6316_v17 = vld [vmem:[#allocation7 + $0x240] ss:$16 sps:$4 sm:$0xff]  }
 0xcd1   : > { %5646 = vmatpush3.bf16.msra.mxu1 %v3664_v26  ;;  %v3764_v54 = vsel %vm1423_vm2, %v3605_v53, 0  ;;  %3985 = vmatpush1.bf16.msra.mxu0 %v6268_v19  ;;  %v6279_v26 = vld [vmem:[#allocation6 + $0x174] ss:$8 sps:$4 sm:$0xff]   ;;  %v6319_v19 = vld [vmem:[#allocation7 + $0x248] ss:$16 sps:$4 sm:$0xff]  }
 0xcd2   : > { %5651 = vmatprep.subr.bf16.mxu1 %v6693_v13  ;;  %3986 = vmatprep.subr.bf16.mxu0 %v6273_v21  ;;  %v6318_v11 = vld [vmem:[#allocation7 + $0x244] ss:$16 sps:$4 sm:$0xff]  }
 0xcd3   : > { %v6324_v21 = vld [vmem:[#allocation7 + $0x264] ss:$16 sps:$4 sm:$0xff]  }
 0xcd5   : > { %3987 = vmatpush1.bf16.msra.mxu0 %v6271_v22  ;;  %v6327_v22 = vld [vmem:[#allocation7 + $0x26c] ss:$16 sps:$4 sm:$0xff]  }
 0xcd6   : > { %3988 = vmatprep.subr.bf16.mxu0 %v6276_v23  ;;  %v6322_v23 = vld [vmem:[#allocation7 + $0x260] ss:$16 sps:$4 sm:$0xff]  }
 0xcd9   : > { %3989 = vmatpush1.bf16.msra.mxu0 %v6274_v24  ;;  %v6325_v24 = vld [vmem:[#allocation7 + $0x268] ss:$16 sps:$4 sm:$0xff]  }
 0xcda   : > { %3990 = vmatprep.subr.bf16.mxu0 %v6279_v26  ;;  %v6330_v26 = vld [vmem:[#allocation7 + $0x284] ss:$16 sps:$4 sm:$0xff]  }
 0xd6a   : > { %v3642_v27 = vpop.f32.mrb[36].mxu1 }
 0xd6b   : > { %v5643_v29 = vpop.f32.mrb[37].mxu1  ;;  %v3648_v51 = vsel %vm1407_vm1, %v3642_v27, -inf }
 0xd6c   : > { %3649 = vmax.xlane.f32.xlu0 %v3648_v51  ;;  %v3645_v6 = vpop.f32.mrb[38].mxu1  ;;  %v6282_v29 = vld [vmem:[#allocation6 + $0x184] ss:$8 sps:$4 sm:$0xff]   ;;  %v6280_v51 = vld [vmem:[#allocation6 + $0x180] ss:$8 sps:$4 sm:$0xff]  }
 0xd6d   : > { %v5644_v30 = vpop.f32.mrb[39].mxu1  ;;  %v6285_v6 = vld [vmem:[#allocation6 + $0x194] ss:$8 sps:$4 sm:$0xff]  }
 0xd6e   : > { %v6283_v30 = vld [vmem:[#allocation6 + $0x190] ss:$8 sps:$4 sm:$0xff]  }
 0xdf9   : > { %v3650_v31 = vpop.xlane.xlu0 %3649 }
 0xdfa   : > { %v3651_v34 = vsub.f32 %v3642_v27, %v3650_v31  ;;  %v6277_v27 = vld [vmem:[#allocation6 + $0x170] ss:$8 sps:$4 sm:$0xff]   ;;  %v6288_v31 = vld [vmem:[#allocation6 + $0x1a4] ss:$8 sps:$4 sm:$0xff]  }
 0xdfb   : > { %3991 = vmatpush1.bf16.msra.mxu0 %v6277_v27  ;;  %v6333_v27 = vld [vmem:[#allocation7 + $0x28c] ss:$16 sps:$4 sm:$0xff]  }
 0xdfc   : > { %v3652_v36 = vmul.f32 1.442695, %v3651_v34  ;;  %3992 = vmatprep.subr.bf16.mxu0 %v6282_v29  ;;  %v6286_v34 = vld [vmem:[#allocation6 + $0x1a0] ss:$8 sps:$4 sm:$0xff]  }
 0xdfd   : > { %v6328_v29 = vld [vmem:[#allocation7 + $0x280] ss:$16 sps:$4 sm:$0xff]  }
 0xdfe   : > { %6508 = vpow2.f32 %v3652_v36  ;;  %v6291_v36 = vld [vmem:[#allocation6 + $0x1b4] ss:$8 sps:$4 sm:$0xff]  }
 0xdff   : > { %3993 = vmatpush1.bf16.msra.mxu0 %v6280_v51  ;;  %v6331_v51 = vld [vmem:[#allocation7 + $0x288] ss:$16 sps:$4 sm:$0xff]  }
 0xe00   : > { %3994 = vmatprep.subr.bf16.mxu0 %v6285_v6  ;;  %v6336_v6 = vld [vmem:[#allocation7 + $0x2a4] ss:$16 sps:$4 sm:$0xff]  }
 0xe03   : > { %3995 = vmatpush1.bf16.msra.mxu0 %v6283_v30  ;;  %v6339_v30 = vld [vmem:[#allocation7 + $0x2ac] ss:$16 sps:$4 sm:$0xff]  }
 0xe04   : > { %3996 = vmatprep.subr.bf16.mxu0 %v6288_v31  ;;  %v6334_v31 = vld [vmem:[#allocation7 + $0x2a0] ss:$16 sps:$4 sm:$0xff]  }
 0xe07   : > { %3997 = vmatpush1.bf16.msra.mxu0 %v6286_v34  ;;  %v6337_v34 = vld [vmem:[#allocation7 + $0x2a8] ss:$16 sps:$4 sm:$0xff]  }
 0xe08   : > { %v6509_v37 = vpop.eup %6508  ;;  %3998 = vmatprep.subr.bf16.mxu0 %v6291_v36  ;;  %v6342_v36 = vld [vmem:[#allocation7 + $0x2c4] ss:$16 sps:$4 sm:$0xff]  }
 0xe09   : > { %v3654_v38 = vsel %vm1407_vm1, %v6509_v37, 0.0 }
 0xe0a   : > { %3655 = vadd.xlane.f32.xlu1 %v3654_v38  ;;  %v6294_v38 = vld [vmem:[#allocation6 + $0x1c4] ss:$8 sps:$4 sm:$0xff]  }
 0xe97   : > { %v3656_v40 = vpop.xlane.xlu1 %3655 }
 0xe98   : > { %6510 = vrcp.f32 %v3656_v40  ;;  %v6292_v40 = vld [vmem:[#allocation6 + $0x1c0] ss:$8 sps:$4 sm:$0xff]  }
 0xea2   : > { %v6511_v46 = vpop.eup %6510 }
 0xea3   : > { %v3658_v20 = vmul.f32 %v6511_v46, %v6509_v37  ;;  %v6289_v37 = vld [vmem:[#allocation6 + $0x1b0] ss:$8 sps:$4 sm:$0xff]  }
 0xea4   : > { %3999 = vmatpush1.bf16.msra.mxu0 %v6289_v37  ;;  %v6295_v46 = vld [vmem:[#allocation6 + $0x1d0] ss:$8 sps:$4 sm:$0xff]   ;;  %v6345_v37 = vld [vmem:[#allocation7 + $0x2cc] ss:$16 sps:$4 sm:$0xff]  }
 0xea5   : > { %v3659_v48 = vpack.c.bf16 %v3658_v20, %v3658_v20  ;;  %4000 = vmatprep.subr.bf16.mxu0 %v6294_v38  ;;  %v6340_v38 = vld [vmem:[#allocation7 + $0x2c0] ss:$16 sps:$4 sm:$0xff]  }
 0xea7   : > { %5648 = vmatmul.mubr.msk.bf16.vlgmr.msra.gmra.mrb[40].mxu1 %vm1407_vm1, %v3659_v48 }
 0xea8   : > { %5652 = vmatpush3.bf16.xpose.msra.mxu1 %v3707_v49  ;;  %5653 = vmatprep.mubr.msk.bf16.mxu1 %vm6694_vm0, %v6693_v13 }
 0xea9   : > { %5657 = vmatprep.subr.bf16.mxu1 %v6693_v13  ;;  %4001 = vmatpush1.bf16.msra.mxu0 %v6292_v40  ;;  %v6343_v40 = vld [vmem:[#allocation7 + $0x2c8] ss:$16 sps:$4 sm:$0xff]  }
 0xeaa   : > { %4002 = vmatprep.subr.bf16.mxu0 %v6297_v41  ;;  %v6348_v41 = vld [vmem:[#allocation7 + $0x2e4] ss:$16 sps:$4 sm:$0xff]  }
 0xead   : > { %4003 = vmatpush1.bf16.msra.mxu0 %v6295_v46  ;;  %v6351_v46 = vld [vmem:[#allocation7 + $0x2ec] ss:$16 sps:$4 sm:$0xff]  }
 0xeae   : > { %4004 = vmatprep.subr.bf16.mxu0 %v6300_v18  ;;  %v6346_v18 = vld [vmem:[#allocation7 + $0x2e0] ss:$16 sps:$4 sm:$0xff]  }
 0xeaf   : > { %5654 = vmatmul.mubr.bf16.vlgmr.msra.gmra.mrb[44].mxu1 %v3706_v43 }
 0xeb0   : > { %5658 = vmatpush3.bf16.msra.mxu1 %v3764_v54  ;;  %5659 = vmatprep.mubr.msk.bf16.mxu1 %vm6694_vm0, %v6693_v13 }
 0xeb1   : > { %4005 = vmatpush1.bf16.msra.mxu0 %v6298_v35  ;;  %4398 = vmatprep.subr.bf16.mxu1 %v6306_v7  ;;  %v6349_v35 = vld [vmem:[#allocation7 + $0x2e8] ss:$16 sps:$4 sm:$0xff]   ;;  %v6381_v7 = vld [vmem:[#allocation7 + $0x38c] ss:$16 sps:$4 sm:$0xff]  }
 0xeb2   : > { %4006 = vmatprep.subr.bf16.mxu0 %v6303_v50  ;;  %v6360_v50 = vld [vmem:[#allocation7 + $0x324] ss:$16 sps:$4 sm:$0xff]  }
 0xeb5   : > { %4007 = vmatpush1.bf16.msra.mxu0 %v6301_v52  ;;  %v6363_v52 = vld [vmem:[#allocation7 + $0x32c] ss:$16 sps:$4 sm:$0xff]  }
 0xeb6   : > { %4439 = vmatprep.subr.bf16.mxu0 %v6309_v4  ;;  %v6379_v4 = vld [vmem:[#allocation7 + $0x388] ss:$16 sps:$4 sm:$0xff]  }
 0xf7a   : > { %v7167_v42 = vpop.f32.mrb[40].mxu1 }
 0xf7b   : > { %v5649_v25 = vpop.f32.mrb[41].mxu1 }
 0xf7c   : > { %v3703_v55 = vpop.f32.mrb[42].mxu1  ;;  %v3806_v25 = vpack.c.bf16 %v7167_v42, %v7167_v42 }
 0xf7d   : > { %v5650_v56 = vpop.f32.mrb[43].mxu1 }
 0xf82   : > { %v3742_v57 = vpop.f32.mrb[44].mxu1 }
 0xf83   : > { %v5655_v58 = vpop.f32.mrb[45].mxu1  ;;  %v3748_v59 = vsel %vm1407_vm1, %v3742_v57, -inf }
 0xf84   : > { %3749 = vmax.xlane.f32.xlu0 %v3748_v59  ;;  %v3745_v61 = vpop.f32.mrb[46].mxu1  ;;  %v3815_v58 = vrot.slane %v7155_v45, %v6932_v44 }
 0xf85   : > { %v5656_v60 = vpop.f32.mrb[47].mxu1 }
0x1011   : > { %v3750_v62 = vpop.xlane.xlu0 %3749 }
0x1012   : > { %v3751_v15 = vsub.f32 %v3742_v57, %v3750_v62  ;;  %v3811_v57 = vrot.slane %v7143_v10, %v6932_v44 }
0x1014   : > { %v3752_v2 = vmul.f32 1.442695, %v3751_v15 }
0x1016   : > { %6512 = vpow2.f32 %v3752_v2 }
0x1020   : > { %v7170_v3 = vpop.eup %6512 }
0x1021   : > { %v3754_v13 = vsel %vm1407_vm1, %v7170_v3, 0.0 }
0x1022   : > { %3755 = vadd.xlane.f32.xlu1 %v3754_v13 }
0x10af   : > { %v3756_v20 = vpop.xlane.xlu1 %3755 }
0x10b0   : > { %6514 = vrcp.f32 %v3756_v20  ;;  %v6354_v20 = vld [vmem:[#allocation7 + $0x304] ss:$16 sps:$4 sm:$0xff]  }
0x10ba   : > { %v6515_v47 = vpop.eup %6514 }
0x10bb   : > { %v3758_v48 = vmul.f32 %v6515_v47, %v7170_v3  ;;  %v6357_v47 = vld [vmem:[#allocation7 + $0x30c] ss:$16 sps:$4 sm:$0xff]  }
0x10bd   : > { %v3759_v49 = vpack.c.bf16 %v3758_v48, %v3758_v48  ;;  %v6352_v48 = vld [vmem:[#allocation7 + $0x300] ss:$16 sps:$4 sm:$0xff]  }
0x10bf   : > { %5660 = vmatmul.mubr.msk.bf16.vlgmr.msra.gmra.mrb[48].mxu1 %vm1407_vm1, %v3759_v49  ;;  %v6355_v49 = vld [vmem:[#allocation7 + $0x308] ss:$16 sps:$4 sm:$0xff]  }
0x10c0   : > { %4399 = vmatpush1.bf16.msra.mxu1 %v6304_v5  ;;  %v6378_v5 = vld [vmem:[#allocation7 + $0x384] ss:$16 sps:$4 sm:$0xff]  }
0x10c1   : > { %4400 = vmatprep.subr.bf16.mxu1 %v6312_v9  ;;  %v6384_v9 = vld [vmem:[#allocation7 + $0x3a4] ss:$16 sps:$4 sm:$0xff]  }
0x10c4   : > { %4401 = vmatpush1.bf16.msra.mxu1 %v6310_v32  ;;  %v6382_v32 = vld [vmem:[#allocation7 + $0x3a0] ss:$16 sps:$4 sm:$0xff]  }
0x10c5   : > { %4402 = vmatprep.subr.bf16.mxu1 %v6318_v11  ;;  %v6388_v11 = vld [vmem:[#allocation7 + $0x3c0] ss:$16 sps:$4 sm:$0xff]  }
0x10c8   : > { %4403 = vmatpush1.bf16.msra.mxu1 %v6316_v17  ;;  %v6391_v17 = vld [vmem:[#allocation7 + $0x3c8] ss:$16 sps:$4 sm:$0xff]  }
0x10c9   : > { %4404 = vmatprep.subr.bf16.mxu1 %v6324_v21  ;;  %v6396_v21 = vld [vmem:[#allocation7 + $0x3e4] ss:$16 sps:$4 sm:$0xff]  }
0x10cc   : > { %4405 = vmatpush1.bf16.msra.mxu1 %v6322_v23  ;;  %v6394_v23 = vld [vmem:[#allocation7 + $0x3e0] ss:$16 sps:$4 sm:$0xff]  }
0x10cd   : > { %4406 = vmatprep.subr.bf16.mxu1 %v6330_v26  ;;  %v6402_v26 = vld [vmem:[#allocation9 + $0x204] ss:$8 sps:$4 sm:$0xff]  }
0x10d0   : > { %4407 = vmatpush1.bf16.msra.mxu1 %v6328_v29 }
0x10d1   : > { %4408 = vmatprep.subr.bf16.mxu1 %v6336_v6 }
0x10d4   : > { %4409 = vmatpush1.bf16.msra.mxu1 %v6334_v31  ;;  %v4038_v31 = vrot.slane %v7143_v10, %v6998_v33 }
0x10d5   : > { %4410 = vmatprep.subr.bf16.mxu1 %v6342_v36 }
0x10d8   : > { %4411 = vmatpush1.bf16.msra.mxu1 %v6340_v38  ;;  %v4052_v38 = vrot.slane %v7155_v45, %v7050_v28 }
0x10d9   : > { %4412 = vmatprep.subr.bf16.mxu1 %v6348_v41 }
0x10dc   : > { %4413 = vmatpush1.bf16.msra.mxu1 %v6346_v18 }
0x10dd   : > { %4414 = vmatprep.subr.bf16.mxu1 %v6354_v20 }
0x10e0   : > { %4415 = vmatpush1.bf16.msra.mxu1 %v6352_v48  ;;  %v6400_v48 = vld [vmem:[#allocation9 + $0x200] ss:$8 sps:$4 sm:$0xff]  }
0x10e1   : > { %4416 = vmatprep.subr.bf16.mxu1 %v6360_v50  ;;  %v6408_v50 = vld [vmem:[#allocation9 + $0x214] ss:$8 sps:$4 sm:$0xff]  }
0x1192   : > { %v3800_v53 = vpop.f32.mrb[48].mxu1 }
0x1193   : > { %v3807_v43 = vpack.c.bf16 %v3800_v53, %v3800_v53  ;;  %v5661_v54 = vpop.f32.mrb[49].mxu1  ;;  %v6358_v53 = vld [vmem:[#allocation7 + $0x320] ss:$16 sps:$4 sm:$0xff]  }
0x1194   : > { %v3803_v55 = vpop.f32.mrb[50].mxu1  ;;  %4417 = vmatpush1.bf16.msra.mxu1 %v6358_v53  ;;  %v6409_v53 = vld [vmem:[#allocation9 + $0x310] ss:$8 sps:$4 sm:$0xff]  }
0x1195   : > { %v5662_v56 = vpop.f32.mrb[51].mxu1  ;;  %4008 = vmatprep.mubr.bf16.mxu0 %v3807_v43  ;;  %v6361_v43 = vld [vmem:[#allocation7 + $0x328] ss:$16 sps:$4 sm:$0xff]  }
0x1196   : > { %4009 = vmatmul.mubr.bf16.vlgmr.msra.gmra.mrb[24].mxu0 %v3806_v25 }
0x1197   : > { %4440 = vmatpush1.bf16.msra.mxu0 %v6307_v8  ;;  %v6376_v8 = vld [vmem:[#allocation7 + $0x380] ss:$16 sps:$4 sm:$0xff]  }
0x1198   : > { %4441 = vmatprep.subr.bf16.mxu0 %v6315_v39  ;;  %v6387_v39 = vld [vmem:[#allocation7 + $0x3ac] ss:$16 sps:$4 sm:$0xff]  }
0x1269   : > { %v4010_v59 = vpop.f32.mrb[24].mxu0 }
0x126a   : > { %v4011_v61 = vadd.f32 %v4010_v59, %v3811_v57  ;;  %v4012_v60 = vpop.f32.mrb[25].mxu0 }
0x126b   : > { %v4013_v62 = vadd.f32 %v4012_v60, %v3815_v58  ;;  %v4014_v15 = vpop.f32.mrb[26].mxu0  ;;  %v6369_v60 = vld [vmem:[#allocation7 + $0x34c] ss:$16 sps:$4 sm:$0xff]  }
0x126c   : > { %v7183_v2 = vadd.f32 %v4011_v61, %v7120_v16  ;;  %v4015_v3 = vpop.f32.mrb[27].mxu0  ;;  %v6313_v16 = vld [vmem:[#allocation7 + $0x228] ss:$16 sps:$4 sm:$0xff]   ;;  %v6366_v61 = vld [vmem:[#allocation7 + $0x344] ss:$16 sps:$4 sm:$0xff]  }
0x126d   : > { %v7186_v42 = vadd.f32 %v4013_v62, %v7118_v12  ;;  %v6321_v12 = vld [vmem:[#allocation7 + $0x24c] ss:$16 sps:$4 sm:$0xff]   ;;  %4442 = vmatpush1.bf16.msra.mxu0 %v6313_v16  ;;  %v6364_v62 = vld [vmem:[#allocation7 + $0x340] ss:$16 sps:$4 sm:$0xff]   ;;  %v6367_v15 = vld [vmem:[#allocation7 + $0x348] ss:$16 sps:$4 sm:$0xff]   ;;  %4418 = vmatprep.subr.bf16.mxu1 %v6366_v61 }
0x126e   : > { %4443 = vmatprep.subr.bf16.mxu0 %v6321_v12  ;;  %4419 = vmatpush1.bf16.msra.mxu1 %v6364_v62  ;;  %v6375_v3 = vld [vmem:[#allocation7 + $0x36c] ss:$16 sps:$4 sm:$0xff]   ;;  %v6385_v16 = vld [vmem:[#allocation7 + $0x3a8] ss:$16 sps:$4 sm:$0xff]   ;;  %v6390_v12 = vld [vmem:[#allocation7 + $0x3c4] ss:$16 sps:$4 sm:$0xff]  }
0x126f   : > { %v4019_v13 = vadd.f32 %v7186_v42, %v7183_v2  ;;  %v6426_v61 = vld [vmem:[#allocation9 + $0x244] ss:$8 sps:$4 sm:$0xff]   ;;  %v6424_v62 = vld [vmem:[#allocation9 + $0x240] ss:$8 sps:$4 sm:$0xff]  }
0x1271   : > { %4020 = vadd.xlane.f32.xlu0 %v4019_v13  ;;  %4444 = vmatpush1.bf16.msra.mxu0 %v6319_v19  ;;  %v6373_v13 = vld [vmem:[#allocation7 + $0x368] ss:$16 sps:$4 sm:$0xff]   ;;  %v6393_v19 = vld [vmem:[#allocation7 + $0x3cc] ss:$16 sps:$4 sm:$0xff]  }
0x1272   : > { %4445 = vmatprep.subr.bf16.mxu0 %v6327_v22  ;;  %v6399_v22 = vld [vmem:[#allocation7 + $0x3ec] ss:$16 sps:$4 sm:$0xff]  }
0x1275   : > { %4446 = vmatpush1.bf16.msra.mxu0 %v6325_v24  ;;  %v6397_v24 = vld [vmem:[#allocation7 + $0x3e8] ss:$16 sps:$4 sm:$0xff]  }
0x1276   : > { %4447 = vmatprep.subr.bf16.mxu0 %v6333_v27  ;;  %v6405_v27 = vld [vmem:[#allocation9 + $0x304] ss:$8 sps:$4 sm:$0xff]  }
0x1279   : > { %4448 = vmatpush1.bf16.msra.mxu0 %v6331_v51 }
0x127a   : > { %4449 = vmatprep.subr.bf16.mxu0 %v6339_v30  ;;  %v4042_v30 = vrot.slane %v7155_v45, %v6998_v33 }
0x127d   : > { %4450 = vmatpush1.bf16.msra.mxu0 %v6337_v34 }
0x127e   : > { %4451 = vmatprep.subr.bf16.mxu0 %v6345_v37 }
0x1281   : > { %4452 = vmatpush1.bf16.msra.mxu0 %v6343_v40  ;;  %v4048_v40 = vrot.slane %v7143_v10, %v7050_v28  ;;  %v6406_v28 = vld [vmem:[#allocation9 + $0x210] ss:$8 sps:$4 sm:$0xff]  }
0x1282   : > { %4453 = vmatprep.subr.bf16.mxu0 %v6351_v46 }
0x1285   : > { %4454 = vmatpush1.bf16.msra.mxu0 %v6349_v35 }
0x1286   : > { %4455 = vmatprep.subr.bf16.mxu0 %v6357_v47 }
0x1289   : > { %4456 = vmatpush1.bf16.msra.mxu0 %v6355_v49  ;;  %v6403_v49 = vld [vmem:[#allocation9 + $0x300] ss:$8 sps:$4 sm:$0xff]  }
0x128a   : > { %4457 = vmatprep.subr.bf16.mxu0 %v6363_v52  ;;  %v6411_v52 = vld [vmem:[#allocation9 + $0x314] ss:$8 sps:$4 sm:$0xff]  }
0x128d   : > { %4458 = vmatpush1.bf16.msra.mxu0 %v6361_v43  ;;  %v6414_v43 = vld [vmem:[#allocation9 + $0x224] ss:$8 sps:$4 sm:$0xff]  }
0x128e   : > { %4459 = vmatprep.subr.bf16.mxu0 %v6369_v60  ;;  %v6429_v60 = vld [vmem:[#allocation9 + $0x344] ss:$8 sps:$4 sm:$0xff]  }
0x1291   : > { %4460 = vmatpush1.bf16.msra.mxu0 %v6367_v15  ;;  %v6427_v15 = vld [vmem:[#allocation9 + $0x340] ss:$8 sps:$4 sm:$0xff]  }
0x1292   : > { %4461 = vmatprep.subr.bf16.mxu0 %v6375_v3  ;;  %v6435_v3 = vld [vmem:[#allocation9 + $0x354] ss:$8 sps:$4 sm:$0xff]  }
0x1295   : > { %4462 = vmatpush1.bf16.msra.mxu0 %v6373_v13  ;;  %v6433_v13 = vld [vmem:[#allocation9 + $0x350] ss:$8 sps:$4 sm:$0xff]  }
0x1296   : > { %4463 = vmatprep.subr.bf16.mxu0 %v6381_v7  ;;  %v6441_v7 = vld [vmem:[#allocation9 + $0x364] ss:$8 sps:$4 sm:$0xff]  }
0x1299   : > { %4464 = vmatpush1.bf16.msra.mxu0 %v6379_v4  ;;  %v6439_v4 = vld [vmem:[#allocation9 + $0x360] ss:$8 sps:$4 sm:$0xff]  }
0x129a   : > { %4465 = vmatprep.subr.bf16.mxu0 %v6387_v39  ;;  %v6447_v39 = vld [vmem:[#allocation9 + $0x374] ss:$8 sps:$4 sm:$0xff]  }
0x129d   : > { %4466 = vmatpush1.bf16.msra.mxu0 %v6385_v16  ;;  %v6445_v16 = vld [vmem:[#allocation9 + $0x370] ss:$8 sps:$4 sm:$0xff]  }
0x129e   : > { %4467 = vmatprep.subr.bf16.mxu0 %v6393_v19  ;;  %v6451_v19 = vld [vmem:[#allocation9 + $0x380] ss:$8 sps:$4 sm:$0xff]  }
0x12a1   : > { %4468 = vmatpush1.bf16.msra.mxu0 %v6391_v17  ;;  %v6448_v17 = vld [vmem:[#allocation9 + $0x280] ss:$8 sps:$4 sm:$0xff]  }
0x12a2   : > { %4469 = vmatprep.subr.bf16.mxu0 %v6399_v22  ;;  %v6459_v22 = vld [vmem:[#allocation9 + $0x394] ss:$8 sps:$4 sm:$0xff]  }
0x12a5   : > { %4470 = vmatpush1.bf16.msra.mxu0 %v6397_v24  ;;  %v6457_v24 = vld [vmem:[#allocation9 + $0x390] ss:$8 sps:$4 sm:$0xff]  }
0x12a6   : > { %4857 = vmatprep.subr.bf16.mxu0 %v6405_v27  ;;  %v6465_v27 = vld [vmem:[#allocation9 + $0x3a4] ss:$8 sps:$4 sm:$0xff]  }
0x12fe   : > { %v4021_v54 = vpop.xlane.xlu0 %4020 }
0x12ff   : > { %v4022_v25 = vmul.f32 0.00390625, %v4021_v54  ;;  %v6417_v54 = vld [vmem:[#allocation9 + $0x324] ss:$8 sps:$4 sm:$0xff]  }
0x1301   : > { %v7191_v55 = vsub.f32 %v7183_v2, %v4022_v25  ;;  %v7194_v56 = vsub.f32 %v7186_v42, %v4022_v25  ;;  %v6372_v2 = vld [vmem:[#allocation7 + $0x364] ss:$16 sps:$4 sm:$0xff]   ;;  %v6370_v42 = vld [vmem:[#allocation7 + $0x360] ss:$16 sps:$4 sm:$0xff]  }
0x1302   : > { %4420 = vmatprep.subr.bf16.mxu1 %v6372_v2  ;;  %v6412_v25 = vld [vmem:[#allocation9 + $0x220] ss:$8 sps:$4 sm:$0xff]   ;;  %v6432_v2 = vld [vmem:[#allocation9 + $0x254] ss:$8 sps:$4 sm:$0xff]  }
0x1303   : > { %v4025_v57 = vmul.f32 %v7191_v55, %v7191_v55  ;;  %v4026_v58 = vmul.f32 %v7194_v56, %v7194_v56  ;;  %4421 = vmatpush1.bf16.msra.mxu1 %v6370_v42  ;;  %v6430_v42 = vld [vmem:[#allocation9 + $0x250] ss:$8 sps:$4 sm:$0xff]  }
0x1304   : > { %4422 = vmatprep.subr.bf16.mxu1 %v6378_v5  ;;  %v6438_v5 = vld [vmem:[#allocation9 + $0x264] ss:$8 sps:$4 sm:$0xff]  }
0x1305   : > { %v4027_v59 = vadd.f32 %v4026_v58, %v4025_v57  ;;  %v6423_v57 = vld [vmem:[#allocation9 + $0x334] ss:$8 sps:$4 sm:$0xff]   ;;  %v6418_v58 = vld [vmem:[#allocation9 + $0x230] ss:$8 sps:$4 sm:$0xff]  }
0x1307   : > { %4028 = vadd.xlane.f32.xlu1 %v4027_v59  ;;  %4423 = vmatpush1.bf16.msra.mxu1 %v6376_v8  ;;  %v6421_v59 = vld [vmem:[#allocation9 + $0x330] ss:$8 sps:$4 sm:$0xff]   ;;  %v6436_v8 = vld [vmem:[#allocation9 + $0x260] ss:$8 sps:$4 sm:$0xff]  }
0x1308   : > { %4424 = vmatprep.subr.bf16.mxu1 %v6384_v9  ;;  %v6444_v9 = vld [vmem:[#allocation9 + $0x274] ss:$8 sps:$4 sm:$0xff]  }
0x130b   : > { %4425 = vmatpush1.bf16.msra.mxu1 %v6382_v32  ;;  %v6442_v32 = vld [vmem:[#allocation9 + $0x270] ss:$8 sps:$4 sm:$0xff]  }
0x130c   : > { %4426 = vmatprep.subr.bf16.mxu1 %v6390_v12  ;;  %v6453_v12 = vld [vmem:[#allocation9 + $0x384] ss:$8 sps:$4 sm:$0xff]  }
0x130f   : > { %4427 = vmatpush1.bf16.msra.mxu1 %v6388_v11  ;;  %v6450_v11 = vld [vmem:[#allocation9 + $0x284] ss:$8 sps:$4 sm:$0xff]  }
0x1310   : > { %4428 = vmatprep.subr.bf16.mxu1 %v6396_v21  ;;  %v6456_v21 = vld [vmem:[#allocation9 + $0x294] ss:$8 sps:$4 sm:$0xff]  }
0x1313   : > { %4429 = vmatpush1.bf16.msra.mxu1 %v6394_v23  ;;  %v6454_v23 = vld [vmem:[#allocation9 + $0x290] ss:$8 sps:$4 sm:$0xff]  }
0x1314   : > { %4816 = vmatprep.subr.bf16.mxu1 %v6402_v26  ;;  %v6462_v26 = vld [vmem:[#allocation9 + $0x2a4] ss:$8 sps:$4 sm:$0xff]  }
0x1394   : > { %v4029_v29 = vpop.xlane.xlu1 %4028 }
0x1395   : > { %v4030_v51 = vmul.f32 0.00390625, %v4029_v29  ;;  %v6460_v29 = vld [vmem:[#allocation9 + $0x2a0] ss:$8 sps:$4 sm:$0xff]  }
0x1397   : > { %v4031_v6 = vadd.f32 1e-05, %v4030_v51  ;;  %v6463_v51 = vld [vmem:[#allocation9 + $0x3a0] ss:$8 sps:$4 sm:$0xff]  }
0x1399   : > { %6516 = vrsqrt.f32 %v4031_v6  ;;  %v6468_v6 = vld [vmem:[#allocation9 + $0x2b4] ss:$8 sps:$4 sm:$0xff]  }
0x13a3   : > { %v6517_v34 = vpop.eup %6516 }
0x13a4   : > { %v4033_v36 = vmul.f32 %v6517_v34, %v7191_v55  ;;  %v4034_v37 = vmul.f32 %v6517_v34, %v7194_v56  ;;  %v6415_v55 = vld [vmem:[#allocation9 + $0x320] ss:$8 sps:$4 sm:$0xff]   ;;  %v6420_v56 = vld [vmem:[#allocation9 + $0x234] ss:$8 sps:$4 sm:$0xff]   ;;  %v6469_v34 = vld [vmem:[#allocation9 + $0x3b0] ss:$8 sps:$4 sm:$0xff]  }
0x13a6   : > { %v4044_v41 = vmul.f32 %v4042_v30, %v4034_v37  ;;  %v4043_v46 = vmul.f32 %v4038_v31, %v4033_v36  ;;  %v6471_v30 = vld [vmem:[#allocation9 + $0x3b4] ss:$8 sps:$4 sm:$0xff]   ;;  %v6466_v31 = vld [vmem:[#allocation9 + $0x2b0] ss:$8 sps:$4 sm:$0xff]   ;;  %v6474_v36 = vld [vmem:[#allocation9 + $0x2c4] ss:$8 sps:$4 sm:$0xff]  }
0x13a7   : > { %v6477_v37 = vld [vmem:[#allocation9 + $0x3c4] ss:$8 sps:$4 sm:$0xff]  }
0x13a8   : > { %v7210_v18 = vadd.f32 %v4052_v38, %v4044_v41  ;;  %v7212_v35 = vadd.f32 %v4048_v40, %v4043_v46  ;;  %v6472_v38 = vld [vmem:[#allocation9 + $0x2c0] ss:$8 sps:$4 sm:$0xff]   ;;  %v6480_v41 = vld [vmem:[#allocation9 + $0x2d4] ss:$8 sps:$4 sm:$0xff]  }
0x13a9   : > { %v6475_v40 = vld [vmem:[#allocation9 + $0x3c0] ss:$8 sps:$4 sm:$0xff]   ;;  %v6483_v46 = vld [vmem:[#allocation9 + $0x3d4] ss:$8 sps:$4 sm:$0xff]  }
0x13aa   : > { %v4056_v20 = vpack.c.bf16 %v7210_v18, %v7210_v18  ;;  %v4055_v47 = vpack.c.bf16 %v7212_v35, %v7212_v35 }
0x13ac   : > { %4430 = vmatprep.mubr.bf16.mxu1 %v4056_v20  ;;  %4471 = vmatprep.mubr.bf16.mxu0 %v4056_v20  ;;  %v6478_v20 = vld [vmem:[#allocation9 + $0x2d0] ss:$8 sps:$4 sm:$0xff]  }
0x13ad   : > { %4431 = vmatmul.mubr.bf16.vlgmr.msra.gmra.mrb[52].mxu1 %v4055_v47  ;;  %4472 = vmatmul.mubr.bf16.vlgmr.msra.gmra.mrb[28].mxu0 %v4055_v47  ;;  %v6481_v47 = vld [vmem:[#allocation9 + $0x3d0] ss:$8 sps:$4 sm:$0xff]  }
0x13ae   : > { %4817 = vmatpush1.bf16.msra.mxu1 %v6400_v48  ;;  %4858 = vmatpush1.bf16.msra.mxu0 %v6403_v49  ;;  %v6486_v48 = vld [vmem:[#allocation9 + $0x2e4] ss:$8 sps:$4 sm:$0xff]  }
0x13af   : > { %4818 = vmatprep.subr.bf16.mxu1 %v6408_v50  ;;  %4859 = vmatprep.subr.bf16.mxu0 %v6411_v52  ;;  %v6489_v49 = vld [vmem:[#allocation9 + $0x3e4] ss:$8 sps:$4 sm:$0xff]   ;;  %v6484_v50 = vld [vmem:[#allocation9 + $0x2e0] ss:$8 sps:$4 sm:$0xff]  }
0x13b0   : > { %v6487_v52 = vld [vmem:[#allocation9 + $0x3e0] ss:$8 sps:$4 sm:$0xff]  }
0x13b2   : > { %4819 = vmatpush1.bf16.msra.mxu1 %v6406_v28  ;;  %4860 = vmatpush1.bf16.msra.mxu0 %v6409_v53  ;;  %v6492_v28 = vld [vmem:[#allocation9 + $0x2f4] ss:$8 sps:$4 sm:$0xff]  }
0x13b3   : > { %4820 = vmatprep.subr.bf16.mxu1 %v6414_v43  ;;  %4861 = vmatprep.subr.bf16.mxu0 %v6417_v54  ;;  %v6495_v53 = vld [vmem:[#allocation9 + $0x3f4] ss:$8 sps:$4 sm:$0xff]   ;;  %v6490_v43 = vld [vmem:[#allocation9 + $0x2f0] ss:$8 sps:$4 sm:$0xff]  }
0x13b4   : > { %v6493_v54 = vld [vmem:[#allocation9 + $0x3f0] ss:$8 sps:$4 sm:$0xff]  }
0x13b6   : > { %4821 = vmatpush1.bf16.msra.mxu1 %v6412_v25  ;;  %4862 = vmatpush1.bf16.msra.mxu0 %v6415_v55  ;;  %v5334_v25 = vld [vmem:[%s7255_s8 + $0x4] sm:$0xf] }
0x13b7   : > { %4822 = vmatprep.subr.bf16.mxu1 %v6420_v56  ;;  %4863 = vmatprep.subr.bf16.mxu0 %v6423_v57  ;;  %v4061_v55 = vrot.slane %v5334_v25, %v6947_v0  ;;  %v4069_v56 = vrot.slane %v5334_v25, %v6958_v14  ;;  %v4065_v57 = vrot.slane %v5334_v25, %v6932_v44 }
0x13ba   : > { %4823 = vmatpush1.bf16.msra.mxu1 %v6418_v58  ;;  %4864 = vmatpush1.bf16.msra.mxu0 %v6421_v59  ;;  %v4073_v58 = vrot.slane %v5334_v25, %v6998_v33 }
0x13bb   : > { %4824 = vmatprep.subr.bf16.mxu1 %v6426_v61  ;;  %4865 = vmatprep.subr.bf16.mxu0 %v6429_v60 }
0x13be   : > { %4825 = vmatpush1.bf16.msra.mxu1 %v6424_v62  ;;  %4866 = vmatpush1.bf16.msra.mxu0 %v6427_v15 }
0x13bf   : > { %4826 = vmatprep.subr.bf16.mxu1 %v6432_v2  ;;  %4867 = vmatprep.subr.bf16.mxu0 %v6435_v3 }
0x13c2   : > { %4827 = vmatpush1.bf16.msra.mxu1 %v6430_v42  ;;  %4868 = vmatpush1.bf16.msra.mxu0 %v6433_v13 }
0x13c3   : > { %4828 = vmatprep.subr.bf16.mxu1 %v6438_v5  ;;  %4869 = vmatprep.subr.bf16.mxu0 %v6441_v7 }
0x13c6   : > { %4829 = vmatpush1.bf16.msra.mxu1 %v6436_v8  ;;  %4870 = vmatpush1.bf16.msra.mxu0 %v6439_v4 }
0x13c7   : > { %4830 = vmatprep.subr.bf16.mxu1 %v6444_v9  ;;  %4871 = vmatprep.subr.bf16.mxu0 %v6447_v39 }
0x13ca   : > { %4831 = vmatpush1.bf16.msra.mxu1 %v6442_v32  ;;  %4872 = vmatpush1.bf16.msra.mxu0 %v6445_v16 }
0x13cb   : > { %4832 = vmatprep.subr.bf16.mxu1 %v6450_v11  ;;  %4873 = vmatprep.subr.bf16.mxu0 %v6453_v12  ;;  %v4491_v11 = vrot.slane %v7143_v10, %v6958_v14  ;;  %v4495_v12 = vrot.slane %v7155_v45, %v6958_v14 }
0x13ce   : > { %4833 = vmatpush1.bf16.msra.mxu1 %v6448_v17  ;;  %4874 = vmatpush1.bf16.msra.mxu0 %v6451_v19 }
0x13cf   : > { %4834 = vmatprep.subr.bf16.mxu1 %v6456_v21  ;;  %4875 = vmatprep.subr.bf16.mxu0 %v6459_v22 }
0x13d2   : > { %4835 = vmatpush1.bf16.msra.mxu1 %v6454_v23  ;;  %4876 = vmatpush1.bf16.msra.mxu0 %v6457_v24 }
0x13d3   : > { %4836 = vmatprep.subr.bf16.mxu1 %v6462_v26  ;;  %4877 = vmatprep.subr.bf16.mxu0 %v6465_v27 }
0x13d6   : > { %4837 = vmatpush1.bf16.msra.mxu1 %v6460_v29  ;;  %4878 = vmatpush1.bf16.msra.mxu0 %v6463_v51 }
0x13d7   : > { %4838 = vmatprep.subr.bf16.mxu1 %v6468_v6  ;;  %4879 = vmatprep.subr.bf16.mxu0 %v6471_v30 }
0x13da   : > { %4839 = vmatpush1.bf16.msra.mxu1 %v6466_v31  ;;  %4880 = vmatpush1.bf16.msra.mxu0 %v6469_v34 }
0x13db   : > { %4840 = vmatprep.subr.bf16.mxu1 %v6474_v36  ;;  %4881 = vmatprep.subr.bf16.mxu0 %v6477_v37 }
0x13de   : > { %4841 = vmatpush1.bf16.msra.mxu1 %v6472_v38  ;;  %4882 = vmatpush1.bf16.msra.mxu0 %v6475_v40 }
0x13df   : > { %4842 = vmatprep.subr.bf16.mxu1 %v6480_v41  ;;  %4883 = vmatprep.subr.bf16.mxu0 %v6483_v46 }
0x13e2   : > { %4843 = vmatpush1.bf16.msra.mxu1 %v6478_v20  ;;  %4884 = vmatpush1.bf16.msra.mxu0 %v6481_v47 }
0x13e3   : > { %4844 = vmatprep.subr.bf16.mxu1 %v6486_v48  ;;  %4885 = vmatprep.subr.bf16.mxu0 %v6489_v49 }
0x13e6   : > { %4845 = vmatpush1.bf16.msra.mxu1 %v6484_v50  ;;  %4886 = vmatpush1.bf16.msra.mxu0 %v6487_v52  ;;  %v4929_v52 = vrot.slane %v7143_v10, %v7104_v1 }
0x13e7   : > { %4846 = vmatprep.subr.bf16.mxu1 %v6492_v28  ;;  %4887 = vmatprep.subr.bf16.mxu0 %v6495_v53  ;;  %v4933_v28 = vrot.slane %v7155_v45, %v7104_v1 }
0x13ea   : > { %4847 = vmatpush1.bf16.msra.mxu1 %v6490_v43  ;;  %4888 = vmatpush1.bf16.msra.mxu0 %v6493_v54 }
0x1480   : > { %v4432_v59 = vpop.f32.mrb[52].mxu1  ;;  %v4473_v61 = vpop.f32.mrb[28].mxu0 }
0x1481   : > { %v4433_v60 = vadd.f32 %v4432_v59, %v4061_v55  ;;  %v4474_v62 = vadd.f32 %v4473_v61, %v4069_v56  ;;  %v4434_v15 = vpop.f32.mrb[53].mxu1  ;;  %v4475_v2 = vpop.f32.mrb[29].mxu0 }
0x1482   : > { %v4435_v3 = vadd.f32 %v4434_v15, %v4065_v57  ;;  %v4476_v42 = vadd.f32 %v4475_v2, %v4073_v58  ;;  %v4436_v13 = vpop.f32.mrb[54].mxu1  ;;  %v4477_v5 = vpop.f32.mrb[30].mxu0 }
0x1483   : > { %v4480_v7 = vmax.f32 %v4433_v60, 0.0  ;;  %v4482_v8 = vmax.f32 %v4474_v62, 0.0  ;;  %v4437_v4 = vpop.f32.mrb[55].mxu1  ;;  %v4478_v0 = vpop.f32.mrb[31].mxu0 }
0x1484   : > { %v4481_v9 = vmax.f32 %v4435_v3, 0.0  ;;  %v4483_v39 = vmax.f32 %v4476_v42, 0.0 }
0x1485   : > { %v4484_v16 = vpack.c.bf16 %v4480_v7, %v4480_v7  ;;  %v4486_v33 = vpack.c.bf16 %v4482_v8, %v4482_v8 }
0x1486   : > { %v4485_v32 = vpack.c.bf16 %v4481_v9, %v4481_v9  ;;  %v4487_v44 = vpack.c.bf16 %v4483_v39, %v4483_v39 }
0x1488   : > { %4848 = vmatprep.mubr.bf16.mxu1 %v4485_v32  ;;  %4889 = vmatprep.mubr.bf16.mxu0 %v4487_v44 }
0x1489   : > { %4849 = vmatmul.mubr.bf16.vlgmr.msra.gmra.mrb[56].mxu1 %v4484_v16  ;;  %4890 = vmatmul.mubr.bf16.vlgmr.msra.gmra.mrb[32].mxu0 %v4486_v33 }
0x155c   : > { %v4850_v17 = vpop.f32.mrb[56].mxu1  ;;  %v4891_v19 = vpop.f32.mrb[32].mxu0 }
0x155d   : > { %v4851_v21 = vadd.f32 %v4850_v17, %v4491_v11  ;;  %v4852_v22 = vpop.f32.mrb[57].mxu1  ;;  %v4893_v23 = vpop.f32.mrb[33].mxu0 }
0x155e   : > { %v4853_v24 = vadd.f32 %v4852_v22, %v4495_v12  ;;  %v4854_v26 = vpop.f32.mrb[58].mxu1  ;;  %v4895_v27 = vpop.f32.mrb[34].mxu0 }
0x155f   : > { %v4892_v29 = vadd.f32 %v4891_v19, %v4851_v21  ;;  %v4855_v51 = vpop.f32.mrb[59].mxu1  ;;  %v4896_v6 = vpop.f32.mrb[35].mxu0 }
0x1560   : > { %v4894_v30 = vadd.f32 %v4893_v23, %v4853_v24 }
0x1561   : > { %v4898_v31 = vadd.f32 %v4892_v29, %v7212_v35  ;;  %v4919_v35 = vrot.slane %v7143_v10, %v7101_v63 }
0x1562   : > { %v4899_v34 = vadd.f32 %v4894_v30, %v7210_v18  ;;  %v4923_v18 = vrot.slane %v7155_v45, %v7101_v63 }
0x1564   : > { %v4900_v36 = vadd.f32 %v4899_v34, %v4898_v31 }
0x1566   : > { %4901 = vadd.xlane.f32.xlu0 %v4900_v36 }
0x15f3   : > { %v4902_v37 = vpop.xlane.xlu0 %4901 }
0x15f4   : > { %v4903_v14 = vmul.f32 0.00390625, %v4902_v37 }
0x15f6   : > { %v4904_v38 = vsub.f32 %v4898_v31, %v4903_v14  ;;  %v4905_v40 = vsub.f32 %v4899_v34, %v4903_v14 }
0x15f8   : > { %v4906_v41 = vmul.f32 %v4904_v38, %v4904_v38  ;;  %v4907_v46 = vmul.f32 %v4905_v40, %v4905_v40 }
0x15fa   : > { %v4908_v20 = vadd.f32 %v4907_v46, %v4906_v41 }
0x15fc   : > { %4909 = vadd.xlane.f32.xlu1 %v4908_v20 }
0x1689   : > { %v4910_v47 = vpop.xlane.xlu1 %4909 }
0x168a   : > { %v4911_v48 = vmul.f32 0.00390625, %v4910_v47 }
0x168c   : > { %v4912_v49 = vadd.f32 1e-05, %v4911_v48 }
0x168e   : > { %6518 = vrsqrt.f32 %v4912_v49 }
0x1698   : > { %v6519_v50 = vpop.eup %6518 }
0x1699   : > { %v4914_v53 = vmul.f32 %v6519_v50, %v4904_v38  ;;  %v4915_v43 = vmul.f32 %v6519_v50, %v4905_v40 }
0x169b   : > { %v4924_v54 = vmul.f32 %v4919_v35, %v4914_v53  ;;  %v4925_v25 = vmul.f32 %v4923_v18, %v4915_v43 }
0x169d   : > { %v4934_v55 = vadd.f32 %v4929_v52, %v4924_v54  ;;  %v4935_v56 = vadd.f32 %v4933_v28, %v4925_v25 }
0x169f   : > { %4936 = vst [vmem:[%s449_s20] sm:$0xff] %v4934_v55  ;;  %4937 = vst [vmem:[%s449_s20 + $0x8] sm:$0xff] %v4935_v56 }
0x16a0 PF: > { %s23_s13 = sadd.s32 1, %s6682_s13  }
0x16a1   : > { %p20_p6 = scmp.ge.s32.totalorder %s23_s13, 4  }
0x16a3   :  { %22 = sbr.rel (!%p20_p6) target bundleno = 3 (0x3), region = 122 }
0x16aa   :  { %4959 = vsyncpa [#allocation3], 1 }
0x16ab   :  { %4961 = vsyncpa [#allocation3 + $0x1], 1 }
0x16ac   :  { %4962 = vsyncpa [#allocation5], 1 }
0x16ad   :  { %4963 = vsyncpa [#allocation8], 1 }

</bundles_post_ra>
